<compile_context>
chip_gen: v7x
topology: tpu7x:2x2x1
jax: 0.10.0
libtpu: 0.0.40
codegen_flags: <defaults>
</compile_context>

<pallas_src>
import math

import jax
import jax.numpy as jnp
from jax.experimental import pallas as pl
from jax.experimental.pallas import tpu as pltpu


def _round_up(x, m):
    return -(-x // m) * m


def mil_fc_mc_kernel(h_ref, w1_ref, b1_ref, w2_ref, b2_ref, out_ref, *feat_refs):
    """One grid step: [tile_n, D] instances -> packed [tile_n, 2*C] (logits | probs).

    fc: Linear(D->H) + ReLU (+ Dropout(p=0.0) == identity)
    classifiers: Linear(H->C); softmax over dim=1.
    bf16 operands on the MXU with f32 accumulation; bias/ReLU/softmax in f32.
    """
    # Cast h to bf16 in-kernel (hidden under the matmul) instead of paying a
    # separate wrapper-side XLA pass over the dominant array.
    x = h_ref[...].astype(jnp.bfloat16)

    z = jnp.dot(x, w1_ref[...], preferred_element_type=jnp.float32) + b1_ref[...]
    z = jnp.maximum(z, 0.0)                       # ReLU; Dropout(p=0.0) is identity

    if feat_refs:                                 # optional post-fc features output
        feat_refs[0][...] = z.astype(feat_refs[0].dtype)

    zb = z.astype(jnp.bfloat16)                   # bf16 activation between matmuls
    logits = jnp.dot(zb, w2_ref[...], preferred_element_type=jnp.float32) + b2_ref[...]

    # Row-wise numerically-stable softmax.  Exact divide (C is tiny) so the
    # cross-row flattened argmax is not perturbed by approximate reciprocals.
    m = jnp.max(logits, axis=-1, keepdims=True)
    e = jnp.exp(logits - m)
    probs = e / jnp.sum(e, axis=-1, keepdims=True)

    # Pack both per-instance results into one lane slab: [:, :C]=logits, [:, C:]=probs.
    out_ref[...] = jnp.concatenate([logits, probs], axis=-1).astype(out_ref.dtype)


def _choose_tile_n(n):
    """Tile height: >=2 grid steps when possible (keeps both v7x TensorCores
    busy), multiples of 128 for medium/large bags (fills the v5e MXU; 256/512
    fill v6e/v7x), capped at 512 to bound the f32 [tile_n, 512] intermediate
    between the two matmuls."""
    if n <= 8:
        return _round_up(max(n, 1), 8)
    if n <= 256:
        return max(8, _round_up(-(-n // 2), 8))   # two tiles
    return 512 if n >= 1024 else 256


def mil_fc_mc_forward(h, params, n_classes, tile_n=None, return_features=False,
                      h_buffer_count=2):
    """Forward pass of MIL_fc_mc.

    Returns (top_instance, Y_prob, Y_hat, y_probs, results_dict), mirroring the
    PyTorch module.  `h_buffer_count` controls the pipelining depth of the h
    tiles (sweep to 3 on v6e for large N; 2 is the default double buffer).
    """
    N, D = h.shape
    w1, b1, w2, b2 = params["w1"], params["b1"], params["w2"], params["b2"]
    H = w1.shape[1]
    C = w2.shape[1]
    assert C == n_classes and n_classes > 2

    if tile_n is None:
        tile_n = _choose_tile_n(N)
    n_tiles = -(-N // tile_n)
    N_pad = n_tiles * tile_n

    # Pad only when the bag size is ragged; the pad stays in h's input dtype
    # (the bf16 cast happens inside the kernel, not here).
    h_in = jnp.pad(h, ((0, N_pad - N), (0, 0))) if N_pad != N else h

    # Small one-time casts (weights are <= ~2 MiB; not flagged by the roofline).
    w1_bf = w1.astype(jnp.bfloat16)
    w2_bf = w2.astype(jnp.bfloat16)
    b1_f32 = b1.reshape(1, H).astype(jnp.float32)
    b2_f32 = b2.reshape(1, C).astype(jnp.float32)

    out_shape = [jax.ShapeDtypeStruct((N_pad, 2 * C), jnp.float32)]
    if return_features:
        out_shape.append(jax.ShapeDtypeStruct((N_pad, H), jnp.float32))

    def _run(use_buffer_hints):
        def spec(shape, index_map, nbuf=None):
            if use_buffer_hints and nbuf is not None and nbuf != 2:
                return pl.BlockSpec(shape, index_map,
                                    pipeline_mode=pl.Buffered(nbuf))
            return pl.BlockSpec(shape, index_map)

        const = lambda i: (0, 0)
        row = lambda i: (i, 0)
        in_specs = [
            spec((tile_n, D), row, h_buffer_count),    # h tile (bf16 cast in-kernel)
            spec((D, H), const, 1),                    # W1 resident, single-buffered
            spec((1, H), const, 1),                    # b1 (f32)
            spec((H, C), const, 1),                    # W2 resident
            spec((1, C), const, 1),                    # b2 (f32)
        ]
        out_specs = [pl.BlockSpec((tile_n, 2 * C), row)]   # packed logits|probs
        if return_features:
            out_specs.append(pl.BlockSpec((tile_n, H), row))

        return pl.pallas_call(
            mil_fc_mc_kernel,
            out_shape=tuple(out_shape),
            grid_spec=pltpu.PrefetchScalarGridSpec(
                num_scalar_prefetch=0,
                grid=(n_tiles,),
                in_specs=in_specs,
                out_specs=tuple(out_specs),
            ),
            compiler_params=pltpu.CompilerParams(
                dimension_semantics=("parallel",)),
        )(h_in, w1_bf, b1_f32, w2_bf, b2_f32)

    try:
        outs = _run(True)
    except Exception:
        # pl.Buffered pipeline hints unsupported in this JAX build; they are a
        # minor VMEM-headroom tweak, so fall back to default double buffering.
        outs = _run(False)

    if return_features:
        packed, feats = outs
    else:
        (packed,) = outs

    logits = packed[:N, :C]
    y_probs = packed[:N, C:]

    # Top-1 selection over the flattened softmax, mirroring the torch code:
    #   m = y_probs.view(1, -1).argmax(1)
    #   top_indices = cat((m // C, m % C)).view(-1, 1)
    m = jnp.argmax(y_probs.reshape(1, -1), axis=1)                    # (1,)
    row_idx = (m // n_classes).reshape(-1, 1)
    cls_idx = (m % n_classes).reshape(-1, 1)
    top_indices = jnp.concatenate([row_idx, cls_idx], axis=1).reshape(-1, 1)  # (2,1)

    top_instance = logits[top_indices[0]]     # (1, C)
    Y_hat = top_indices[1]                    # (1,)
    Y_prob = y_probs[top_indices[0]]          # (1, C)

    results_dict = {}
    if return_features:
        top_features = feats[:N][top_indices[0]]   # (1, H) post-fc ReLU features
        results_dict["features"] = top_features
    return top_instance, Y_prob, Y_hat, y_probs, results_dict


def init_params(key, embed_dim=1024, hidden=512, n_classes=4):
    """Deterministic, PyTorch-Linear-style uniform init (U(-1/sqrt(fan_in), ...))."""
    k1, k2, k3, k4 = jax.random.split(key, 4)
    lim1 = 1.0 / math.sqrt(embed_dim)
    lim2 = 1.0 / math.sqrt(hidden)
    return {
        "w1": jax.random.uniform(k1, (embed_dim, hidden), jnp.float32, -lim1, lim1),
        "b1": jax.random.uniform(k2, (1, hidden), jnp.float32, -lim1, lim1),
        "w2": jax.random.uniform(k3, (hidden, n_classes), jnp.float32, -lim2, lim2),
        "b2": jax.random.uniform(k4, (1, n_classes), jnp.float32, -lim2, lim2),
    }


if __name__ == "__main__":
    # Bag of 256 instances, embed_dim=1024 (module 'small' => [1024, 512]),
    # n_classes=4 (module requires > 2).  Auto tile_n = 128 -> a 2-step
    # "parallel" grid (both v7x TensorCores busy; fills the v5e MXU).
    N, EMBED_DIM, HIDDEN, N_CLASSES = 256, 1024, 512, 4

    key = jax.random.PRNGKey(0)
    k_h, k_p = jax.random.split(key)
    h = jax.random.normal(k_h, (N, EMBED_DIM), dtype=jnp.float32)
    params = init_params(k_p, EMBED_DIM, HIDDEN, N_CLASSES)

    top_instance, Y_prob, Y_hat, y_probs, results_dict = mil_fc_mc_forward(
        h, params, n_classes=N_CLASSES, return_features=True)
    jax.block_until_ready(
        (top_instance, Y_prob, Y_hat, y_probs, results_dict["features"]))

    # Shape checks.
    assert top_instance.shape == (1, N_CLASSES)
    assert Y_prob.shape == (1, N_CLASSES)
    assert Y_hat.shape == (1,)
    assert y_probs.shape == (N, N_CLASSES)
    assert results_dict["features"].shape == (1, HIDDEN)

    # Numerical checks against a plain-JAX f32 reference (bf16 MXU matmuls
    # introduce small, bounded error).
    ref_z = jnp.maximum(h @ params["w1"] + params["b1"], 0.0)
    ref_logits = ref_z @ params["w2"] + params["b2"]
    ref_probs = jax.nn.softmax(ref_logits, axis=1)

    assert bool(jnp.allclose(jnp.sum(y_probs, axis=1), 1.0, atol=1e-3))
    assert bool(jnp.allclose(y_probs, ref_probs, atol=3e-2))

    # Real top-1 checks (replacing the previous self-comparison assert).
    sel_row = int(jnp.argmax(y_probs.reshape(-1)) // N_CLASSES)
    assert bool(jnp.allclose(top_instance, ref_logits[sel_row][None], atol=5e-2))
    assert bool(jnp.allclose(Y_prob, ref_probs[sel_row][None], atol=3e-2))
    assert int(Y_hat[0]) == int(jnp.argmax(y_probs[sel_row]))
    assert bool(jnp.allclose(results_dict["features"], ref_z[sel_row][None], atol=5e-2))
    # The selected instance must sit at (or numerically at) the reference optimum.
    assert float(ref_probs[sel_row, int(Y_hat[0])]) >= float(ref_probs.max()) - 3e-2

    print("KERNEL_OK")
</pallas_src>

<mosaic_0001>
module attributes {stable_mosaic.version = 11 : i64} {
  func.func @mil_fc_mc_kernel(%arg0: i32, %arg1: memref<128x1024xf32, #tpu.memory_space<vmem>>, %arg2: memref<1024x512xbf16, #tpu.memory_space<vmem>>, %arg3: memref<1x512xf32, #tpu.memory_space<vmem>>, %arg4: memref<512x4xbf16, #tpu.memory_space<vmem>>, %arg5: memref<1x4xf32, #tpu.memory_space<vmem>>, %arg6: memref<128x8xf32, #tpu.memory_space<vmem>>, %arg7: memref<128x512xf32, #tpu.memory_space<vmem>>) attributes {dimension_semantics = [#tpu.dimension_semantics<parallel>], iteration_bounds = array<i64: 2>, scalar_prefetch = 0 : i64, scratch_operands = 0 : i64, tpu.core_type = #tpu.core_type<tc>, window_params = [{transform_indices = @transform_0, window_bounds = array<i64: 128, 1024>}, {pipeline_mode = #tpu.pipeline_mode<synchronous>, transform_indices = @transform_1, window_bounds = array<i64: 1024, 512>}, {pipeline_mode = #tpu.pipeline_mode<synchronous>, transform_indices = @transform_2, window_bounds = array<i64: 1, 512>}, {pipeline_mode = #tpu.pipeline_mode<synchronous>, transform_indices = @transform_3, window_bounds = array<i64: 512, 4>}, {pipeline_mode = #tpu.pipeline_mode<synchronous>, transform_indices = @transform_4, window_bounds = array<i64: 1, 4>}, {transform_indices = @transform_5, window_bounds = array<i64: 128, 8>}, {transform_indices = @transform_6, window_bounds = array<i64: 128, 512>}]} {
    %c0 = arith.constant 0 : index
    %c0_0 = arith.constant 0 : index
    %0 = vector.load %arg1[%c0, %c0_0] : memref<128x1024xf32, #tpu.memory_space<vmem>>, vector<128x1024xf32>
    %1 = arith.truncf %0 : vector<128x1024xf32> to vector<128x1024xbf16>
    %c0_1 = arith.constant 0 : index
    %c0_2 = arith.constant 0 : index
    %2 = vector.load %arg2[%c0_1, %c0_2] : memref<1024x512xbf16, #tpu.memory_space<vmem>>, vector<1024x512xbf16>
    %cst = arith.constant dense<0.000000e+00> : vector<128x512xf32>
    %3 = tpu.matmul %1, %2, %cst {dimension_numbers = #tpu.dot_dimension_numbers<[1], [0], [0], [1], [0, 0, 1, 1], [], []>} : vector<128x1024xbf16>, vector<1024x512xbf16>, vector<128x512xf32> -> vector<128x512xf32>
    %c0_3 = arith.constant 0 : index
    %c0_4 = arith.constant 0 : index
    %4 = vector.load %arg3[%c0_3, %c0_4] : memref<1x512xf32, #tpu.memory_space<vmem>>, vector<1x512xf32>
    %5 = vector.broadcast %4 : vector<1x512xf32> to vector<128x512xf32>
    %6 = arith.addf %3, %5 : vector<128x512xf32>
    %cst_5 = arith.constant 0.000000e+00 : f32
    %7 = vector.broadcast %cst_5 : f32 to vector<128x512xf32>
    %8 = arith.maximumf %6, %7 : vector<128x512xf32>
    %c0_6 = arith.constant 0 : index
    %c0_7 = arith.constant 0 : index
    %9 = vector.load %arg7[%c0_6, %c0_7] : memref<128x512xf32, #tpu.memory_space<vmem>>, vector<128x512xf32>
    tpu.vector_store %arg7[%c0_6, %c0_7], %8 {strides = array<i32>} : memref<128x512xf32, #tpu.memory_space<vmem>>, vector<128x512xf32>,
    %10 = arith.truncf %8 : vector<128x512xf32> to vector<128x512xbf16>
    %c0_8 = arith.constant 0 : index
    %c0_9 = arith.constant 0 : index
    %11 = vector.load %arg4[%c0_8, %c0_9] : memref<512x4xbf16, #tpu.memory_space<vmem>>, vector<512x4xbf16>
    %cst_10 = arith.constant dense<0.000000e+00> : vector<128x4xf32>
    %12 = tpu.matmul %10, %11, %cst_10 {dimension_numbers = #tpu.dot_dimension_numbers<[1], [0], [0], [1], [0, 0, 1, 1], [], []>} : vector<128x512xbf16>, vector<512x4xbf16>, vector<128x4xf32> -> vector<128x4xf32>
    %c0_11 = arith.constant 0 : index
    %c0_12 = arith.constant 0 : index
    %13 = vector.load %arg5[%c0_11, %c0_12] : memref<1x4xf32, #tpu.memory_space<vmem>>, vector<1x4xf32>
    %14 = vector.broadcast %13 : vector<1x4xf32> to vector<128x4xf32>
    %15 = arith.addf %12, %14 : vector<128x4xf32>
    %cst_13 = arith.constant dense<0xFF800000> : vector<128xf32>
    %16 = vector.multi_reduction <maximumf>, %15, %cst_13 [1] : vector<128x4xf32> to vector<128xf32>
    %17 = vector.shape_cast %16 : vector<128xf32> to vector<128x1xf32>
    %18 = vector.broadcast %17 : vector<128x1xf32> to vector<128x4xf32>
    %19 = arith.subf %15, %18 : vector<128x4xf32>
    %20 = math.exp %19 : vector<128x4xf32>
    %cst_14 = arith.constant dense<0.000000e+00> : vector<128xf32>
    %21 = vector.multi_reduction <add>, %20, %cst_14 [1] : vector<128x4xf32> to vector<128xf32>
    %22 = vector.shape_cast %21 : vector<128xf32> to vector<128x1xf32>
    %23 = vector.broadcast %22 : vector<128x1xf32> to vector<128x4xf32>
    %24 = arith.divf %20, %23 : vector<128x4xf32>
    %25 = tpu.concatenate %15, %24 in 1 : vector<128x4xf32>, vector<128x4xf32> -> vector<128x8xf32>
    %c0_15 = arith.constant 0 : index
    %c0_16 = arith.constant 0 : index
    %26 = vector.load %arg6[%c0_15, %c0_16] : memref<128x8xf32, #tpu.memory_space<vmem>>, vector<128x8xf32>
    tpu.vector_store %arg6[%c0_15, %c0_16], %25 {strides = array<i32>} : memref<128x8xf32, #tpu.memory_space<vmem>>, vector<128x8xf32>,
    return
  }
  func.func @transform_0(%arg0: i32) -> (i32, i32) {
    %c0_i32 = arith.constant 0 : i32
    %c0_i32_0 = arith.constant 0 : i32
    return %arg0, %c0_i32 : i32, i32
  }
  func.func @transform_1(%arg0: i32) -> (i32, i32) {
    %c0_i32 = arith.constant 0 : i32
    %c0_i32_0 = arith.constant 0 : i32
    %c0_i32_1 = arith.constant 0 : i32
    return %c0_i32, %c0_i32_0 : i32, i32
  }
  func.func @transform_2(%arg0: i32) -> (i32, i32) {
    %c0_i32 = arith.constant 0 : i32
    %c0_i32_0 = arith.constant 0 : i32
    %c0_i32_1 = arith.constant 0 : i32
    return %c0_i32, %c0_i32_0 : i32, i32
  }
  func.func @transform_3(%arg0: i32) -> (i32, i32) {
    %c0_i32 = arith.constant 0 : i32
    %c0_i32_0 = arith.constant 0 : i32
    %c0_i32_1 = arith.constant 0 : i32
    return %c0_i32, %c0_i32_0 : i32, i32
  }
  func.func @transform_4(%arg0: i32) -> (i32, i32) {
    %c0_i32 = arith.constant 0 : i32
    %c0_i32_0 = arith.constant 0 : i32
    %c0_i32_1 = arith.constant 0 : i32
    return %c0_i32, %c0_i32_0 : i32, i32
  }
  func.func @transform_5(%arg0: i32) -> (i32, i32) {
    %c0_i32 = arith.constant 0 : i32
    %c0_i32_0 = arith.constant 0 : i32
    return %arg0, %c0_i32 : i32, i32
  }
  func.func @transform_6(%arg0: i32) -> (i32, i32) {
    %c0_i32 = arith.constant 0 : i32
    %c0_i32_0 = arith.constant 0 : i32
    return %arg0, %c0_i32 : i32, i32
  }
}

module attributes {stable_mosaic.version = 11 : i64} {
  func.func @mil_fc_mc_kernel(%arg0: i32, %arg1: memref<128x1024xf32, #tpu.memory_space<vmem>>, %arg2: memref<1024x512xbf16, #tpu.memory_space<vmem>>, %arg3: memref<1x512xf32, #tpu.memory_space<vmem>>, %arg4: memref<512x4xbf16, #tpu.memory_space<vmem>>, %arg5: memref<1x4xf32, #tpu.memory_space<vmem>>, %arg6: memref<128x8xf32, #tpu.memory_space<vmem>>, %arg7: memref<128x512xf32, #tpu.memory_space<vmem>>) attributes {dimension_semantics = [#tpu.dimension_semantics<parallel>], iteration_bounds = array<i64: 2>, scalar_prefetch = 0 : i64, scratch_operands = 0 : i64, tpu.core_type = #tpu.core_type<tc>, window_params = [{transform_indices = @transform_0, window_bounds = array<i64: 128, 1024>}, {pipeline_mode = #tpu.pipeline_mode<synchronous>, transform_indices = @transform_1, window_bounds = array<i64: 1024, 512>}, {pipeline_mode = #tpu.pipeline_mode<synchronous>, transform_indices = @transform_2, window_bounds = array<i64: 1, 512>}, {pipeline_mode = #tpu.pipeline_mode<synchronous>, transform_indices = @transform_3, window_bounds = array<i64: 512, 4>}, {pipeline_mode = #tpu.pipeline_mode<synchronous>, transform_indices = @transform_4, window_bounds = array<i64: 1, 4>}, {transform_indices = @transform_5, window_bounds = array<i64: 128, 8>}, {transform_indices = @transform_6, window_bounds = array<i64: 128, 512>}]} {
    %c0 = arith.constant 0 : index
    %c0_0 = arith.constant 0 : index
    %0 = vector.load %arg1[%c0, %c0_0] : memref<128x1024xf32, #tpu.memory_space<vmem>>, vector<128x1024xf32>
    %1 = arith.truncf %0 : vector<128x1024xf32> to vector<128x1024xbf16>
    %c0_1 = arith.constant 0 : index
    %c0_2 = arith.constant 0 : index
    %2 = vector.load %arg2[%c0_1, %c0_2] : memref<1024x512xbf16, #tpu.memory_space<vmem>>, vector<1024x512xbf16>
    %cst = arith.constant dense<0.000000e+00> : vector<128x512xf32>
    %3 = tpu.matmul %1, %2, %cst {dimension_numbers = #tpu.dot_dimension_numbers<[1], [0], [0], [1], [0, 0, 1, 1], [], []>} : vector<128x1024xbf16>, vector<1024x512xbf16>, vector<128x512xf32> -> vector<128x512xf32>
    %c0_3 = arith.constant 0 : index
    %c0_4 = arith.constant 0 : index
    %4 = vector.load %arg3[%c0_3, %c0_4] : memref<1x512xf32, #tpu.memory_space<vmem>>, vector<1x512xf32>
    %5 = vector.broadcast %4 : vector<1x512xf32> to vector<128x512xf32>
    %6 = arith.addf %3, %5 : vector<128x512xf32>
    %cst_5 = arith.constant 0.000000e+00 : f32
    %7 = vector.broadcast %cst_5 : f32 to vector<128x512xf32>
    %8 = arith.maximumf %6, %7 : vector<128x512xf32>
    %c0_6 = arith.constant 0 : index
    %c0_7 = arith.constant 0 : index
    %9 = vector.load %arg7[%c0_6, %c0_7] : memref<128x512xf32, #tpu.memory_space<vmem>>, vector<128x512xf32>
    tpu.vector_store %arg7[%c0_6, %c0_7], %8 {strides = array<i32>} : memref<128x512xf32, #tpu.memory_space<vmem>>, vector<128x512xf32>,
    %10 = arith.truncf %8 : vector<128x512xf32> to vector<128x512xbf16>
    %c0_8 = arith.constant 0 : index
    %c0_9 = arith.constant 0 : index
    %11 = vector.load %arg4[%c0_8, %c0_9] : memref<512x4xbf16, #tpu.memory_space<vmem>>, vector<512x4xbf16>
    %cst_10 = arith.constant dense<0.000000e+00> : vector<128x4xf32>
    %12 = tpu.matmul %10, %11, %cst_10 {dimension_numbers = #tpu.dot_dimension_numbers<[1], [0], [0], [1], [0, 0, 1, 1], [], []>} : vector<128x512xbf16>, vector<512x4xbf16>, vector<128x4xf32> -> vector<128x4xf32>
    %c0_11 = arith.constant 0 : index
    %c0_12 = arith.constant 0 : index
    %13 = vector.load %arg5[%c0_11, %c0_12] : memref<1x4xf32, #tpu.memory_space<vmem>>, vector<1x4xf32>
    %14 = vector.broadcast %13 : vector<1x4xf32> to vector<128x4xf32>
    %15 = arith.addf %12, %14 : vector<128x4xf32>
    %cst_13 = arith.constant dense<0xFF800000> : vector<128xf32>
    %16 = vector.multi_reduction <maximumf>, %15, %cst_13 [1] : vector<128x4xf32> to vector<128xf32>
    %17 = vector.shape_cast %16 : vector<128xf32> to vector<128x1xf32>
    %18 = vector.broadcast %17 : vector<128x1xf32> to vector<128x4xf32>
    %19 = arith.subf %15, %18 : vector<128x4xf32>
    %20 = math.exp %19 : vector<128x4xf32>
    %cst_14 = arith.constant dense<0.000000e+00> : vector<128xf32>
    %21 = vector.multi_reduction <add>, %20, %cst_14 [1] : vector<128x4xf32> to vector<128xf32>
    %22 = vector.shape_cast %21 : vector<128xf32> to vector<128x1xf32>
    %23 = vector.broadcast %22 : vector<128x1xf32> to vector<128x4xf32>
    %24 = arith.divf %20, %23 : vector<128x4xf32>
    %25 = tpu.concatenate %15, %24 in 1 : vector<128x4xf32>, vector<128x4xf32> -> vector<128x8xf32>
    %c0_15 = arith.constant 0 : index
    %c0_16 = arith.constant 0 : index
    %26 = vector.load %arg6[%c0_15, %c0_16] : memref<128x8xf32, #tpu.memory_space<vmem>>, vector<128x8xf32>
    tpu.vector_store %arg6[%c0_15, %c0_16], %25 {strides = array<i32>} : memref<128x8xf32, #tpu.memory_space<vmem>>, vector<128x8xf32>,
    return
  }
  func.func @transform_0(%arg0: i32) -> (i32, i32) {
    %c0_i32 = arith.constant 0 : i32
    %c0_i32_0 = arith.constant 0 : i32
    return %arg0, %c0_i32 : i32, i32
  }
  func.func @transform_1(%arg0: i32) -> (i32, i32) {
    %c0_i32 = arith.constant 0 : i32
    %c0_i32_0 = arith.constant 0 : i32
    %c0_i32_1 = arith.constant 0 : i32
    return %c0_i32, %c0_i32_0 : i32, i32
  }
  func.func @transform_2(%arg0: i32) -> (i32, i32) {
    %c0_i32 = arith.constant 0 : i32
    %c0_i32_0 = arith.constant 0 : i32
    %c0_i32_1 = arith.constant 0 : i32
    return %c0_i32, %c0_i32_0 : i32, i32
  }
  func.func @transform_3(%arg0: i32) -> (i32, i32) {
    %c0_i32 = arith.constant 0 : i32
    %c0_i32_0 = arith.constant 0 : i32
    %c0_i32_1 = arith.constant 0 : i32
    return %c0_i32, %c0_i32_0 : i32, i32
  }
  func.func @transform_4(%arg0: i32) -> (i32, i32) {
    %c0_i32 = arith.constant 0 : i32
    %c0_i32_0 = arith.constant 0 : i32
    %c0_i32_1 = arith.constant 0 : i32
    return %c0_i32, %c0_i32_0 : i32, i32
  }
  func.func @transform_5(%arg0: i32) -> (i32, i32) {
    %c0_i32 = arith.constant 0 : i32
    %c0_i32_0 = arith.constant 0 : i32
    return %arg0, %c0_i32 : i32, i32
  }
  func.func @transform_6(%arg0: i32) -> (i32, i32) {
    %c0_i32 = arith.constant 0 : i32
    %c0_i32_0 = arith.constant 0 : i32
    return %arg0, %c0_i32 : i32, i32
  }
}

</mosaic_0001>

<bundles_post_ra>
// kernel: tpu_custom_call.1
= control target key start
LH: loop header
LB: loop body
LE: loop exit
PB: predicated region body
PF: predicated region fallthrough
CT: control target
= control target key end

     0   :  { %12 = vsyncpa [#allocation3], 0  ;;  %s6233_s0 = inlined_call_operand.hbm [shape: f32[256,1024], index: 0, kind: input, shape index: {}]   ;;  %s6234_s1 = inlined_call_operand.hbm [shape: bf16[1024,512], index: 1, kind: input, shape index: {}]   ;;  %s6235_s2 = inlined_call_operand.vmem [shape: f32[1,512], index: 2, kind: input, shape index: {}]   ;;  %s6236_s3 = inlined_call_operand.vmem [shape: bf16[512,4], index: 3, kind: input, shape index: {}]   ;;  %s6237_s4 = inlined_call_operand.vmem [shape: f32[1,4], index: 4, kind: input, shape index: {}]   ;;  %s6238_s5 = inlined_call_operand.vmem [shape: f32[256,8], index: 5, kind: output, shape index: {0}]   ;;  %s6239_s6 = inlined_call_operand.hbm [shape: f32[256,512], index: 6, kind: output, shape index: {1}]  }
   0x1   :  { %14 = vsyncpa [#allocation3 + $0x1], 0 }
   0x2   :  { %15 = vsyncpa [#allocation6], 0 }
   0x3   :  { %16 = vsyncpa [#allocation4], 0 }
   0x4   :  { %18 = vsyncpa [#allocation4 + $0x1], 0  ;;  %s5396_s21 = smov 0   ;;  %s5398_s22 = smov 0  }
   0x5   :  { %s5400_s23 = smov 0   ;;  %s5402_s24 = smov 0  }
   0x6 LB: > { %s5417_s25 = sadd.s32 4294967295, %s5349_s24   ;;  %s3980_s26 = sadd.s32 4294967294, %s5349_s24   ;;  %s5349_s24 = sphi %s5402_s24, %s6259_s24   ;;  %s5345_s23 = sphi %s5400_s23, %s6258_s23   ;;  %s5341_s22 = sphi %s5398_s22, %s6257_s22   ;;  %s5337_s21 = sphi %s5396_s21, %s6256_s21  }
   0x7   : > { %p44_p0 = scmp.ne.s32.totalorder %s5341_s22, %s5337_s21  ;;  %p6240_p1 = scmp.eq.s32.totalorder %s5417_s25, 0 }
   0x8   : > { %p184_p3 = scmp.eq.s32.totalorder %s3980_s26, 1  ;;  %p3981_p5 = scmp.ge.s32.totalorder %s5349_s24, 1 }
   0x9   : > { %p5426_p4 = por %p6240_p1, %p44_p0  ;;  %p191_p7 = scmp.lt.s32.totalorder %s5349_s24, 3 }
   0xa   : > { %p5431_p6 = por %p184_p3, %p44_p0  ;;  %s5351_s30 = smov [#allocation5]  }
   0xb   : > { %s6243_s27 = scalar_select %p5426_p4, 1, 0 }
   0xc   : > { %s6244_s28 = scalar_select %p5431_p6, 1, 0 }
   0xd   : > { %p5436_p8 = pnand %p3981_p5, %p191_p7  ;;  %s203_s7 = sshll.u32 %s5351_s30, 4  ;;  %s5440_s7 = int_to_ptr.vmem [resolvable:$true] %s203_s7 }
   0xe   : > { %s5452_s9 = sadd.s32 1, %s5349_s24   ;;  %s31_s10 = sadd.s32 1, %s5345_s23 }
   0xf   : > { %s6245_s29 = scalar_select %p5436_p8, 1, 0 }
  0x10   : > { %p4685_p9 = pneg %p5436_p8  ;;  %s28_s11 = ssub.s32 %s5349_s24, %s5452_s9 }
  0x11   : > { %s5221_s14 = scalar_lea.hbm %s6234_s1, 32768 }
  0x12   : > { %p5447_p11 = pnand %p4685_p9, %p6240_p1  ;;  %p5222_p12 = scmp.ne.s32.totalorder %s6234_s1, %s5221_s14 }
  0x13   : > { %p5228_p5 = scmp.lt.u32.totalorder %s5221_s14, %s6234_s1 }
  0x14   : > { %p5223_p13 = pneg %p5447_p11 }
  0x16   : > { %p5224_p0 = pnand %p5223_p13, %p5222_p12 }
  0x18   : > { %p5225_p3 = pneg %p5224_p0 }
  0x1a   : > { %p5230_p7 = pnand %p5228_p5, %p5225_p3 }
  0x1c   : > { %5233 = shalt.err (!%p5230_p7)
}
  0x1d   : > { %s5234_s19 = scalar_lea.vmem %s5440_s7, 32768  ;;  %p5242_p2 = scmp.lt.s32.totalorder %s5440_s7, %s5440_s7 }
  0x1e   : > { %p5235_p9 = scmp.ne.s32.totalorder %s5440_s7, %s5234_s19  ;;  %p5243_p6 = scmp.lt.s32.totalorder %s5234_s19, %s5234_s19 }
  0x20   : > { %p5237_p10 = pnand %p5235_p9, %p5223_p13  ;;  %p5244_p4 = por %p5243_p6, %p5242_p2 }
  0x22   : > { %p5238_p1 = pneg %p5237_p10 }
  0x24   : > { %p5245_p8 = pnand %p5244_p4, %p5238_p1 }
  0x26   : > { %5248 = shalt.err (!%p5245_p8)
}
  0x27   : > { %s5352_s20 = smov 256   ;;  %s5353_s26 = smov 16  }
  0x28   : > { %4688 = dma.hbm_to_vmem [thread:$0]  (!%p5447_p11), %s6234_s1, 32768, %s5440_s7, [#allocation6], %s5352_s20, %s5352_s20, %s5353_s26  }
  0x29   : > { %p29_p2 = scmp.eq.s32.totalorder %s28_s11, 0  ;;  %p38_p1 = scmp.ne.s32.totalorder %s5345_s23, %s5341_s22 }
  0x2a   : > { %p39_p4 = scmp.eq.s32.totalorder %s5349_s24, 0  ;;  %p4698_p6 = scmp.lt.s32.totalorder %s5349_s24, 2 }
  0x2b   : > { %s5483_s13 = scalar_select %p29_p2, %s5345_s23, %s31_s10  }
  0x2c   : > { %p40_p8 = por %p39_p4, %p38_p1  ;;  %p6247_p10 = scmp.eq.s32.totalorder %s5417_s25, 1 }
  0x2d   : > { %s226_s15 = sand.u32 1, %s5345_s23   ;;  %s4290_s16 = sshll.u32 %s5349_s24, 14 }
  0x2e   : > { %p5487_p12 = por %p6247_p10, %p38_p1  ;;  %s3984_s17 = sshll.u32 %s226_s15, 10 }
  0x2f   : > { %s5496_s19 = scalar_lea.hbm %s6233_s0, %s4290_s16  ;;  %s230_s7 = scalar_lea.vmem [#allocation2], %s3984_s17 }
  0x30   : > { %s238_s10 = sshll.u32 %s230_s7, 4  ;;  %p5498_p11 = pnand %p4698_p6, %p40_p8  ;;  %s5502_s10 = int_to_ptr.vmem [resolvable:$true] %s238_s10 }
  0x31   : > { %s5504_s20 = scalar_lea.sflag [#allocation3], %s226_s15  ;;  %s5249_s26 = scalar_lea.hbm %s5496_s19, 16384 }
  0x32   : > { %p5250_p13 = scmp.ne.s32.totalorder %s5496_s19, %s5249_s26  ;;  %p5251_p0 = pneg %p5498_p11 }
  0x33   : > { %s5254_s16 = scalar_lea.hbm %s6233_s0, 32768  ;;  %p5255_p7 = scmp.lt.u32.totalorder %s5496_s19, %s6233_s0 }
  0x34   : > { %p5252_p3 = pnand %p5251_p0, %p5250_p13  ;;  %p5256_p9 = scmp.lt.u32.totalorder %s5254_s16, %s5249_s26 }
  0x35   : > { %p5258_p1 = scmp.lt.u32.totalorder %s5249_s26, %s5496_s19 }
  0x36   : > { %p5253_p5 = pneg %p5252_p3  ;;  %p5257_p2 = por %p5256_p9, %p5255_p7 }
  0x38   : > { %p5259_p4 = por %p5258_p1, %p5257_p2 }
  0x3a   : > { %p5260_p6 = pnand %p5259_p4, %p5253_p5 }
  0x3c   : > { %5263 = shalt.err (!%p5260_p6)
}
  0x3d   : > { %s5264_s15 = scalar_lea.vmem %s5502_s10, 16384  ;;  %s5354_s18 = smov [#allocation2]  }
  0x3e   : > { %p5265_p8 = scmp.ne.s32.totalorder %s5502_s10, %s5264_s15  ;;  %s5269_s7 = sshll.u32 %s5354_s18, 4  ;;  %s5270_s7 = int_to_ptr.vmem [resolvable:$false] %s5269_s7 }
  0x3f   : > { %s5271_s30 = scalar_lea.vmem %s5270_s7, 32768  ;;  %p5272_p3 = scmp.lt.s32.totalorder %s5502_s10, %s5270_s7 }
  0x40   : > { %p5267_p10 = pnand %p5265_p8, %p5251_p0  ;;  %p5273_p7 = scmp.lt.s32.totalorder %s5271_s30, %s5264_s15 }
  0x42   : > { %p5268_p13 = pneg %p5267_p10  ;;  %p5274_p9 = por %p5273_p7, %p5272_p3 }
  0x44   : > { %p5275_p2 = pnand %p5274_p9, %p5268_p13 }
  0x46   : > { %5278 = shalt.err (!%p5275_p2)
}
  0x47   : > { %s5355_s26 = smov 1024   ;;  %s5356_s12 = smov 64  }
  0x48   : > { %4692 = dma.hbm_to_vmem [thread:$0]  (!%p5498_p11), %s5496_s19, 16384, %s5502_s10, %s5504_s20, %s5355_s26, %s5355_s26, %s5356_s12  }
  0x49   : > { %p6250_p0 = scmp.ne.s32.totalorder %s6245_s29, 0 }
  0x4a   : > { %s5535_s16 = sand.u32 (!%p6250_p0), 1, %s5341_s22   ;;  %p6251_p5 = scmp.ne.s32.totalorder (!%p6250_p0), %s6243_s27, 0 }
  0x4b   : > { %250 = sbr.rel (%p6250_p0) target bundleno = 1280 (0x500), region = 40  ;;  %s3989_s17 = sshll.u32 (!%p6250_p0), %s5535_s16, 10 }
  0x4c   : > { %s253_s8 = scalar_lea.sflag (!%p6250_p0), [#allocation3], %s5535_s16  ;;  %s5539_s15 = scalar_lea.vmem (!%p6250_p0), [#allocation2], %s3989_s17 }
  0x52   : > { %5324 = dma.done.wait (%p6251_p5), %s253_s8, 16384  }
  0x53   : > { %5326 = vsyncadd (%p6251_p5), %s253_s8, 4294950912  ;;  %p6252_p11 = scmp.eq.s32.totalorder %s5417_s25, 0 }
  0x55   : > { %5328 = dma.done.wait (%p6252_p11), [#allocation6], 32768   ;;  %p6253_p1 = pmov %p6252_p11 }
  0x56   : > { %v4741_v0 = vld [vmem:[#allocation5 + $0x4] ss:$16 sps:$4 sm:$0xff]   ;;  %v4743_v1 = vld [vmem:[#allocation5 + $0xc] ss:$16 sps:$4 sm:$0xff]   ;;  %v4745_v2 = vld [vmem:[#allocation5] ss:$16 sps:$4 sm:$0xff]  }
  0x57   : > { %5330 = vsyncadd (%p6253_p1), [#allocation6], 4294934528  ;;  %2053 = vmatprep.subr.bf16.mxu0 %v4741_v0  ;;  %v4746_v3 = vld [vmem:[#allocation5 + $0x8] ss:$16 sps:$4 sm:$0xff]   ;;  %2505 = vmatprep.subr.bf16.mxu1 %v4743_v1  ;;  %v4747_v4 = vld [vmem:[#allocation5 + $0x24] ss:$16 sps:$4 sm:$0xff]  }
  0x58   : > { %2054 = vmatpush1.bf16.msra.mxu0 %v4745_v2  ;;  %2506 = vmatpush1.bf16.msra.mxu1 %v4746_v3  ;;  %v4749_v5 = vld [vmem:[#allocation5 + $0x2c] ss:$16 sps:$4 sm:$0xff]   ;;  %v4751_v6 = vld [vmem:[#allocation5 + $0x20] ss:$16 sps:$4 sm:$0xff]   ;;  %v4752_v7 = vld [vmem:[#allocation5 + $0x28] ss:$16 sps:$4 sm:$0xff]  }
  0x59   : > { %2055 = vmatprep.subr.bf16.mxu0 %v4747_v4  ;;  %2507 = vmatprep.subr.bf16.mxu1 %v4749_v5  ;;  %v4753_v8 = vld [vmem:[#allocation5 + $0x44] ss:$16 sps:$4 sm:$0xff]   ;;  %v4755_v9 = vld [vmem:[#allocation5 + $0x4c] ss:$16 sps:$4 sm:$0xff]   ;;  %v4757_v10 = vld [vmem:[#allocation5 + $0x40] ss:$16 sps:$4 sm:$0xff]  }
  0x5a   : > { %v4758_v11 = vld [vmem:[#allocation5 + $0x48] ss:$16 sps:$4 sm:$0xff]   ;;  %v4759_v12 = vld [vmem:[#allocation5 + $0x64] ss:$16 sps:$4 sm:$0xff]   ;;  %v4761_v13 = vld [vmem:[#allocation5 + $0x6c] ss:$16 sps:$4 sm:$0xff]  }
  0x5b   : > { %v4763_v14 = vld [vmem:[#allocation5 + $0x60] ss:$16 sps:$4 sm:$0xff]   ;;  %v4764_v15 = vld [vmem:[#allocation5 + $0x68] ss:$16 sps:$4 sm:$0xff]   ;;  %v4765_v16 = vld [vmem:[#allocation5 + $0x84] ss:$16 sps:$4 sm:$0xff]  }
  0x5c   : > { %2056 = vmatpush1.bf16.msra.mxu0 %v4751_v6  ;;  %2508 = vmatpush1.bf16.msra.mxu1 %v4752_v7  ;;  %v4767_v17 = vld [vmem:[#allocation5 + $0x8c] ss:$16 sps:$4 sm:$0xff]   ;;  %v4769_v18 = vld [vmem:[#allocation5 + $0x80] ss:$16 sps:$4 sm:$0xff]   ;;  %v4770_v19 = vld [vmem:[#allocation5 + $0x88] ss:$16 sps:$4 sm:$0xff]  }
  0x5d   : > { %2057 = vmatprep.subr.bf16.mxu0 %v4753_v8  ;;  %2509 = vmatprep.subr.bf16.mxu1 %v4755_v9  ;;  %v4771_v20 = vld [vmem:[#allocation5 + $0xa4] ss:$16 sps:$4 sm:$0xff]   ;;  %v4773_v21 = vld [vmem:[#allocation5 + $0xac] ss:$16 sps:$4 sm:$0xff]   ;;  %v4775_v22 = vld [vmem:[#allocation5 + $0xa0] ss:$16 sps:$4 sm:$0xff]  }
  0x5e   : > { %v4776_v23 = vld [vmem:[#allocation5 + $0xa8] ss:$16 sps:$4 sm:$0xff]   ;;  %v4777_v24 = vld [vmem:[#allocation5 + $0xc4] ss:$16 sps:$4 sm:$0xff]   ;;  %v4779_v25 = vld [vmem:[#allocation5 + $0xcc] ss:$16 sps:$4 sm:$0xff]  }
  0x5f   : > { %v4781_v26 = vld [vmem:[#allocation5 + $0xc0] ss:$16 sps:$4 sm:$0xff]   ;;  %v4782_v27 = vld [vmem:[#allocation5 + $0xc8] ss:$16 sps:$4 sm:$0xff]   ;;  %v4783_v28 = vld [vmem:[#allocation5 + $0xe4] ss:$16 sps:$4 sm:$0xff]  }
  0x60   : > { %2058 = vmatpush1.bf16.msra.mxu0 %v4757_v10  ;;  %2510 = vmatpush1.bf16.msra.mxu1 %v4758_v11  ;;  %v4785_v29 = vld [vmem:[#allocation5 + $0xec] ss:$16 sps:$4 sm:$0xff]   ;;  %v4787_v30 = vld [vmem:[#allocation5 + $0xe0] ss:$16 sps:$4 sm:$0xff]   ;;  %v4788_v31 = vld [vmem:[#allocation5 + $0xe8] ss:$16 sps:$4 sm:$0xff]  }
  0x61   : > { %2059 = vmatprep.subr.bf16.mxu0 %v4759_v12  ;;  %2511 = vmatprep.subr.bf16.mxu1 %v4761_v13  ;;  %v4789_v32 = vld [vmem:[#allocation5 + $0x104] ss:$16 sps:$4 sm:$0xff]   ;;  %v4791_v33 = vld [vmem:[#allocation5 + $0x10c] ss:$16 sps:$4 sm:$0xff]   ;;  %v4793_v34 = vld [vmem:[#allocation5 + $0x100] ss:$16 sps:$4 sm:$0xff]  }
  0x62   : > { %v4794_v35 = vld [vmem:[#allocation5 + $0x108] ss:$16 sps:$4 sm:$0xff]   ;;  %v4795_v36 = vld [vmem:[#allocation5 + $0x124] ss:$16 sps:$4 sm:$0xff]   ;;  %v4797_v37 = vld [vmem:[#allocation5 + $0x12c] ss:$16 sps:$4 sm:$0xff]  }
  0x63   : > { %v4799_v38 = vld [vmem:[#allocation5 + $0x120] ss:$16 sps:$4 sm:$0xff]   ;;  %v4800_v39 = vld [vmem:[#allocation5 + $0x128] ss:$16 sps:$4 sm:$0xff]   ;;  %v4801_v40 = vld [vmem:[#allocation5 + $0x144] ss:$16 sps:$4 sm:$0xff]  }
  0x64   : > { %2060 = vmatpush1.bf16.msra.mxu0 %v4763_v14  ;;  %2512 = vmatpush1.bf16.msra.mxu1 %v4764_v15  ;;  %v4803_v41 = vld [vmem:[#allocation5 + $0x14c] ss:$16 sps:$4 sm:$0xff]   ;;  %v4805_v42 = vld [vmem:[#allocation5 + $0x140] ss:$16 sps:$4 sm:$0xff]   ;;  %v4806_v43 = vld [vmem:[#allocation5 + $0x148] ss:$16 sps:$4 sm:$0xff]  }
  0x65   : > { %2061 = vmatprep.subr.bf16.mxu0 %v4765_v16  ;;  %2513 = vmatprep.subr.bf16.mxu1 %v4767_v17  ;;  %v4807_v44 = vld [vmem:[#allocation5 + $0x164] ss:$16 sps:$4 sm:$0xff]   ;;  %v4809_v45 = vld [vmem:[#allocation5 + $0x16c] ss:$16 sps:$4 sm:$0xff]   ;;  %v4811_v47 = vld [vmem:[#allocation5 + $0x160] ss:$16 sps:$4 sm:$0xff]  }
  0x66   : > { %v304_v46 = vld [vmem:[%s5539_s15 + $0x8] sm:$0xff]  ;;  %v4813_v50 = vld [vmem:[#allocation5 + $0x184] ss:$16 sps:$4 sm:$0xff]   ;;  %v4817_v53 = vld [vmem:[#allocation5 + $0x180] ss:$16 sps:$4 sm:$0xff]   ;;  %s3991_s27 = sshll.u32 %s5535_s16, 9 }
  0x67   : > { %v4812_v48 = vld [vmem:[#allocation5 + $0x168] ss:$16 sps:$4 sm:$0xff]   ;;  %v4815_v52 = vld [vmem:[#allocation5 + $0x18c] ss:$16 sps:$4 sm:$0xff]   ;;  %v4819_v55 = vld [vmem:[#allocation5 + $0x1a4] ss:$16 sps:$4 sm:$0xff]  }
  0x68   : > { %2062 = vmatpush1.bf16.msra.mxu0 %v4769_v18  ;;  %2514 = vmatpush1.bf16.msra.mxu1 %v4770_v19  ;;  %v312_v49 = vld [vmem:[%s5539_s15 + $0x48] sm:$0xff]  ;;  %v4823_v57 = vld [vmem:[#allocation5 + $0x1a0] ss:$16 sps:$4 sm:$0xff]   ;;  %v4825_v59 = vld [vmem:[#allocation5 + $0x1c4] ss:$16 sps:$4 sm:$0xff]   ;;  %s5793_s29 = scalar_lea.vmem [#allocation7], %s3991_s27 }
  0x69   : > { %2063 = vmatprep.subr.bf16.mxu0 %v4771_v20  ;;  %2515 = vmatprep.subr.bf16.mxu1 %v4773_v21  ;;  %v432_v51 = vpack.c.bf16 %v312_v49, %v304_v46  ;;  %v4818_v54 = vld [vmem:[#allocation5 + $0x188] ss:$16 sps:$4 sm:$0xff]   ;;  %v4821_v56 = vld [vmem:[#allocation5 + $0x1ac] ss:$16 sps:$4 sm:$0xff]   ;;  %v4829_v61 = vld [vmem:[#allocation5 + $0x1c0] ss:$16 sps:$4 sm:$0xff]  }
  0x6a   : > { %v4824_v58 = vld [vmem:[#allocation5 + $0x1a8] ss:$16 sps:$4 sm:$0xff]   ;;  %v4827_v60 = vld [vmem:[#allocation5 + $0x1cc] ss:$16 sps:$4 sm:$0xff]   ;;  %v4831_v63 = vld [vmem:[#allocation5 + $0x1e4] ss:$16 sps:$4 sm:$0xff]  }
  0x6b   : > { %2085 = vmatprep.mubr.bf16.mxu0 %v432_v51  ;;  %2537 = vmatprep.mubr.bf16.mxu1 %v432_v51  ;;  %v4830_v62 = vld [vmem:[#allocation5 + $0x1c8] ss:$16 sps:$4 sm:$0xff]   ;;  %v4833_v0 = vld [vmem:[#allocation5 + $0x1ec] ss:$16 sps:$4 sm:$0xff]   ;;  %v4835_v1 = vld [vmem:[#allocation5 + $0x1e0] ss:$16 sps:$4 sm:$0xff]  }
  0x6c   : > { %2064 = vmatpush1.bf16.msra.mxu0 %v4775_v22  ;;  %2516 = vmatpush1.bf16.msra.mxu1 %v4776_v23  ;;  %v4836_v2 = vld [vmem:[#allocation5 + $0x1e8] ss:$16 sps:$4 sm:$0xff]   ;;  %v303_v3 = vld [vmem:[%s5539_s15] sm:$0xff]  ;;  %v4842_v6 = vld [vmem:[#allocation5 + $0x20c] ss:$16 sps:$4 sm:$0xff]   ;;  %vm3574_vm0 = vcmask 31744  }
  0x6d   : > { %2065 = vmatprep.subr.bf16.mxu0 %v4777_v24  ;;  %2517 = vmatprep.subr.bf16.mxu1 %v4779_v25  ;;  %v311_v4 = vld [vmem:[%s5539_s15 + $0x40] sm:$0xff]  ;;  %v4840_v9 = vld [vmem:[#allocation5 + $0x208] ss:$16 sps:$4 sm:$0xff]   ;;  %v4848_v13 = vld [vmem:[#allocation5 + $0x22c] ss:$16 sps:$4 sm:$0xff]   ;;  %s5357_s11 = smov 4  }
  0x6e   : > { %v4839_v5 = vld [vmem:[#allocation5 + $0x204] ss:$16 sps:$4 sm:$0xff]   ;;  %v4837_v7 = vld [vmem:[#allocation5 + $0x200] ss:$16 sps:$4 sm:$0xff]   ;;  %v431_v8 = vpack.c.bf16 %v311_v4, %v303_v3  ;;  %v320_v10 = vld [vmem:[%s5539_s15 + $0x88] sm:$0xff]  ;;  %s4292_s20 = sshll.u32 %s5417_s25, 13 }
  0x6f   : > { %v328_v11 = vld [vmem:[%s5539_s15 + $0xc8] sm:$0xff]  ;;  %v4845_v12 = vld [vmem:[#allocation5 + $0x224] ss:$16 sps:$4 sm:$0xff]   ;;  %v4843_v14 = vld [vmem:[#allocation5 + $0x220] ss:$16 sps:$4 sm:$0xff]   ;;  %s3872_s18 = sshll.u32 %s5793_s29, 4  ;;  %s6109_s26 = scalar_lea.hbm %s6239_s6, %s4292_s20  ;;  %s6112_s18 = int_to_ptr.vmem [resolvable:$true] %s3872_s18 }
  0x70   : > { %2066 = vmatpush1.bf16.msra.mxu0 %v4781_v26  ;;  %2518 = vmatpush1.bf16.msra.mxu1 %v4782_v27  ;;  %v440_v15 = vpack.c.bf16 %v328_v11, %v320_v10  ;;  %v4846_v16 = vld [vmem:[#allocation5 + $0x228] ss:$16 sps:$4 sm:$0xff]   ;;  %v319_v17 = vld [vmem:[%s5539_s15 + $0x80] sm:$0xff]  ;;  %v4854_v20 = vld [vmem:[#allocation5 + $0x24c] ss:$16 sps:$4 sm:$0xff]   ;;  %s3854_s12 = scalar_lea.sflag [#allocation4], %s5535_s16 }
  0x71   : > { %2067 = vmatprep.subr.bf16.mxu0 %v4783_v28  ;;  %2519 = vmatprep.subr.bf16.mxu1 %v4785_v29  ;;  %v327_v18 = vld [vmem:[%s5539_s15 + $0xc0] sm:$0xff]  ;;  %v4852_v22 = vld [vmem:[#allocation5 + $0x248] ss:$16 sps:$4 sm:$0xff]   ;;  %v4860_v27 = vld [vmem:[#allocation5 + $0x26c] ss:$16 sps:$4 sm:$0xff]   ;;  %s5279_s17 = scalar_lea.vmem %s6112_s18, 8192 }
  0x72   : > { %v4851_v19 = vld [vmem:[#allocation5 + $0x244] ss:$16 sps:$4 sm:$0xff]   ;;  %v4849_v21 = vld [vmem:[#allocation5 + $0x240] ss:$16 sps:$4 sm:$0xff]   ;;  %v439_v23 = vpack.c.bf16 %v327_v18, %v319_v17  ;;  %v336_v24 = vld [vmem:[%s5539_s15 + $0x108] sm:$0xff]  ;;  %p5280_p4 = scmp.ne.s32.totalorder %s6112_s18, %s5279_s17 }
  0x73   : > { %v344_v25 = vld [vmem:[%s5539_s15 + $0x148] sm:$0xff]  ;;  %v4857_v26 = vld [vmem:[#allocation5 + $0x264] ss:$16 sps:$4 sm:$0xff]   ;;  %v4855_v29 = vld [vmem:[#allocation5 + $0x260] ss:$16 sps:$4 sm:$0xff]  }
  0x74   : > { %2068 = vmatpush1.bf16.msra.mxu0 %v4787_v30  ;;  %2520 = vmatpush1.bf16.msra.mxu1 %v4788_v31  ;;  %v448_v28 = vpack.c.bf16 %v344_v25, %v336_v24  ;;  %v4858_v30 = vld [vmem:[#allocation5 + $0x268] ss:$16 sps:$4 sm:$0xff]   ;;  %v335_v31 = vld [vmem:[%s5539_s15 + $0x100] sm:$0xff]  ;;  %p5281_p6 = pnand %p5280_p4, %p5487_p12 }
  0x75   : > { %2069 = vmatprep.subr.bf16.mxu0 %v4789_v32  ;;  %2521 = vmatprep.subr.bf16.mxu1 %v4791_v33  ;;  %v343_v32 = vld [vmem:[%s5539_s15 + $0x140] sm:$0xff]  ;;  %v368_v51 = vld [vmem:[%s5539_s15 + $0x208] sm:$0xff] }
  0x76   : > { %v4863_v33 = vld [vmem:[#allocation5 + $0x284] ss:$16 sps:$4 sm:$0xff]   ;;  %v4873_v49 = vld [vmem:[#allocation5 + $0x2c0] ss:$16 sps:$4 sm:$0xff]   ;;  %v4888_v3 = vld [vmem:[#allocation5 + $0x308] ss:$16 sps:$4 sm:$0xff]   ;;  %p5282_p8 = pneg %p5281_p6 }
  0x77   : > { %v359_v46 = vld [vmem:[%s5539_s15 + $0x1c0] sm:$0xff]  ;;  %v408_v17 = vld [vmem:[%s5539_s15 + $0x348] sm:$0xff] }
  0x78   : > { %2070 = vmatpush1.bf16.msra.mxu0 %v4793_v34  ;;  %2522 = vmatpush1.bf16.msra.mxu1 %v4794_v35  ;;  %v4866_v34 = vld [vmem:[#allocation5 + $0x28c] ss:$16 sps:$4 sm:$0xff]   ;;  %v4861_v35 = vld [vmem:[#allocation5 + $0x280] ss:$16 sps:$4 sm:$0xff]   ;;  %v4893_v4 = vld [vmem:[#allocation5 + $0x324] ss:$16 sps:$4 sm:$0xff]  }
  0x79   : > { %2071 = vmatprep.subr.bf16.mxu0 %v4795_v36  ;;  %2523 = vmatprep.subr.bf16.mxu1 %v4797_v37  ;;  %v4864_v36 = vld [vmem:[#allocation5 + $0x288] ss:$16 sps:$4 sm:$0xff]   ;;  %v447_v37 = vpack.c.bf16 %v343_v32, %v335_v31  ;;  %v391_v10 = vld [vmem:[%s5539_s15 + $0x2c0] sm:$0xff] }
  0x7a   : > { %v4899_v11 = vld [vmem:[#allocation5 + $0x344] ss:$16 sps:$4 sm:$0xff]   ;;  %v424_v31 = vld [vmem:[%s5539_s15 + $0x3c8] sm:$0xff] }
  0x7b   : > { %v4905_v18 = vld [vmem:[#allocation5 + $0x364] ss:$16 sps:$4 sm:$0xff]  }
  0x7c   : > { %2072 = vmatpush1.bf16.msra.mxu0 %v4799_v38  ;;  %2524 = vmatpush1.bf16.msra.mxu1 %v4800_v39  ;;  %v352_v38 = vld [vmem:[%s5539_s15 + $0x188] sm:$0xff]  ;;  %v407_v24 = vld [vmem:[%s5539_s15 + $0x340] sm:$0xff] }
  0x7d   : > { %2073 = vmatprep.subr.bf16.mxu0 %v4801_v40  ;;  %2525 = vmatprep.subr.bf16.mxu1 %v4803_v41  ;;  %v360_v39 = vld [vmem:[%s5539_s15 + $0x1c8] sm:$0xff]  ;;  %v4869_v40 = vld [vmem:[#allocation5 + $0x2a4] ss:$16 sps:$4 sm:$0xff]  }
  0x7e   : > { %v4872_v41 = vld [vmem:[#allocation5 + $0x2ac] ss:$16 sps:$4 sm:$0xff]   ;;  %v4911_v25 = vld [vmem:[#allocation5 + $0x384] ss:$16 sps:$4 sm:$0xff]  }
  0x7f   : > { %v4917_v32 = vld [vmem:[#allocation5 + $0x3a4] ss:$16 sps:$4 sm:$0xff]  }
  0x80   : > { %2074 = vmatpush1.bf16.msra.mxu0 %v4805_v42  ;;  %2526 = vmatpush1.bf16.msra.mxu1 %v4806_v43  ;;  %v4867_v42 = vld [vmem:[#allocation5 + $0x2a0] ss:$16 sps:$4 sm:$0xff]   ;;  %v456_v43 = vpack.c.bf16 %v360_v39, %v352_v38  ;;  %v4923_v39 = vld [vmem:[#allocation5 + $0x3c4] ss:$16 sps:$4 sm:$0xff]  }
  0x81   : > { %2075 = vmatprep.subr.bf16.mxu0 %v4807_v44  ;;  %2527 = vmatprep.subr.bf16.mxu1 %v4809_v45  ;;  %v4870_v44 = vld [vmem:[#allocation5 + $0x2a8] ss:$16 sps:$4 sm:$0xff]   ;;  %v351_v45 = vld [vmem:[%s5539_s15 + $0x180] sm:$0xff] }
  0x82   : > { %v423_v38 = vld [vmem:[%s5539_s15 + $0x3c0] sm:$0xff] }
  0x84   : > { %2076 = vmatpush1.bf16.msra.mxu0 %v4811_v47  ;;  %2528 = vmatpush1.bf16.msra.mxu1 %v4812_v48  ;;  %v4875_v47 = vld [vmem:[#allocation5 + $0x2c4] ss:$16 sps:$4 sm:$0xff]   ;;  %v4878_v48 = vld [vmem:[#allocation5 + $0x2cc] ss:$16 sps:$4 sm:$0xff]  }
  0x85   : > { %2077 = vmatprep.subr.bf16.mxu0 %v4813_v50  ;;  %2529 = vmatprep.subr.bf16.mxu1 %v4815_v52  ;;  %v455_v50 = vpack.c.bf16 %v359_v46, %v351_v45  ;;  %v376_v52 = vld [vmem:[%s5539_s15 + $0x248] sm:$0xff]  ;;  %v314_v45 = vld [vmem:[%s5539_s15 + $0x58] sm:$0xff]  ;;  %v4929_v46 = vld [vmem:[#allocation5 + $0x3e4] ss:$16 sps:$4 sm:$0xff]  }
  0x88   : > { %2078 = vmatpush1.bf16.msra.mxu0 %v4817_v53  ;;  %2530 = vmatpush1.bf16.msra.mxu1 %v4818_v54  ;;  %v4876_v53 = vld [vmem:[#allocation5 + $0x2c8] ss:$16 sps:$4 sm:$0xff]   ;;  %v4881_v54 = vld [vmem:[#allocation5 + $0x2e4] ss:$16 sps:$4 sm:$0xff]  }
  0x89   : > { %2079 = vmatprep.subr.bf16.mxu0 %v4819_v55  ;;  %2531 = vmatprep.subr.bf16.mxu1 %v4821_v56  ;;  %v4884_v55 = vld [vmem:[#allocation5 + $0x2ec] ss:$16 sps:$4 sm:$0xff]   ;;  %v4879_v56 = vld [vmem:[#allocation5 + $0x2e0] ss:$16 sps:$4 sm:$0xff]  }
  0x8c   : > { %2080 = vmatpush1.bf16.msra.mxu0 %v4823_v57  ;;  %2532 = vmatpush1.bf16.msra.mxu1 %v4824_v58  ;;  %v4882_v57 = vld [vmem:[#allocation5 + $0x2e8] ss:$16 sps:$4 sm:$0xff]   ;;  %v464_v58 = vpack.c.bf16 %v376_v52, %v368_v51  ;;  %v305_v51 = vld [vmem:[%s5539_s15 + $0x10] sm:$0xff] }
  0x8d   : > { %2081 = vmatprep.subr.bf16.mxu0 %v4825_v59  ;;  %2533 = vmatprep.subr.bf16.mxu1 %v4827_v60  ;;  %v367_v59 = vld [vmem:[%s5539_s15 + $0x200] sm:$0xff]  ;;  %v313_v52 = vld [vmem:[%s5539_s15 + $0x50] sm:$0xff] }
  0x8e   : > { %v375_v60 = vld [vmem:[%s5539_s15 + $0x240] sm:$0xff] }
  0x90   : > { %2082 = vmatpush1.bf16.msra.mxu0 %v4829_v61  ;;  %2534 = vmatpush1.bf16.msra.mxu1 %v4830_v62  ;;  %v4887_v61 = vld [vmem:[#allocation5 + $0x304] ss:$16 sps:$4 sm:$0xff]   ;;  %v4890_v62 = vld [vmem:[#allocation5 + $0x30c] ss:$16 sps:$4 sm:$0xff]  }
  0x91   : > { %2083 = vmatprep.subr.bf16.mxu0 %v4831_v63  ;;  %2535 = vmatprep.subr.bf16.mxu1 %v4833_v0  ;;  %v463_v63 = vpack.c.bf16 %v375_v60, %v367_v59  ;;  %v384_v0 = vld [vmem:[%s5539_s15 + $0x288] sm:$0xff]  ;;  %v4941_v60 = vld [vmem:[#allocation5 + $0x424] ss:$16 sps:$4 sm:$0xff]  }
  0x92   : > { %v4936_v59 = vld [vmem:[#allocation5 + $0x408] ss:$16 sps:$4 sm:$0xff]  }
  0x94   : > { %2084 = vmatpush1.bf16.msra.mxu0 %v4835_v1  ;;  %2536 = vmatpush1.bf16.msra.mxu1 %v4836_v2  ;;  %v392_v1 = vld [vmem:[%s5539_s15 + $0x2c8] sm:$0xff]  ;;  %v4885_v2 = vld [vmem:[#allocation5 + $0x300] ss:$16 sps:$4 sm:$0xff]  }
  0x95   : > { %2166 = vmatprep.subr.bf16.mxu0 %v4839_v5  ;;  %2618 = vmatprep.subr.bf16.mxu1 %v4842_v6  ;;  %v4896_v5 = vld [vmem:[#allocation5 + $0x32c] ss:$16 sps:$4 sm:$0xff]   ;;  %v4891_v6 = vld [vmem:[#allocation5 + $0x320] ss:$16 sps:$4 sm:$0xff]  }
  0x97   : > { %2086 = vmatmul.mubr.bf16.vlgmr.msra.gmra.mrb[0].mxu0 %v431_v8  ;;  %2538 = vmatmul.mubr.bf16.vlgmr.msra.gmra.mrb[0].mxu1 %v431_v8  ;;  %v472_v8 = vpack.c.bf16 %v392_v1, %v384_v0  ;;  %v321_v1 = vld [vmem:[%s5539_s15 + $0x90] sm:$0xff] }
  0x98   : > { %2167 = vmatpush1.bf16.msra.mxu0 %v4837_v7  ;;  %2619 = vmatpush1.bf16.msra.mxu1 %v4840_v9  ;;  %v4894_v7 = vld [vmem:[#allocation5 + $0x328] ss:$16 sps:$4 sm:$0xff]   ;;  %v383_v9 = vld [vmem:[%s5539_s15 + $0x280] sm:$0xff] }
  0x99   : > { %2168 = vmatprep.subr.bf16.mxu0 %v4845_v12  ;;  %2620 = vmatprep.subr.bf16.mxu1 %v4848_v13  ;;  %v4902_v12 = vld [vmem:[#allocation5 + $0x34c] ss:$16 sps:$4 sm:$0xff]   ;;  %v4897_v13 = vld [vmem:[#allocation5 + $0x340] ss:$16 sps:$4 sm:$0xff]  }
  0x9a   : > { %2095 = vmatprep.mubr.bf16.mxu0 %v440_v15  ;;  %2547 = vmatprep.mubr.bf16.mxu1 %v440_v15  ;;  %v4900_v15 = vld [vmem:[#allocation5 + $0x348] ss:$16 sps:$4 sm:$0xff]  }
  0x9c   : > { %2169 = vmatpush1.bf16.msra.mxu0 %v4843_v14  ;;  %2621 = vmatpush1.bf16.msra.mxu1 %v4846_v16  ;;  %v471_v14 = vpack.c.bf16 %v391_v10, %v383_v9  ;;  %v400_v16 = vld [vmem:[%s5539_s15 + $0x308] sm:$0xff]  ;;  %v4953_v10 = vld [vmem:[#allocation5 + $0x464] ss:$16 sps:$4 sm:$0xff]  }
  0x9d   : > { %2170 = vmatprep.subr.bf16.mxu0 %v4851_v19  ;;  %2622 = vmatprep.subr.bf16.mxu1 %v4854_v20  ;;  %v4908_v19 = vld [vmem:[#allocation5 + $0x36c] ss:$16 sps:$4 sm:$0xff]   ;;  %v4903_v20 = vld [vmem:[#allocation5 + $0x360] ss:$16 sps:$4 sm:$0xff]   ;;  %v4948_v9 = vld [vmem:[#allocation5 + $0x448] ss:$16 sps:$4 sm:$0xff]  }
  0x9f   : > { %2096 = vmatmul.mubr.bf16.gmra.mrb[4].mxu0 %v439_v23  ;;  %2548 = vmatmul.mubr.bf16.gmra.mrb[4].mxu1 %v439_v23  ;;  %v399_v23 = vld [vmem:[%s5539_s15 + $0x300] sm:$0xff] }
  0xa0   : > { %2171 = vmatpush1.bf16.msra.mxu0 %v4849_v21  ;;  %2623 = vmatpush1.bf16.msra.mxu1 %v4852_v22  ;;  %v480_v21 = vpack.c.bf16 %v408_v17, %v400_v16  ;;  %v4906_v22 = vld [vmem:[#allocation5 + $0x368] ss:$16 sps:$4 sm:$0xff]   ;;  %v345_v16 = vld [vmem:[%s5539_s15 + $0x150] sm:$0xff] }
  0xa1   : > { %2172 = vmatprep.subr.bf16.mxu0 %v4857_v26  ;;  %2624 = vmatprep.subr.bf16.mxu1 %v4860_v27  ;;  %v4914_v26 = vld [vmem:[#allocation5 + $0x38c] ss:$16 sps:$4 sm:$0xff]   ;;  %v4909_v27 = vld [vmem:[#allocation5 + $0x380] ss:$16 sps:$4 sm:$0xff]   ;;  %v4959_v17 = vld [vmem:[#allocation5 + $0x484] ss:$16 sps:$4 sm:$0xff]  }
  0xa2   : > { %2105 = vmatprep.mubr.bf16.mxu0 %v448_v28  ;;  %2557 = vmatprep.mubr.bf16.mxu1 %v448_v28  ;;  %v4912_v28 = vld [vmem:[#allocation5 + $0x388] ss:$16 sps:$4 sm:$0xff]  }
  0xa4   : > { %2173 = vmatpush1.bf16.msra.mxu0 %v4855_v29  ;;  %2625 = vmatpush1.bf16.msra.mxu1 %v4858_v30  ;;  %v479_v29 = vpack.c.bf16 %v407_v24, %v399_v23  ;;  %v416_v30 = vld [vmem:[%s5539_s15 + $0x388] sm:$0xff]  ;;  %v362_v23 = vld [vmem:[%s5539_s15 + $0x1d8] sm:$0xff]  ;;  %v4965_v24 = vld [vmem:[#allocation5 + $0x4a4] ss:$16 sps:$4 sm:$0xff]  }
  0xa5   : > { %2174 = vmatprep.subr.bf16.mxu0 %v4863_v33  ;;  %2626 = vmatprep.subr.bf16.mxu1 %v4866_v34  ;;  %v4920_v33 = vld [vmem:[#allocation5 + $0x3ac] ss:$16 sps:$4 sm:$0xff]   ;;  %v488_v34 = vpack.c.bf16 %v424_v31, %v416_v30  ;;  %v361_v30 = vld [vmem:[%s5539_s15 + $0x1d0] sm:$0xff] }
  0xa6   : > { %v4971_v31 = vld [vmem:[#allocation5 + $0x4c4] ss:$16 sps:$4 sm:$0xff]  }
  0xa7   : > { %2106 = vmatmul.mubr.bf16.gmra.mrb[8].mxu0 %v447_v37  ;;  %2558 = vmatmul.mubr.bf16.gmra.mrb[8].mxu1 %v447_v37  ;;  %v415_v37 = vld [vmem:[%s5539_s15 + $0x380] sm:$0xff] }
  0xa8   : > { %2175 = vmatpush1.bf16.msra.mxu0 %v4861_v35  ;;  %2627 = vmatpush1.bf16.msra.mxu1 %v4864_v36  ;;  %v4915_v35 = vld [vmem:[#allocation5 + $0x3a0] ss:$16 sps:$4 sm:$0xff]   ;;  %v4918_v36 = vld [vmem:[#allocation5 + $0x3a8] ss:$16 sps:$4 sm:$0xff]  }
  0xa9   : > { %2176 = vmatprep.subr.bf16.mxu0 %v4869_v40  ;;  %2628 = vmatprep.subr.bf16.mxu1 %v4872_v41  ;;  %v4926_v40 = vld [vmem:[#allocation5 + $0x3cc] ss:$16 sps:$4 sm:$0xff]   ;;  %v4921_v41 = vld [vmem:[#allocation5 + $0x3c0] ss:$16 sps:$4 sm:$0xff]  }
  0xaa   : > { %2115 = vmatprep.mubr.bf16.mxu0 %v456_v43  ;;  %2567 = vmatprep.mubr.bf16.mxu1 %v456_v43  ;;  %v487_v43 = vpack.c.bf16 %v423_v38, %v415_v37  ;;  %v378_v37 = vld [vmem:[%s5539_s15 + $0x258] sm:$0xff]  ;;  %v4977_v38 = vld [vmem:[#allocation5 + $0x4e4] ss:$16 sps:$4 sm:$0xff]  }
  0xac   : > { %2177 = vmatpush1.bf16.msra.mxu0 %v4867_v42  ;;  %2629 = vmatpush1.bf16.msra.mxu1 %v4870_v44  ;;  %v4924_v42 = vld [vmem:[#allocation5 + $0x3c8] ss:$16 sps:$4 sm:$0xff]  }
  0xad   : > { %2178 = vmatprep.subr.bf16.mxu0 %v4875_v47  ;;  %2630 = vmatprep.subr.bf16.mxu1 %v4878_v48  ;;  %v306_v44 = vld [vmem:[%s5539_s15 + $0x18] sm:$0xff]  ;;  %v4927_v48 = vld [vmem:[#allocation5 + $0x3e0] ss:$16 sps:$4 sm:$0xff]  }
  0xae   : > { %v4932_v47 = vld [vmem:[#allocation5 + $0x3ec] ss:$16 sps:$4 sm:$0xff]  }
  0xaf   : > { %2116 = vmatmul.mubr.bf16.gmra.mrb[12].mxu0 %v455_v50  ;;  %2568 = vmatmul.mubr.bf16.gmra.mrb[12].mxu1 %v455_v50  ;;  %v4930_v50 = vld [vmem:[#allocation5 + $0x3e8] ss:$16 sps:$4 sm:$0xff]  }
  0xb0   : > { %2179 = vmatpush1.bf16.msra.mxu0 %v4873_v49  ;;  %2631 = vmatpush1.bf16.msra.mxu1 %v4876_v53  ;;  %v434_v49 = vpack.c.bf16 %v314_v45, %v306_v44  ;;  %v4935_v53 = vld [vmem:[#allocation5 + $0x404] ss:$16 sps:$4 sm:$0xff]  }
  0xb1   : > { %2180 = vmatprep.subr.bf16.mxu0 %v4881_v54  ;;  %2632 = vmatprep.subr.bf16.mxu1 %v4884_v55  ;;  %v4938_v54 = vld [vmem:[#allocation5 + $0x40c] ss:$16 sps:$4 sm:$0xff]   ;;  %v4933_v55 = vld [vmem:[#allocation5 + $0x400] ss:$16 sps:$4 sm:$0xff]   ;;  %v4983_v45 = vld [vmem:[#allocation5 + $0x504] ss:$16 sps:$4 sm:$0xff]  }
  0xb2   : > { %2125 = vmatprep.mubr.bf16.mxu0 %v464_v58  ;;  %2577 = vmatprep.mubr.bf16.mxu1 %v464_v58  ;;  %v330_v58 = vld [vmem:[%s5539_s15 + $0xd8] sm:$0xff]  ;;  %v377_v44 = vld [vmem:[%s5539_s15 + $0x250] sm:$0xff] }
  0xb4   : > { %2181 = vmatpush1.bf16.msra.mxu0 %v4879_v56  ;;  %2633 = vmatpush1.bf16.msra.mxu1 %v4882_v57  ;;  %v433_v56 = vpack.c.bf16 %v313_v52, %v305_v51  ;;  %v322_v57 = vld [vmem:[%s5539_s15 + $0x98] sm:$0xff]  ;;  %v4989_v52 = vld [vmem:[#allocation5 + $0x524] ss:$16 sps:$4 sm:$0xff]  }
  0xb5   : > { %2182 = vmatprep.subr.bf16.mxu0 %v4887_v61  ;;  %2634 = vmatprep.subr.bf16.mxu1 %v4890_v62  ;;  %v4944_v61 = vld [vmem:[#allocation5 + $0x42c] ss:$16 sps:$4 sm:$0xff]   ;;  %v4939_v62 = vld [vmem:[#allocation5 + $0x420] ss:$16 sps:$4 sm:$0xff]   ;;  %v442_v0 = vpack.c.bf16 %v330_v58, %v322_v57 }
  0xb6   : > { %v394_v51 = vld [vmem:[%s5539_s15 + $0x2d8] sm:$0xff]  ;;  %v385_v57 = vld [vmem:[%s5539_s15 + $0x290] sm:$0xff] }
  0xb7   : > { %2126 = vmatmul.mubr.bf16.gmra.mrb[16].mxu0 %v463_v63  ;;  %2578 = vmatmul.mubr.bf16.gmra.mrb[16].mxu1 %v463_v63  ;;  %v4942_v63 = vld [vmem:[#allocation5 + $0x428] ss:$16 sps:$4 sm:$0xff]   ;;  %v393_v58 = vld [vmem:[%s5539_s15 + $0x2d0] sm:$0xff] }
  0xb8   : > { %2183 = vmatpush1.bf16.msra.mxu0 %v4885_v2  ;;  %2635 = vmatpush1.bf16.msra.mxu1 %v4888_v3  ;;  %v329_v2 = vld [vmem:[%s5539_s15 + $0xd0] sm:$0xff] }
  0xb9   : > { %2184 = vmatprep.subr.bf16.mxu0 %v4893_v4  ;;  %2636 = vmatprep.subr.bf16.mxu1 %v4896_v5  ;;  %v4947_v3 = vld [vmem:[#allocation5 + $0x444] ss:$16 sps:$4 sm:$0xff]   ;;  %v4950_v4 = vld [vmem:[#allocation5 + $0x44c] ss:$16 sps:$4 sm:$0xff]   ;;  %v441_v5 = vpack.c.bf16 %v329_v2, %v321_v1  ;;  %v4996_v1 = vld [vmem:[#allocation5 + $0x548] ss:$16 sps:$4 sm:$0xff]  }
  0xba   : > { %2135 = vmatprep.mubr.bf16.mxu0 %v472_v8  ;;  %2587 = vmatprep.mubr.bf16.mxu1 %v472_v8  ;;  %v4945_v8 = vld [vmem:[#allocation5 + $0x440] ss:$16 sps:$4 sm:$0xff]   ;;  %v5001_v2 = vld [vmem:[#allocation5 + $0x564] ss:$16 sps:$4 sm:$0xff]  }
  0xbc   : > { %2185 = vmatpush1.bf16.msra.mxu0 %v4891_v6  ;;  %2637 = vmatpush1.bf16.msra.mxu1 %v4894_v7  ;;  %v338_v6 = vld [vmem:[%s5539_s15 + $0x118] sm:$0xff] }
  0xbd   : > { %2186 = vmatprep.subr.bf16.mxu0 %v4899_v11  ;;  %2638 = vmatprep.subr.bf16.mxu1 %v4902_v12  ;;  %v346_v7 = vld [vmem:[%s5539_s15 + $0x158] sm:$0xff]  ;;  %v4951_v12 = vld [vmem:[#allocation5 + $0x460] ss:$16 sps:$4 sm:$0xff]  }
  0xbe   : > { %v4956_v11 = vld [vmem:[#allocation5 + $0x46c] ss:$16 sps:$4 sm:$0xff]  }
  0xbf   : > { %2136 = vmatmul.mubr.bf16.gmra.mrb[20].mxu0 %v471_v14  ;;  %2588 = vmatmul.mubr.bf16.gmra.mrb[20].mxu1 %v471_v14  ;;  %v450_v14 = vpack.c.bf16 %v346_v7, %v338_v6  ;;  %v401_v7 = vld [vmem:[%s5539_s15 + $0x310] sm:$0xff] }
  0xc0   : > { %2187 = vmatpush1.bf16.msra.mxu0 %v4897_v13  ;;  %2639 = vmatpush1.bf16.msra.mxu1 %v4900_v15  ;;  %v4954_v13 = vld [vmem:[#allocation5 + $0x468] ss:$16 sps:$4 sm:$0xff]   ;;  %v337_v15 = vld [vmem:[%s5539_s15 + $0x110] sm:$0xff] }
  0xc1   : > { %2188 = vmatprep.subr.bf16.mxu0 %v4905_v18  ;;  %2640 = vmatprep.subr.bf16.mxu1 %v4908_v19  ;;  %v4962_v18 = vld [vmem:[#allocation5 + $0x48c] ss:$16 sps:$4 sm:$0xff]   ;;  %v4957_v19 = vld [vmem:[#allocation5 + $0x480] ss:$16 sps:$4 sm:$0xff]  }
  0xc2   : > { %2145 = vmatprep.mubr.bf16.mxu0 %v480_v21  ;;  %2597 = vmatprep.mubr.bf16.mxu1 %v480_v21  ;;  %v4960_v21 = vld [vmem:[#allocation5 + $0x488] ss:$16 sps:$4 sm:$0xff]  }
  0xc4   : > { %2189 = vmatpush1.bf16.msra.mxu0 %v4903_v20  ;;  %2641 = vmatpush1.bf16.msra.mxu1 %v4906_v22  ;;  %v449_v20 = vpack.c.bf16 %v345_v16, %v337_v15  ;;  %v354_v22 = vld [vmem:[%s5539_s15 + $0x198] sm:$0xff]  ;;  %v5013_v16 = vld [vmem:[#allocation5 + $0x5a4] ss:$16 sps:$4 sm:$0xff]  }
  0xc5   : > { %2190 = vmatprep.subr.bf16.mxu0 %v4911_v25  ;;  %2642 = vmatprep.subr.bf16.mxu1 %v4914_v26  ;;  %v4968_v25 = vld [vmem:[#allocation5 + $0x4ac] ss:$16 sps:$4 sm:$0xff]   ;;  %v4963_v26 = vld [vmem:[#allocation5 + $0x4a0] ss:$16 sps:$4 sm:$0xff]   ;;  %v5008_v15 = vld [vmem:[#allocation5 + $0x588] ss:$16 sps:$4 sm:$0xff]  }
  0xc7   : > { %2146 = vmatmul.mubr.bf16.gmra.mrb[24].mxu0 %v479_v29  ;;  %2598 = vmatmul.mubr.bf16.gmra.mrb[24].mxu1 %v479_v29  ;;  %v353_v29 = vld [vmem:[%s5539_s15 + $0x190] sm:$0xff] }
  0xc8   : > { %2191 = vmatpush1.bf16.msra.mxu0 %v4909_v27  ;;  %2643 = vmatpush1.bf16.msra.mxu1 %v4912_v28  ;;  %v458_v27 = vpack.c.bf16 %v362_v23, %v354_v22  ;;  %v4966_v28 = vld [vmem:[#allocation5 + $0x4a8] ss:$16 sps:$4 sm:$0xff]   ;;  %v425_v22 = vld [vmem:[%s5539_s15 + $0x3d0] sm:$0xff] }
  0xc9   : > { %2192 = vmatprep.subr.bf16.mxu0 %v4917_v32  ;;  %2644 = vmatprep.subr.bf16.mxu1 %v4920_v33  ;;  %v4974_v32 = vld [vmem:[#allocation5 + $0x4cc] ss:$16 sps:$4 sm:$0xff]   ;;  %v4969_v33 = vld [vmem:[#allocation5 + $0x4c0] ss:$16 sps:$4 sm:$0xff]   ;;  %v5019_v23 = vld [vmem:[#allocation5 + $0x5c4] ss:$16 sps:$4 sm:$0xff]  }
  0xca   : > { %2155 = vmatprep.mubr.bf16.mxu0 %v488_v34  ;;  %2607 = vmatprep.mubr.bf16.mxu1 %v488_v34  ;;  %v4972_v34 = vld [vmem:[#allocation5 + $0x4c8] ss:$16 sps:$4 sm:$0xff]  }
  0xcc   : > { %2193 = vmatpush1.bf16.msra.mxu0 %v4915_v35  ;;  %2645 = vmatpush1.bf16.msra.mxu1 %v4918_v36  ;;  %v457_v35 = vpack.c.bf16 %v361_v30, %v353_v29  ;;  %v370_v36 = vld [vmem:[%s5539_s15 + $0x218] sm:$0xff]  ;;  %v316_v29 = vld [vmem:[%s5539_s15 + $0x68] sm:$0xff]  ;;  %v5025_v30 = vld [vmem:[#allocation5 + $0x5e4] ss:$16 sps:$4 sm:$0xff]  }
  0xcd   : > { %2194 = vmatprep.subr.bf16.mxu0 %v4923_v39  ;;  %2646 = vmatprep.subr.bf16.mxu1 %v4926_v40  ;;  %v4980_v39 = vld [vmem:[#allocation5 + $0x4ec] ss:$16 sps:$4 sm:$0xff]   ;;  %v466_v40 = vpack.c.bf16 %v378_v37, %v370_v36  ;;  %v315_v36 = vld [vmem:[%s5539_s15 + $0x60] sm:$0xff] }
  0xce   : > { %v5031_v37 = vld [vmem:[#allocation5 + $0x604] ss:$16 sps:$4 sm:$0xff]  }
  0xcf   : > { %2156 = vmatmul.mubr.bf16.gmra.mrb[28].mxu0 %v487_v43  ;;  %2608 = vmatmul.mubr.bf16.gmra.mrb[28].mxu1 %v487_v43  ;;  %v369_v43 = vld [vmem:[%s5539_s15 + $0x210] sm:$0xff] }
  0xd0   : > { %2195 = vmatpush1.bf16.msra.mxu0 %v4921_v41  ;;  %2647 = vmatpush1.bf16.msra.mxu1 %v4924_v42  ;;  %v4975_v41 = vld [vmem:[#allocation5 + $0x4e0] ss:$16 sps:$4 sm:$0xff]   ;;  %v4978_v42 = vld [vmem:[#allocation5 + $0x4e8] ss:$16 sps:$4 sm:$0xff]  }
  0xd1   : > { %2196 = vmatprep.subr.bf16.mxu0 %v4929_v46  ;;  %2648 = vmatprep.subr.bf16.mxu1 %v4932_v47  ;;  %v4986_v46 = vld [vmem:[#allocation5 + $0x50c] ss:$16 sps:$4 sm:$0xff]   ;;  %v4981_v47 = vld [vmem:[#allocation5 + $0x500] ss:$16 sps:$4 sm:$0xff]  }
  0xd2   : > { %2198 = vmatprep.mubr.bf16.mxu0 %v434_v49  ;;  %2650 = vmatprep.mubr.bf16.mxu1 %v434_v49  ;;  %v465_v49 = vpack.c.bf16 %v377_v44, %v369_v43  ;;  %v332_v43 = vld [vmem:[%s5539_s15 + $0xe8] sm:$0xff]  ;;  %v5037_v44 = vld [vmem:[#allocation5 + $0x624] ss:$16 sps:$4 sm:$0xff]  }
  0xd4   : > { %2197 = vmatpush1.bf16.msra.mxu0 %v4927_v48  ;;  %2649 = vmatpush1.bf16.msra.mxu1 %v4930_v50  ;;  %v4984_v48 = vld [vmem:[#allocation5 + $0x508] ss:$16 sps:$4 sm:$0xff]  }
  0xd5   : > { %2279 = vmatprep.subr.bf16.mxu0 %v4935_v53  ;;  %2731 = vmatprep.subr.bf16.mxu1 %v4938_v54  ;;  %v386_v50 = vld [vmem:[%s5539_s15 + $0x298] sm:$0xff]  ;;  %v4987_v54 = vld [vmem:[#allocation5 + $0x520] ss:$16 sps:$4 sm:$0xff]  }
  0xd6   : > { %v4992_v53 = vld [vmem:[#allocation5 + $0x52c] ss:$16 sps:$4 sm:$0xff]  }
  0xd7   : > { %2199 = vmatmul.mubr.bf16.vlgmr.msra.gmra.mrb[0].mxu0 %v433_v56  ;;  %2651 = vmatmul.mubr.bf16.vlgmr.msra.gmra.mrb[0].mxu1 %v433_v56  ;;  %v4990_v56 = vld [vmem:[#allocation5 + $0x528] ss:$16 sps:$4 sm:$0xff]  }
  0xd8   : > { %2280 = vmatpush1.bf16.msra.mxu0 %v4933_v55  ;;  %2732 = vmatpush1.bf16.msra.mxu1 %v4936_v59  ;;  %v474_v55 = vpack.c.bf16 %v394_v51, %v386_v50  ;;  %v4995_v59 = vld [vmem:[#allocation5 + $0x544] ss:$16 sps:$4 sm:$0xff]  }
  0xd9   : > { %2281 = vmatprep.subr.bf16.mxu0 %v4941_v60  ;;  %2733 = vmatprep.subr.bf16.mxu1 %v4944_v61  ;;  %v4998_v60 = vld [vmem:[#allocation5 + $0x54c] ss:$16 sps:$4 sm:$0xff]   ;;  %v4993_v61 = vld [vmem:[#allocation5 + $0x540] ss:$16 sps:$4 sm:$0xff]   ;;  %v5043_v51 = vld [vmem:[#allocation5 + $0x644] ss:$16 sps:$4 sm:$0xff]  }
  0xda   : > { %2208 = vmatprep.mubr.bf16.mxu0 %v442_v0  ;;  %2660 = vmatprep.mubr.bf16.mxu1 %v442_v0  ;;  %v410_v0 = vld [vmem:[%s5539_s15 + $0x358] sm:$0xff]  ;;  %v331_v50 = vld [vmem:[%s5539_s15 + $0xe0] sm:$0xff] }
  0xdc   : > { %2282 = vmatpush1.bf16.msra.mxu0 %v4939_v62  ;;  %2734 = vmatpush1.bf16.msra.mxu1 %v4942_v63  ;;  %v473_v62 = vpack.c.bf16 %v393_v58, %v385_v57  ;;  %v402_v63 = vld [vmem:[%s5539_s15 + $0x318] sm:$0xff]  ;;  %v348_v57 = vld [vmem:[%s5539_s15 + $0x168] sm:$0xff]  ;;  %v5049_v58 = vld [vmem:[#allocation5 + $0x664] ss:$16 sps:$4 sm:$0xff]  }
  0xdd   : > { %2283 = vmatprep.subr.bf16.mxu0 %v4947_v3  ;;  %2735 = vmatprep.subr.bf16.mxu1 %v4950_v4  ;;  %v5004_v3 = vld [vmem:[#allocation5 + $0x56c] ss:$16 sps:$4 sm:$0xff]   ;;  %v4999_v4 = vld [vmem:[#allocation5 + $0x560] ss:$16 sps:$4 sm:$0xff]   ;;  %v482_v6 = vpack.c.bf16 %v410_v0, %v402_v63 }
  0xde   : > { %v339_v63 = vld [vmem:[%s5539_s15 + $0x120] sm:$0xff] }
  0xdf   : > { %2209 = vmatmul.mubr.bf16.gmra.mrb[4].mxu0 %v441_v5  ;;  %2661 = vmatmul.mubr.bf16.gmra.mrb[4].mxu1 %v441_v5  ;;  %v5002_v5 = vld [vmem:[#allocation5 + $0x568] ss:$16 sps:$4 sm:$0xff]   ;;  %v347_v0 = vld [vmem:[%s5539_s15 + $0x160] sm:$0xff] }
  0xe0   : > { %2284 = vmatpush1.bf16.msra.mxu0 %v4945_v8  ;;  %2736 = vmatpush1.bf16.msra.mxu1 %v4948_v9  ;;  %v409_v8 = vld [vmem:[%s5539_s15 + $0x350] sm:$0xff] }
  0xe1   : > { %2285 = vmatprep.subr.bf16.mxu0 %v4953_v10  ;;  %2737 = vmatprep.subr.bf16.mxu1 %v4956_v11  ;;  %v5007_v9 = vld [vmem:[#allocation5 + $0x584] ss:$16 sps:$4 sm:$0xff]   ;;  %v5010_v10 = vld [vmem:[#allocation5 + $0x58c] ss:$16 sps:$4 sm:$0xff]   ;;  %v481_v11 = vpack.c.bf16 %v409_v8, %v401_v7  ;;  %v5056_v7 = vld [vmem:[#allocation5 + $0x688] ss:$16 sps:$4 sm:$0xff]  }
  0xe2   : > { %2218 = vmatprep.mubr.bf16.mxu0 %v450_v14  ;;  %2670 = vmatprep.mubr.bf16.mxu1 %v450_v14  ;;  %v5005_v14 = vld [vmem:[#allocation5 + $0x580] ss:$16 sps:$4 sm:$0xff]   ;;  %v5061_v8 = vld [vmem:[#allocation5 + $0x6a4] ss:$16 sps:$4 sm:$0xff]  }
  0xe4   : > { %2286 = vmatpush1.bf16.msra.mxu0 %v4951_v12  ;;  %2738 = vmatpush1.bf16.msra.mxu1 %v4954_v13  ;;  %v418_v12 = vld [vmem:[%s5539_s15 + $0x398] sm:$0xff] }
  0xe5   : > { %2287 = vmatprep.subr.bf16.mxu0 %v4959_v17  ;;  %2739 = vmatprep.subr.bf16.mxu1 %v4962_v18  ;;  %v426_v13 = vld [vmem:[%s5539_s15 + $0x3d8] sm:$0xff]  ;;  %v5011_v18 = vld [vmem:[#allocation5 + $0x5a0] ss:$16 sps:$4 sm:$0xff]  }
  0xe6   : > { %v5016_v17 = vld [vmem:[#allocation5 + $0x5ac] ss:$16 sps:$4 sm:$0xff]  }
  0xe7   : > { %2219 = vmatmul.mubr.bf16.gmra.mrb[8].mxu0 %v449_v20  ;;  %2671 = vmatmul.mubr.bf16.gmra.mrb[8].mxu1 %v449_v20  ;;  %v490_v20 = vpack.c.bf16 %v426_v13, %v418_v12  ;;  %v5062_v12 = vld [vmem:[#allocation5 + $0x6a8] ss:$16 sps:$4 sm:$0xff]   ;;  %v355_v13 = vld [vmem:[%s5539_s15 + $0x1a0] sm:$0xff] }
  0xe8   : > { %2288 = vmatpush1.bf16.msra.mxu0 %v4957_v19  ;;  %2740 = vmatpush1.bf16.msra.mxu1 %v4960_v21  ;;  %v5014_v19 = vld [vmem:[#allocation5 + $0x5a8] ss:$16 sps:$4 sm:$0xff]   ;;  %v417_v21 = vld [vmem:[%s5539_s15 + $0x390] sm:$0xff] }
  0xe9   : > { %2289 = vmatprep.subr.bf16.mxu0 %v4965_v24  ;;  %2741 = vmatprep.subr.bf16.mxu1 %v4968_v25  ;;  %v5022_v24 = vld [vmem:[#allocation5 + $0x5cc] ss:$16 sps:$4 sm:$0xff]   ;;  %v5017_v25 = vld [vmem:[#allocation5 + $0x5c0] ss:$16 sps:$4 sm:$0xff]  }
  0xea   : > { %2228 = vmatprep.mubr.bf16.mxu0 %v458_v27  ;;  %2680 = vmatprep.mubr.bf16.mxu1 %v458_v27  ;;  %v5020_v27 = vld [vmem:[#allocation5 + $0x5c8] ss:$16 sps:$4 sm:$0xff]  }
  0xec   : > { %2290 = vmatpush1.bf16.msra.mxu0 %v4963_v26  ;;  %2742 = vmatpush1.bf16.msra.mxu1 %v4966_v28  ;;  %v489_v26 = vpack.c.bf16 %v425_v22, %v417_v21  ;;  %v308_v28 = vld [vmem:[%s5539_s15 + $0x28] sm:$0xff]  ;;  %v5073_v22 = vld [vmem:[#allocation5 + $0x6e4] ss:$16 sps:$4 sm:$0xff]  }
  0xed   : > { %2291 = vmatprep.subr.bf16.mxu0 %v4971_v31  ;;  %2743 = vmatprep.subr.bf16.mxu1 %v4974_v32  ;;  %v5028_v31 = vld [vmem:[#allocation5 + $0x5ec] ss:$16 sps:$4 sm:$0xff]   ;;  %v5023_v32 = vld [vmem:[#allocation5 + $0x5e0] ss:$16 sps:$4 sm:$0xff]  }
  0xee   : > { %v380_v21 = vld [vmem:[%s5539_s15 + $0x268] sm:$0xff] }
  0xef   : > { %2229 = vmatmul.mubr.bf16.gmra.mrb[12].mxu0 %v457_v35  ;;  %2681 = vmatmul.mubr.bf16.gmra.mrb[12].mxu1 %v457_v35  ;;  %v307_v35 = vld [vmem:[%s5539_s15 + $0x20] sm:$0xff] }
  0xf0   : > { %2292 = vmatpush1.bf16.msra.mxu0 %v4969_v33  ;;  %2744 = vmatpush1.bf16.msra.mxu1 %v4972_v34  ;;  %v436_v33 = vpack.c.bf16 %v316_v29, %v308_v28  ;;  %v5026_v34 = vld [vmem:[#allocation5 + $0x5e8] ss:$16 sps:$4 sm:$0xff]   ;;  %v379_v28 = vld [vmem:[%s5539_s15 + $0x260] sm:$0xff] }
  0xf1   : > { %2293 = vmatprep.subr.bf16.mxu0 %v4977_v38  ;;  %2745 = vmatprep.subr.bf16.mxu1 %v4980_v39  ;;  %v5034_v38 = vld [vmem:[#allocation5 + $0x60c] ss:$16 sps:$4 sm:$0xff]   ;;  %v5029_v39 = vld [vmem:[#allocation5 + $0x600] ss:$16 sps:$4 sm:$0xff]   ;;  %v5079_v29 = vld [vmem:[#allocation5 + $0x704] ss:$16 sps:$4 sm:$0xff]  }
  0xf2   : > { %2238 = vmatprep.mubr.bf16.mxu0 %v466_v40  ;;  %2690 = vmatprep.mubr.bf16.mxu1 %v466_v40  ;;  %v5032_v40 = vld [vmem:[#allocation5 + $0x608] ss:$16 sps:$4 sm:$0xff]  }
  0xf4   : > { %2294 = vmatpush1.bf16.msra.mxu0 %v4975_v41  ;;  %2746 = vmatpush1.bf16.msra.mxu1 %v4978_v42  ;;  %v435_v41 = vpack.c.bf16 %v315_v36, %v307_v35  ;;  %v324_v42 = vld [vmem:[%s5539_s15 + $0xa8] sm:$0xff]  ;;  %v5085_v36 = vld [vmem:[#allocation5 + $0x724] ss:$16 sps:$4 sm:$0xff]  }
  0xf5   : > { %2295 = vmatprep.subr.bf16.mxu0 %v4983_v45  ;;  %2747 = vmatprep.subr.bf16.mxu1 %v4986_v46  ;;  %v5040_v45 = vld [vmem:[#allocation5 + $0x62c] ss:$16 sps:$4 sm:$0xff]   ;;  %v444_v46 = vpack.c.bf16 %v332_v43, %v324_v42  ;;  %v395_v42 = vld [vmem:[%s5539_s15 + $0x2e0] sm:$0xff] }
  0xf6   : > { %v396_v35 = vld [vmem:[%s5539_s15 + $0x2e8] sm:$0xff]  ;;  %v5091_v43 = vld [vmem:[#allocation5 + $0x744] ss:$16 sps:$4 sm:$0xff]  }
  0xf7   : > { %2239 = vmatmul.mubr.bf16.gmra.mrb[16].mxu0 %v465_v49  ;;  %2691 = vmatmul.mubr.bf16.gmra.mrb[16].mxu1 %v465_v49  ;;  %v323_v49 = vld [vmem:[%s5539_s15 + $0xa0] sm:$0xff] }
  0xf8   : > { %2296 = vmatpush1.bf16.msra.mxu0 %v4981_v47  ;;  %2748 = vmatpush1.bf16.msra.mxu1 %v4984_v48  ;;  %v5035_v47 = vld [vmem:[#allocation5 + $0x620] ss:$16 sps:$4 sm:$0xff]   ;;  %v5038_v48 = vld [vmem:[#allocation5 + $0x628] ss:$16 sps:$4 sm:$0xff]  }
  0xf9   : > { %2297 = vmatprep.subr.bf16.mxu0 %v4989_v52  ;;  %2749 = vmatprep.subr.bf16.mxu1 %v4992_v53  ;;  %v5046_v52 = vld [vmem:[#allocation5 + $0x64c] ss:$16 sps:$4 sm:$0xff]   ;;  %v5041_v53 = vld [vmem:[#allocation5 + $0x640] ss:$16 sps:$4 sm:$0xff]  }
  0xfa   : > { %2248 = vmatprep.mubr.bf16.mxu0 %v474_v55  ;;  %2700 = vmatprep.mubr.bf16.mxu1 %v474_v55  ;;  %v443_v55 = vpack.c.bf16 %v331_v50, %v323_v49  ;;  %v412_v49 = vld [vmem:[%s5539_s15 + $0x368] sm:$0xff]  ;;  %v5097_v50 = vld [vmem:[#allocation5 + $0x764] ss:$16 sps:$4 sm:$0xff]  }
  0xfc   : > { %2298 = vmatpush1.bf16.msra.mxu0 %v4987_v54  ;;  %2750 = vmatpush1.bf16.msra.mxu1 %v4990_v56  ;;  %v5044_v54 = vld [vmem:[#allocation5 + $0x648] ss:$16 sps:$4 sm:$0xff]  }
  0xfd   : > { %2299 = vmatprep.subr.bf16.mxu0 %v4995_v59  ;;  %2751 = vmatprep.subr.bf16.mxu1 %v4998_v60  ;;  %v340_v56 = vld [vmem:[%s5539_s15 + $0x128] sm:$0xff] }
  0xfe   : > { %v5052_v59 = vld [vmem:[#allocation5 + $0x66c] ss:$16 sps:$4 sm:$0xff]   ;;  %v452_v60 = vpack.c.bf16 %v348_v57, %v340_v56  ;;  %v411_v56 = vld [vmem:[%s5539_s15 + $0x360] sm:$0xff] }
  0xff   : > { %2249 = vmatmul.mubr.bf16.gmra.mrb[20].mxu0 %v473_v62  ;;  %2701 = vmatmul.mubr.bf16.gmra.mrb[20].mxu1 %v473_v62  ;;  %v5050_v62 = vld [vmem:[#allocation5 + $0x668] ss:$16 sps:$4 sm:$0xff]   ;;  %v5103_v57 = vld [vmem:[#allocation5 + $0x784] ss:$16 sps:$4 sm:$0xff]  }
 0x100   : > { %2300 = vmatpush1.bf16.msra.mxu0 %v4993_v61  ;;  %2752 = vmatpush1.bf16.msra.mxu1 %v4996_v1  ;;  %v5047_v61 = vld [vmem:[#allocation5 + $0x660] ss:$16 sps:$4 sm:$0xff]   ;;  %v5055_v1 = vld [vmem:[#allocation5 + $0x684] ss:$16 sps:$4 sm:$0xff]  }
 0x101   : > { %2301 = vmatprep.subr.bf16.mxu0 %v5001_v2  ;;  %2753 = vmatprep.subr.bf16.mxu1 %v5004_v3  ;;  %v5058_v2 = vld [vmem:[#allocation5 + $0x68c] ss:$16 sps:$4 sm:$0xff]   ;;  %v451_v3 = vpack.c.bf16 %v347_v0, %v339_v63  ;;  %v5104_v63 = vld [vmem:[#allocation5 + $0x788] ss:$16 sps:$4 sm:$0xff]   ;;  %v5109_v0 = vld [vmem:[#allocation5 + $0x7a4] ss:$16 sps:$4 sm:$0xff]  }
 0x102   : > { %2258 = vmatprep.mubr.bf16.mxu0 %v482_v6  ;;  %2710 = vmatprep.mubr.bf16.mxu1 %v482_v6  ;;  %v5053_v6 = vld [vmem:[#allocation5 + $0x680] ss:$16 sps:$4 sm:$0xff]  }
 0x104   : > { %2302 = vmatpush1.bf16.msra.mxu0 %v4999_v4  ;;  %2754 = vmatpush1.bf16.msra.mxu1 %v5002_v5  ;;  %v356_v4 = vld [vmem:[%s5539_s15 + $0x1a8] sm:$0xff] }
 0x105   : > { %2303 = vmatprep.subr.bf16.mxu0 %v5007_v9  ;;  %2755 = vmatprep.subr.bf16.mxu1 %v5010_v10  ;;  %v364_v5 = vld [vmem:[%s5539_s15 + $0x1e8] sm:$0xff] }
 0x106   : > { %v5064_v9 = vld [vmem:[#allocation5 + $0x6ac] ss:$16 sps:$4 sm:$0xff]   ;;  %v460_v10 = vpack.c.bf16 %v364_v5, %v356_v4  ;;  %v419_v5 = vld [vmem:[%s5539_s15 + $0x3a0] sm:$0xff] }
 0x107   : > { %2259 = vmatmul.mubr.bf16.gmra.mrb[24].mxu0 %v481_v11  ;;  %2711 = vmatmul.mubr.bf16.gmra.mrb[24].mxu1 %v481_v11  ;;  %v5059_v11 = vld [vmem:[#allocation5 + $0x6a0] ss:$16 sps:$4 sm:$0xff]  }
 0x108   : > { %2304 = vmatpush1.bf16.msra.mxu0 %v5005_v14  ;;  %2756 = vmatpush1.bf16.msra.mxu1 %v5008_v15  ;;  %v363_v14 = vld [vmem:[%s5539_s15 + $0x1e0] sm:$0xff] }
 0x109   : > { %2305 = vmatprep.subr.bf16.mxu0 %v5013_v16  ;;  %2757 = vmatprep.subr.bf16.mxu1 %v5016_v17  ;;  %v5067_v15 = vld [vmem:[#allocation5 + $0x6c4] ss:$16 sps:$4 sm:$0xff]   ;;  %v5070_v16 = vld [vmem:[#allocation5 + $0x6cc] ss:$16 sps:$4 sm:$0xff]   ;;  %v5065_v17 = vld [vmem:[#allocation5 + $0x6c0] ss:$16 sps:$4 sm:$0xff]  }
 0x10a   : > { %2268 = vmatprep.mubr.bf16.mxu0 %v490_v20  ;;  %2720 = vmatprep.mubr.bf16.mxu1 %v490_v20  ;;  %v459_v20 = vpack.c.bf16 %v363_v14, %v355_v13  ;;  %v5116_v13 = vld [vmem:[#allocation5 + $0x7c8] ss:$16 sps:$4 sm:$0xff]   ;;  %v5121_v14 = vld [vmem:[#allocation5 + $0x7e4] ss:$16 sps:$4 sm:$0xff]  }
 0x10c   : > { %2306 = vmatpush1.bf16.msra.mxu0 %v5011_v18  ;;  %2758 = vmatpush1.bf16.msra.mxu1 %v5014_v19  ;;  %v5068_v18 = vld [vmem:[#allocation5 + $0x6c8] ss:$16 sps:$4 sm:$0xff]  }
 0x10d   : > { %2307 = vmatprep.subr.bf16.mxu0 %v5019_v23  ;;  %2759 = vmatprep.subr.bf16.mxu1 %v5022_v24  ;;  %v372_v19 = vld [vmem:[%s5539_s15 + $0x228] sm:$0xff]  ;;  %v5071_v24 = vld [vmem:[#allocation5 + $0x6e0] ss:$16 sps:$4 sm:$0xff]  }
 0x10e   : > { %v5076_v23 = vld [vmem:[#allocation5 + $0x6ec] ss:$16 sps:$4 sm:$0xff]  }
 0x10f   : > { %2269 = vmatmul.mubr.bf16.gmra.mrb[28].mxu0 %v489_v26  ;;  %2721 = vmatmul.mubr.bf16.gmra.mrb[28].mxu1 %v489_v26  ;;  %v468_v26 = vpack.c.bf16 %v380_v21, %v372_v19  ;;  %v309_v19 = vld [vmem:[%s5539_s15 + $0x30] sm:$0xff]  ;;  %v326_v21 = vld [vmem:[%s5539_s15 + $0xb8] sm:$0xff] }
 0x110   : > { %2308 = vmatpush1.bf16.msra.mxu0 %v5017_v25  ;;  %2760 = vmatpush1.bf16.msra.mxu1 %v5020_v27  ;;  %v5074_v25 = vld [vmem:[#allocation5 + $0x6e8] ss:$16 sps:$4 sm:$0xff]   ;;  %v371_v27 = vld [vmem:[%s5539_s15 + $0x220] sm:$0xff] }
 0x111   : > { %2309 = vmatprep.subr.bf16.mxu0 %v5025_v30  ;;  %2761 = vmatprep.subr.bf16.mxu1 %v5028_v31  ;;  %v5082_v30 = vld [vmem:[#allocation5 + $0x70c] ss:$16 sps:$4 sm:$0xff]   ;;  %v5077_v31 = vld [vmem:[#allocation5 + $0x700] ss:$16 sps:$4 sm:$0xff]  }
 0x112   : > { %2311 = vmatprep.mubr.bf16.mxu0 %v436_v33  ;;  %2763 = vmatprep.mubr.bf16.mxu1 %v436_v33  ;;  %v388_v33 = vld [vmem:[%s5539_s15 + $0x2a8] sm:$0xff] }
 0x114   : > { %2310 = vmatpush1.bf16.msra.mxu0 %v5023_v32  ;;  %2762 = vmatpush1.bf16.msra.mxu1 %v5026_v34  ;;  %v5080_v32 = vld [vmem:[#allocation5 + $0x708] ss:$16 sps:$4 sm:$0xff]   ;;  %v467_v34 = vpack.c.bf16 %v379_v28, %v371_v27  ;;  %v5126_v27 = vld [vmem:[%s6236_s3] sm:$0xff]  }
 0x115   : > { %2392 = vmatprep.subr.bf16.mxu0 %v5031_v37  ;;  %2844 = vmatprep.subr.bf16.mxu1 %v5034_v38  ;;  %v5088_v37 = vld [vmem:[#allocation5 + $0x72c] ss:$16 sps:$4 sm:$0xff]   ;;  %v5083_v38 = vld [vmem:[#allocation5 + $0x720] ss:$16 sps:$4 sm:$0xff]  }
 0x116   : > { %v5128_v28 = vld [vmem:[%s6236_s3 + $0x80] sm:$0xff]  }
 0x117   : > { %2312 = vmatmul.mubr.bf16.vlgmr.msra.gmra.mrb[0].mxu0 %v435_v41  ;;  %2764 = vmatmul.mubr.bf16.vlgmr.msra.gmra.mrb[0].mxu1 %v435_v41  ;;  %v387_v41 = vld [vmem:[%s5539_s15 + $0x2a0] sm:$0xff] }
 0x118   : > { %2393 = vmatpush1.bf16.msra.mxu0 %v5029_v39  ;;  %2845 = vmatpush1.bf16.msra.mxu1 %v5032_v40  ;;  %v5086_v39 = vld [vmem:[#allocation5 + $0x728] ss:$16 sps:$4 sm:$0xff]   ;;  %v476_v40 = vpack.c.bf16 %v396_v35, %v388_v33 }
 0x119   : > { %2394 = vmatprep.subr.bf16.mxu0 %v5037_v44  ;;  %2846 = vmatprep.subr.bf16.mxu1 %v5040_v45  ;;  %v5094_v44 = vld [vmem:[#allocation5 + $0x74c] ss:$16 sps:$4 sm:$0xff]   ;;  %v5089_v45 = vld [vmem:[#allocation5 + $0x740] ss:$16 sps:$4 sm:$0xff]  }
 0x11a   : > { %2321 = vmatprep.mubr.bf16.mxu0 %v444_v46  ;;  %2773 = vmatprep.mubr.bf16.mxu1 %v444_v46  ;;  %v5092_v46 = vld [vmem:[#allocation5 + $0x748] ss:$16 sps:$4 sm:$0xff]  }
 0x11b   : > { %v342_v33 = vld [vmem:[%s5539_s15 + $0x138] sm:$0xff]  ;;  %v5130_v35 = vld [vmem:[%s6236_s3 + $0x8] sm:$0xff]  }
 0x11c   : > { %2395 = vmatpush1.bf16.msra.mxu0 %v5035_v47  ;;  %2847 = vmatpush1.bf16.msra.mxu1 %v5038_v48  ;;  %v404_v47 = vld [vmem:[%s5539_s15 + $0x328] sm:$0xff]  ;;  %v475_v48 = vpack.c.bf16 %v395_v42, %v387_v41  ;;  %v5134_v41 = vld [vmem:[%s6236_s3 + $0x10] sm:$0xff]  }
 0x11d   : > { %2396 = vmatprep.subr.bf16.mxu0 %v5043_v51  ;;  %2848 = vmatprep.subr.bf16.mxu1 %v5046_v52  ;;  %v5100_v51 = vld [vmem:[#allocation5 + $0x76c] ss:$16 sps:$4 sm:$0xff]   ;;  %v5095_v52 = vld [vmem:[#allocation5 + $0x760] ss:$16 sps:$4 sm:$0xff]  }
 0x11e   : > { %v5136_v42 = vld [vmem:[%s6236_s3 + $0x90] sm:$0xff]  }
 0x11f   : > { %2322 = vmatmul.mubr.bf16.gmra.mrb[4].mxu0 %v443_v55  ;;  %2774 = vmatmul.mubr.bf16.gmra.mrb[4].mxu1 %v443_v55  ;;  %v403_v55 = vld [vmem:[%s5539_s15 + $0x320] sm:$0xff] }
 0x120   : > { %2397 = vmatpush1.bf16.msra.mxu0 %v5041_v53  ;;  %2849 = vmatpush1.bf16.msra.mxu1 %v5044_v54  ;;  %v5098_v53 = vld [vmem:[#allocation5 + $0x768] ss:$16 sps:$4 sm:$0xff]   ;;  %v484_v54 = vpack.c.bf16 %v412_v49, %v404_v47 }
 0x121   : > { %2398 = vmatprep.subr.bf16.mxu0 %v5049_v58  ;;  %2850 = vmatprep.subr.bf16.mxu1 %v5052_v59  ;;  %v5106_v58 = vld [vmem:[#allocation5 + $0x78c] ss:$16 sps:$4 sm:$0xff]   ;;  %v5101_v59 = vld [vmem:[#allocation5 + $0x780] ss:$16 sps:$4 sm:$0xff]  }
 0x122   : > { %2331 = vmatprep.mubr.bf16.mxu0 %v452_v60  ;;  %2783 = vmatprep.mubr.bf16.mxu1 %v452_v60  ;;  %v420_v60 = vld [vmem:[%s5539_s15 + $0x3a8] sm:$0xff]  ;;  %v358_v47 = vld [vmem:[%s5539_s15 + $0x1b8] sm:$0xff] }
 0x123   : > { %v5138_v49 = vld [vmem:[%s6236_s3 + $0x18] sm:$0xff]  }
 0x124   : > { %2399 = vmatpush1.bf16.msra.mxu0 %v5047_v61  ;;  %2851 = vmatpush1.bf16.msra.mxu1 %v5050_v62  ;;  %v483_v61 = vpack.c.bf16 %v411_v56, %v403_v55  ;;  %v428_v62 = vld [vmem:[%s5539_s15 + $0x3e8] sm:$0xff]  ;;  %v5142_v55 = vld [vmem:[%s6236_s3 + $0x20] sm:$0xff]  }
 0x125   : > { %2400 = vmatprep.subr.bf16.mxu0 %v5055_v1  ;;  %2852 = vmatprep.subr.bf16.mxu1 %v5058_v2  ;;  %v5112_v1 = vld [vmem:[#allocation5 + $0x7ac] ss:$16 sps:$4 sm:$0xff]   ;;  %v5107_v2 = vld [vmem:[#allocation5 + $0x7a0] ss:$16 sps:$4 sm:$0xff]   ;;  %v492_v4 = vpack.c.bf16 %v428_v62, %v420_v60 }
 0x126   : > { %v5144_v56 = vld [vmem:[%s6236_s3 + $0xa0] sm:$0xff]   ;;  %v365_v60 = vld [vmem:[%s5539_s15 + $0x1f0] sm:$0xff]  ;;  %v382_v62 = vld [vmem:[%s5539_s15 + $0x278] sm:$0xff] }
 0x127   : > { %2332 = vmatmul.mubr.bf16.gmra.mrb[8].mxu0 %v451_v3  ;;  %2784 = vmatmul.mubr.bf16.gmra.mrb[8].mxu1 %v451_v3  ;;  %v5110_v3 = vld [vmem:[#allocation5 + $0x7a8] ss:$16 sps:$4 sm:$0xff]  }
 0x128   : > { %2401 = vmatpush1.bf16.msra.mxu0 %v5053_v6  ;;  %2853 = vmatpush1.bf16.msra.mxu1 %v5056_v7  ;;  %v427_v6 = vld [vmem:[%s5539_s15 + $0x3e0] sm:$0xff] }
 0x129   : > { %2402 = vmatprep.subr.bf16.mxu0 %v5061_v8  ;;  %2854 = vmatprep.subr.bf16.mxu1 %v5064_v9  ;;  %v5115_v7 = vld [vmem:[#allocation5 + $0x7c4] ss:$16 sps:$4 sm:$0xff]   ;;  %v5118_v8 = vld [vmem:[#allocation5 + $0x7cc] ss:$16 sps:$4 sm:$0xff]   ;;  %v491_v9 = vpack.c.bf16 %v427_v6, %v419_v5 }
 0x12a   : > { %2341 = vmatprep.mubr.bf16.mxu0 %v460_v10  ;;  %2793 = vmatprep.mubr.bf16.mxu1 %v460_v10  ;;  %v310_v10 = vld [vmem:[%s5539_s15 + $0x38] sm:$0xff]  ;;  %v5150_v5 = vld [vmem:[%s6236_s3 + $0x30] sm:$0xff]  }
 0x12b   : > { %v5152_v6 = vld [vmem:[%s6236_s3 + $0xb0] sm:$0xff]  }
 0x12c   : > { %2403 = vmatpush1.bf16.msra.mxu0 %v5059_v11  ;;  %2855 = vmatpush1.bf16.msra.mxu1 %v5062_v12  ;;  %v318_v11 = vld [vmem:[%s5539_s15 + $0x78] sm:$0xff]  ;;  %v5113_v12 = vld [vmem:[#allocation5 + $0x7c0] ss:$16 sps:$4 sm:$0xff]  }
 0x12d   : > { %2404 = vmatprep.subr.bf16.mxu0 %v5067_v15  ;;  %2856 = vmatprep.subr.bf16.mxu1 %v5070_v16  ;;  %v5124_v15 = vld [vmem:[#allocation5 + $0x7ec] ss:$16 sps:$4 sm:$0xff]   ;;  %v438_v16 = vpack.c.bf16 %v318_v11, %v310_v10 }
 0x12e   : > { %v398_v10 = vld [vmem:[%s5539_s15 + $0x2f8] sm:$0xff] }
 0x12f   : > { %2342 = vmatmul.mubr.bf16.gmra.mrb[12].mxu0 %v459_v20  ;;  %2794 = vmatmul.mubr.bf16.gmra.mrb[12].mxu1 %v459_v20  ;;  %v317_v20 = vld [vmem:[%s5539_s15 + $0x70] sm:$0xff] }
 0x130   : > { %2405 = vmatpush1.bf16.msra.mxu0 %v5065_v17  ;;  %2857 = vmatpush1.bf16.msra.mxu1 %v5068_v18  ;;  %v5119_v17 = vld [vmem:[#allocation5 + $0x7e0] ss:$16 sps:$4 sm:$0xff]   ;;  %v5122_v18 = vld [vmem:[#allocation5 + $0x7e8] ss:$16 sps:$4 sm:$0xff]  }
 0x131   : > { %2406 = vmatprep.subr.bf16.mxu0 %v5073_v22  ;;  %2858 = vmatprep.subr.bf16.mxu1 %v5076_v23  ;;  %v334_v22 = vld [vmem:[%s5539_s15 + $0xf8] sm:$0xff]  ;;  %v5125_v23 = vld [vmem:[%s6236_s3 + $0x40] sm:$0xff]  }
 0x132   : > { %2351 = vmatprep.mubr.bf16.mxu0 %v468_v26  ;;  %2803 = vmatprep.mubr.bf16.mxu1 %v468_v26  ;;  %v446_v26 = vpack.c.bf16 %v334_v22, %v326_v21  ;;  %v422_v21 = vld [vmem:[%s5539_s15 + $0x3b8] sm:$0xff] }
 0x133   : > { %v430_v22 = vld [vmem:[%s5539_s15 + $0x3f8] sm:$0xff] }
 0x134   : > { %2407 = vmatpush1.bf16.msra.mxu0 %v5071_v24  ;;  %2859 = vmatpush1.bf16.msra.mxu1 %v5074_v25  ;;  %v5127_v24 = vld [vmem:[%s6236_s3 + $0xc0] sm:$0xff]   ;;  %v437_v25 = vpack.c.bf16 %v317_v20, %v309_v19  ;;  %v405_v19 = vld [vmem:[%s5539_s15 + $0x330] sm:$0xff] }
 0x135   : > { %2408 = vmatprep.subr.bf16.mxu0 %v5079_v29  ;;  %2860 = vmatprep.subr.bf16.mxu1 %v5082_v30  ;;  %v5129_v29 = vld [vmem:[%s6236_s3 + $0x48] sm:$0xff]   ;;  %v413_v20 = vld [vmem:[%s5539_s15 + $0x370] sm:$0xff] }
 0x136   : > { %v5131_v30 = vld [vmem:[%s6236_s3 + $0xc8] sm:$0xff]  }
 0x137   : > { %2352 = vmatmul.mubr.bf16.gmra.mrb[16].mxu0 %v467_v34  ;;  %2804 = vmatmul.mubr.bf16.gmra.mrb[16].mxu1 %v467_v34  ;;  %v350_v34 = vld [vmem:[%s5539_s15 + $0x178] sm:$0xff] }
 0x138   : > { %2409 = vmatpush1.bf16.msra.mxu0 %v5077_v31  ;;  %2861 = vmatpush1.bf16.msra.mxu1 %v5080_v32  ;;  %v325_v31 = vld [vmem:[%s5539_s15 + $0xb0] sm:$0xff] }
 0x139   : > { %2410 = vmatprep.subr.bf16.mxu0 %v5085_v36  ;;  %2862 = vmatprep.subr.bf16.mxu1 %v5088_v37  ;;  %v333_v32 = vld [vmem:[%s5539_s15 + $0xf0] sm:$0xff]  ;;  %v5132_v36 = vld [vmem:[%s6236_s3 + $0x88] sm:$0xff]  }
 0x13a   : > { %2361 = vmatprep.mubr.bf16.mxu0 %v476_v40  ;;  %2813 = vmatprep.mubr.bf16.mxu1 %v476_v40  ;;  %v5133_v37 = vld [vmem:[%s6236_s3 + $0x50] sm:$0xff]   ;;  %v454_v40 = vpack.c.bf16 %v350_v34, %v342_v33 }
 0x13c   : > { %2411 = vmatpush1.bf16.msra.mxu0 %v5083_v38  ;;  %2863 = vmatpush1.bf16.msra.mxu1 %v5086_v39  ;;  %v5135_v38 = vld [vmem:[%s6236_s3 + $0xd0] sm:$0xff]   ;;  %v445_v39 = vpack.c.bf16 %v333_v32, %v325_v31  ;;  %v5156_v31 = vld [vmem:[%s6236_s3 + $0xb8] sm:$0xff]   ;;  %v753_v32 = vlaneseq }
 0x13d   : > { %2412 = vmatprep.subr.bf16.mxu0 %v5091_v43  ;;  %2864 = vmatprep.subr.bf16.mxu1 %v5094_v44  ;;  %v5137_v43 = vld [vmem:[%s6236_s3 + $0x58] sm:$0xff]  }
 0x13e   : > { %v5139_v44 = vld [vmem:[%s6236_s3 + $0xd8] sm:$0xff]   ;;  %v754_v33 = vshrl.u32 %v753_v32, 7 }
 0x13f   : > { %2362 = vmatmul.mubr.bf16.gmra.mrb[20].mxu0 %v475_v48  ;;  %2814 = vmatmul.mubr.bf16.gmra.mrb[20].mxu1 %v475_v48  ;;  %v366_v48 = vld [vmem:[%s5539_s15 + $0x1f8] sm:$0xff] }
 0x140   : > { %2413 = vmatpush1.bf16.msra.mxu0 %v5089_v45  ;;  %2865 = vmatpush1.bf16.msra.mxu1 %v5092_v46  ;;  %v341_v45 = vld [vmem:[%s5539_s15 + $0x130] sm:$0xff]  ;;  %v755_v34 = vsub.s32 0, %v754_v33 }
 0x141   : > { %2414 = vmatprep.subr.bf16.mxu0 %v5097_v50  ;;  %2866 = vmatprep.subr.bf16.mxu1 %v5100_v51  ;;  %v349_v46 = vld [vmem:[%s5539_s15 + $0x170] sm:$0xff]  ;;  %v5140_v50 = vld [vmem:[%s6236_s3 + $0x98] sm:$0xff]   ;;  %v5141_v51 = vld [vmem:[%s6236_s3 + $0x60] sm:$0xff]  }
 0x142   : > { %2371 = vmatprep.mubr.bf16.mxu0 %v484_v54  ;;  %2823 = vmatprep.mubr.bf16.mxu1 %v484_v54  ;;  %v462_v54 = vpack.c.bf16 %v366_v48, %v358_v47 }
 0x144   : > { %2415 = vmatpush1.bf16.msra.mxu0 %v5095_v52  ;;  %2867 = vmatpush1.bf16.msra.mxu1 %v5098_v53  ;;  %v5143_v52 = vld [vmem:[%s6236_s3 + $0xe0] sm:$0xff]   ;;  %v453_v53 = vpack.c.bf16 %v349_v46, %v341_v45 }
 0x145   : > { %2416 = vmatprep.subr.bf16.mxu0 %v5103_v57  ;;  %2868 = vmatprep.subr.bf16.mxu1 %v5106_v58  ;;  %v5145_v57 = vld [vmem:[%s6236_s3 + $0x68] sm:$0xff]  }
 0x146   : > { %v5147_v58 = vld [vmem:[%s6236_s3 + $0xe8] sm:$0xff]  }
 0x147   : > { %2372 = vmatmul.mubr.bf16.gmra.mrb[24].mxu0 %v483_v61  ;;  %2824 = vmatmul.mubr.bf16.gmra.mrb[24].mxu1 %v483_v61  ;;  %v374_v61 = vld [vmem:[%s5539_s15 + $0x238] sm:$0xff] }
 0x148   : > { %2417 = vmatpush1.bf16.msra.mxu0 %v5101_v59  ;;  %2869 = vmatpush1.bf16.msra.mxu1 %v5104_v63  ;;  %v357_v59 = vld [vmem:[%s5539_s15 + $0x1b0] sm:$0xff]  ;;  %v5146_v63 = vld [vmem:[%s6236_s3 + $0x28] sm:$0xff]  }
 0x149   : > { %2418 = vmatprep.subr.bf16.mxu0 %v5109_v0  ;;  %2870 = vmatprep.subr.bf16.mxu1 %v5112_v1  ;;  %v5148_v0 = vld [vmem:[%s6236_s3 + $0xa8] sm:$0xff]   ;;  %v5149_v1 = vld [vmem:[%s6236_s3 + $0x70] sm:$0xff]  }
 0x14a   : > { %2381 = vmatprep.mubr.bf16.mxu0 %v492_v4  ;;  %2833 = vmatprep.mubr.bf16.mxu1 %v492_v4  ;;  %v470_v4 = vpack.c.bf16 %v382_v62, %v374_v61 }
 0x14c   : > { %2419 = vmatpush1.bf16.msra.mxu0 %v5107_v2  ;;  %2871 = vmatpush1.bf16.msra.mxu1 %v5110_v3  ;;  %v5151_v2 = vld [vmem:[%s6236_s3 + $0xf0] sm:$0xff]   ;;  %v461_v3 = vpack.c.bf16 %v365_v60, %v357_v59 }
 0x14d   : > { %2420 = vmatprep.subr.bf16.mxu0 %v5115_v7  ;;  %2872 = vmatprep.subr.bf16.mxu1 %v5118_v8  ;;  %v373_v7 = vld [vmem:[%s5539_s15 + $0x230] sm:$0xff] }
 0x14e   : > { %v381_v8 = vld [vmem:[%s5539_s15 + $0x270] sm:$0xff] }
 0x14f   : > { %2382 = vmatmul.mubr.bf16.gmra.mrb[28].mxu0 %v491_v9  ;;  %2834 = vmatmul.mubr.bf16.gmra.mrb[28].mxu1 %v491_v9  ;;  %v390_v9 = vld [vmem:[%s5539_s15 + $0x2b8] sm:$0xff]  ;;  %v469_v11 = vpack.c.bf16 %v381_v8, %v373_v7 }
 0x150   : > { %2421 = vmatpush1.bf16.msra.mxu0 %v5113_v12  ;;  %2873 = vmatpush1.bf16.msra.mxu1 %v5116_v13  ;;  %v478_v12 = vpack.c.bf16 %v398_v10, %v390_v9  ;;  %v389_v13 = vld [vmem:[%s5539_s15 + $0x2b0] sm:$0xff] }
 0x151   : > { %2422 = vmatprep.subr.bf16.mxu0 %v5121_v14  ;;  %2874 = vmatprep.subr.bf16.mxu1 %v5124_v15  ;;  %v397_v14 = vld [vmem:[%s5539_s15 + $0x2f0] sm:$0xff]  ;;  %v406_v15 = vld [vmem:[%s5539_s15 + $0x338] sm:$0xff] }
 0x152   : > { %2424 = vmatprep.mubr.bf16.mxu0 %v438_v16  ;;  %2876 = vmatprep.mubr.bf16.mxu1 %v438_v16  ;;  %v414_v16 = vld [vmem:[%s5539_s15 + $0x378] sm:$0xff] }
 0x154   : > { %2423 = vmatpush1.bf16.msra.mxu0 %v5119_v17  ;;  %2875 = vmatpush1.bf16.msra.mxu1 %v5122_v18  ;;  %v477_v17 = vpack.c.bf16 %v397_v14, %v389_v13  ;;  %v486_v18 = vpack.c.bf16 %v414_v16, %v406_v15 }
 0x155   : > { %4293 = vmatprep.subr.bf16.mxu0 %v5125_v23  ;;  %4357 = vmatprep.subr.bf16.mxu1 %v5127_v24  ;;  %v485_v23 = vpack.c.bf16 %v413_v20, %v405_v19  ;;  %v494_v24 = vpack.c.bf16 %v430_v22, %v422_v21 }
 0x157   : > { %2425 = vmatmul.mubr.bf16.vlgmr.msra.gmra.mrb[0].mxu0 %v437_v25  ;;  %2877 = vmatmul.mubr.bf16.vlgmr.msra.gmra.mrb[0].mxu1 %v437_v25  ;;  %v421_v25 = vld [vmem:[%s5539_s15 + $0x3b0] sm:$0xff] }
 0x158   : > { %2434 = vmatprep.mubr.bf16.mxu0 %v446_v26  ;;  %2886 = vmatprep.mubr.bf16.mxu1 %v446_v26  ;;  %v429_v26 = vld [vmem:[%s5539_s15 + $0x3f0] sm:$0xff]  ;;  %s5358_s15 = smov [#allocation7]  }
 0x159   : > { %4294 = vmatpush3.bf16.msra.mxu0 %v5126_v27  ;;  %4358 = vmatpush3.bf16.msra.mxu1 %v5128_v28  ;;  %v493_v27 = vpack.c.bf16 %v429_v26, %v421_v25  ;;  %v5153_v28 = vld [vmem:[%s6236_s3 + $0x78] sm:$0xff]   ;;  %s5283_s8 = sshll.u32 %s5358_s15, 4  ;;  %s5284_s8 = int_to_ptr.vmem [resolvable:$false] %s5283_s8 }
 0x15a   : > { %4295 = vmatprep.subr.bf16.mxu0 %v5129_v29  ;;  %4359 = vmatprep.subr.bf16.mxu1 %v5131_v30  ;;  %v5155_v29 = vld [vmem:[%s6236_s3 + $0xf8] sm:$0xff]   ;;  %s5285_s27 = scalar_lea.vmem %s5284_s8, 16384  ;;  %p5286_p10 = scmp.lt.s32.totalorder %s6112_s18, %s5284_s8 }
 0x15b   : > { %v5154_v30 = vld [vmem:[%s6236_s3 + $0x38] sm:$0xff]   ;;  %p5287_p13 = scmp.lt.s32.totalorder %s5285_s27, %s5279_s17 }
 0x15d   : > { %4296 = vmatpush3.bf16.msra.mxu0 %v5130_v35  ;;  %4360 = vmatpush3.bf16.msra.mxu1 %v5132_v36  ;;  %v763_v35 = vsub.s32 2, %v754_v33  ;;  %v751_v36 = vld [vmem:[%s6235_s2] sm:$0xf]  ;;  %p5288_p3 = por %p5287_p13, %p5286_p10 }
 0x15e   : > { %4297 = vmatprep.subr.bf16.mxu0 %v5133_v37  ;;  %4361 = vmatprep.subr.bf16.mxu1 %v5135_v38  ;;  %v759_v37 = vsub.s32 1, %v754_v33  ;;  %v767_v38 = vsub.s32 3, %v754_v33 }
 0x15f   : > { %2435 = vmatmul.mubr.bf16.gmra.mrb[4].mxu0 %v445_v39  ;;  %2887 = vmatmul.mubr.bf16.gmra.mrb[4].mxu1 %v445_v39  ;;  %v5776_v39 = vrot.slane %v751_v36, %v755_v34  ;;  %p5289_p7 = pnand %p5288_p3, %p5282_p8 }
 0x160   : > { %2444 = vmatprep.mubr.bf16.mxu0 %v454_v40  ;;  %2896 = vmatprep.mubr.bf16.mxu1 %v454_v40  ;;  %v5778_v40 = vrot.slane %v751_v36, %v763_v35 }
 0x161   : > { %4298 = vmatpush3.bf16.msra.mxu0 %v5134_v41  ;;  %4362 = vmatpush3.bf16.msra.mxu1 %v5136_v42  ;;  %v5780_v41 = vrot.slane %v751_v36, %v759_v37  ;;  %v5782_v42 = vrot.slane %v751_v36, %v767_v38 }
 0x162   : > { %4299 = vmatprep.subr.bf16.mxu0 %v5137_v43  ;;  %4363 = vmatprep.subr.bf16.mxu1 %v5139_v44 }
 0x165   : > { %4300 = vmatpush3.bf16.msra.mxu0 %v5138_v49  ;;  %4364 = vmatpush3.bf16.msra.mxu1 %v5140_v50 }
 0x166   : > { %4301 = vmatprep.subr.bf16.mxu0 %v5141_v51  ;;  %4365 = vmatprep.subr.bf16.mxu1 %v5143_v52 }
 0x167   : > { %2445 = vmatmul.mubr.bf16.gmra.mrb[8].mxu0 %v453_v53  ;;  %2897 = vmatmul.mubr.bf16.gmra.mrb[8].mxu1 %v453_v53 }
 0x168   : > { %2454 = vmatprep.mubr.bf16.mxu0 %v462_v54  ;;  %2906 = vmatprep.mubr.bf16.mxu1 %v462_v54 }
 0x169   : > { %4302 = vmatpush3.bf16.msra.mxu0 %v5142_v55  ;;  %4366 = vmatpush3.bf16.msra.mxu1 %v5144_v56 }
 0x16a   : > { %4303 = vmatprep.subr.bf16.mxu0 %v5145_v57  ;;  %4367 = vmatprep.subr.bf16.mxu1 %v5147_v58 }
 0x16d   : > { %4304 = vmatpush3.bf16.msra.mxu0 %v5146_v63  ;;  %4368 = vmatpush3.bf16.msra.mxu1 %v5148_v0 }
 0x16e   : > { %4305 = vmatprep.subr.bf16.mxu0 %v5149_v1  ;;  %4369 = vmatprep.subr.bf16.mxu1 %v5151_v2 }
 0x16f   : > { %2455 = vmatmul.mubr.bf16.gmra.mrb[12].mxu0 %v461_v3  ;;  %2907 = vmatmul.mubr.bf16.gmra.mrb[12].mxu1 %v461_v3 }
 0x170   : > { %2464 = vmatprep.mubr.bf16.mxu0 %v470_v4  ;;  %2916 = vmatprep.mubr.bf16.mxu1 %v470_v4 }
 0x171   : > { %4306 = vmatpush3.bf16.msra.mxu0 %v5150_v5  ;;  %4370 = vmatpush3.bf16.msra.mxu1 %v5152_v6 }
 0x172   : > { %4307 = vmatprep.subr.bf16.mxu0 %v5153_v28  ;;  %4371 = vmatprep.subr.bf16.mxu1 %v5155_v29 }
 0x175   : > { %4308 = vmatpush3.bf16.msra.mxu0 %v5154_v30  ;;  %4372 = vmatpush3.bf16.msra.mxu1 %v5156_v31 }
 0x177   : > { %2465 = vmatmul.mubr.bf16.gmra.mrb[16].mxu0 %v469_v11  ;;  %2917 = vmatmul.mubr.bf16.gmra.mrb[16].mxu1 %v469_v11 }
 0x178   : > { %2474 = vmatprep.mubr.bf16.mxu0 %v478_v12  ;;  %2926 = vmatprep.mubr.bf16.mxu1 %v478_v12 }
 0x17f   : > { %2475 = vmatmul.mubr.bf16.gmra.mrb[20].mxu0 %v477_v17  ;;  %2927 = vmatmul.mubr.bf16.gmra.mrb[20].mxu1 %v477_v17 }
 0x180   : > { %2484 = vmatprep.mubr.bf16.mxu0 %v486_v18  ;;  %2936 = vmatprep.mubr.bf16.mxu1 %v486_v18 }
 0x187   : > { %2485 = vmatmul.mubr.bf16.gmra.mrb[24].mxu0 %v485_v23  ;;  %2937 = vmatmul.mubr.bf16.gmra.mrb[24].mxu1 %v485_v23 }
 0x188   : > { %2494 = vmatprep.mubr.bf16.mxu0 %v494_v24  ;;  %2946 = vmatprep.mubr.bf16.mxu1 %v494_v24 }
 0x18f   : > { %2495 = vmatmul.mubr.bf16.gmra.mrb[28].mxu0 %v493_v27  ;;  %2947 = vmatmul.mubr.bf16.gmra.mrb[28].mxu1 %v493_v27 }
 0x22a   : > { %v2426_v43 = vpop.f32.mrb[0].mxu0  ;;  %v2878_v44 = vpop.f32.mrb[0].mxu1 }
 0x22b   : > { %v4421_v45 = vadd.f32 %v2426_v43, %v5776_v39  ;;  %v4453_v46 = vadd.f32 %v2878_v44, %v5778_v40  ;;  %v2428_v47 = vpop.f32.mrb[1].mxu0  ;;  %v2880_v48 = vpop.f32.mrb[1].mxu1 }
 0x22c   : > { %v4422_v49 = vadd.f32 %v2428_v47, %v5780_v41  ;;  %v4454_v50 = vadd.f32 %v2880_v48, %v5782_v42  ;;  %v2430_v51 = vpop.f32.mrb[2].mxu0  ;;  %v2882_v52 = vpop.f32.mrb[2].mxu1 }
 0x22d   : > { %v2957_v53 = vmax.f32 %v4421_v45, 0.0  ;;  %v2959_v54 = vmax.f32 %v4453_v46, 0.0  ;;  %v4423_v55 = vadd.f32 %v2430_v51, %v5776_v39  ;;  %v4455_v56 = vadd.f32 %v2882_v52, %v5778_v40  ;;  %v2432_v57 = vpop.f32.mrb[3].mxu0  ;;  %v2884_v58 = vpop.f32.mrb[3].mxu1 }
 0x22e   : > { %v2958_v59 = vmax.f32 %v4422_v49, 0.0  ;;  %v2960_v60 = vmax.f32 %v4454_v50, 0.0  ;;  %v4424_v61 = vadd.f32 %v2432_v57, %v5780_v41  ;;  %v4456_v62 = vadd.f32 %v2884_v58, %v5782_v42 }
 0x22f   : > { %3021 = vst [vmem:[%s5793_s29] sm:$0xff] %v2957_v53  ;;  %3023 = vst [vmem:[%s5793_s29 + $0x10] sm:$0xff] %v2959_v54  ;;  %v2961_v63 = vmax.f32 %v4423_v55, 0.0  ;;  %v2963_v0 = vmax.f32 %v4455_v56, 0.0 }
 0x230   : > { %3022 = vst [vmem:[%s5793_s29 + $0x8] sm:$0xff] %v2958_v59  ;;  %3024 = vst [vmem:[%s5793_s29 + $0x18] sm:$0xff] %v2960_v60  ;;  %v2962_v1 = vmax.f32 %v4424_v61, 0.0  ;;  %v2964_v2 = vmax.f32 %v4456_v62, 0.0 }
 0x231   : > { %3025 = vst [vmem:[%s5793_s29 + $0x20] sm:$0xff] %v2961_v63  ;;  %v3085_v3 = vpack.c.bf16 %v2961_v63, %v2957_v53  ;;  %3027 = vst [vmem:[%s5793_s29 + $0x30] sm:$0xff] %v2963_v0  ;;  %v3087_v4 = vpack.c.bf16 %v2963_v0, %v2959_v54 }
 0x232   : > { %3026 = vst [vmem:[%s5793_s29 + $0x28] sm:$0xff] %v2962_v1  ;;  %v3086_v5 = vpack.c.bf16 %v2962_v1, %v2958_v59  ;;  %3028 = vst [vmem:[%s5793_s29 + $0x38] sm:$0xff] %v2964_v2  ;;  %v3088_v6 = vpack.c.bf16 %v2964_v2, %v2960_v60  ;;  %v2436_v7 = vpop.f32.mrb[4].mxu0  ;;  %v2888_v8 = vpop.f32.mrb[4].mxu1 }
 0x233   : > { %v4425_v9 = vadd.f32 %v2436_v7, %v5776_v39  ;;  %v4457_v10 = vadd.f32 %v2888_v8, %v5778_v40  ;;  %v2438_v11 = vpop.f32.mrb[5].mxu0  ;;  %v2890_v12 = vpop.f32.mrb[5].mxu1 }
 0x234   : > { %v4426_v13 = vadd.f32 %v2438_v11, %v5780_v41  ;;  %v4458_v14 = vadd.f32 %v2890_v12, %v5782_v42  ;;  %v2440_v15 = vpop.f32.mrb[6].mxu0  ;;  %v2892_v16 = vpop.f32.mrb[6].mxu1  ;;  %3412 = vmatprep.mubr.bf16.mxu0 %v3086_v5  ;;  %3509 = vmatprep.mubr.bf16.mxu1 %v3088_v6 }
 0x235   : > { %v2965_v17 = vmax.f32 %v4425_v9, 0.0  ;;  %v2967_v18 = vmax.f32 %v4457_v10, 0.0  ;;  %v4427_v19 = vadd.f32 %v2440_v15, %v5776_v39  ;;  %v4459_v20 = vadd.f32 %v2892_v16, %v5778_v40  ;;  %v2442_v21 = vpop.f32.mrb[7].mxu0  ;;  %v2894_v22 = vpop.f32.mrb[7].mxu1  ;;  %3413 = vmatmul.mubr.bf16.vlgmr.msra.gmra.mrb[32].mxu0 %v3085_v3  ;;  %3510 = vmatmul.mubr.bf16.vlgmr.msra.gmra.mrb[32].mxu1 %v3087_v4 }
 0x236   : > { %v2966_v23 = vmax.f32 %v4426_v13, 0.0  ;;  %v2968_v24 = vmax.f32 %v4458_v14, 0.0  ;;  %v4428_v25 = vadd.f32 %v2442_v21, %v5780_v41  ;;  %v4460_v26 = vadd.f32 %v2894_v22, %v5782_v42 }
 0x237   : > { %3029 = vst [vmem:[%s5793_s29 + $0x40] sm:$0xff] %v2965_v17  ;;  %3031 = vst [vmem:[%s5793_s29 + $0x50] sm:$0xff] %v2967_v18  ;;  %v2969_v27 = vmax.f32 %v4427_v19, 0.0  ;;  %v2971_v28 = vmax.f32 %v4459_v20, 0.0 }
 0x238   : > { %3030 = vst [vmem:[%s5793_s29 + $0x48] sm:$0xff] %v2966_v23  ;;  %3032 = vst [vmem:[%s5793_s29 + $0x58] sm:$0xff] %v2968_v24  ;;  %v2970_v29 = vmax.f32 %v4428_v25, 0.0  ;;  %v2972_v30 = vmax.f32 %v4460_v26, 0.0 }
 0x239   : > { %3033 = vst [vmem:[%s5793_s29 + $0x60] sm:$0xff] %v2969_v27  ;;  %v3089_v31 = vpack.c.bf16 %v2969_v27, %v2965_v17  ;;  %3035 = vst [vmem:[%s5793_s29 + $0x70] sm:$0xff] %v2971_v28  ;;  %v3091_v32 = vpack.c.bf16 %v2971_v28, %v2967_v18 }
 0x23a   : > { %3034 = vst [vmem:[%s5793_s29 + $0x68] sm:$0xff] %v2970_v29  ;;  %v3090_v33 = vpack.c.bf16 %v2970_v29, %v2966_v23  ;;  %3036 = vst [vmem:[%s5793_s29 + $0x78] sm:$0xff] %v2972_v30  ;;  %v3092_v34 = vpack.c.bf16 %v2972_v30, %v2968_v24  ;;  %v2446_v35 = vpop.f32.mrb[8].mxu0  ;;  %v2898_v36 = vpop.f32.mrb[8].mxu1 }
 0x23b   : > { %v4429_v37 = vadd.f32 %v2446_v35, %v5776_v39  ;;  %v4461_v38 = vadd.f32 %v2898_v36, %v5778_v40  ;;  %v2448_v43 = vpop.f32.mrb[9].mxu0  ;;  %v2900_v44 = vpop.f32.mrb[9].mxu1 }
 0x23c   : > { %v4430_v45 = vadd.f32 %v2448_v43, %v5780_v41  ;;  %v4462_v46 = vadd.f32 %v2900_v44, %v5782_v42  ;;  %v2450_v47 = vpop.f32.mrb[10].mxu0  ;;  %v2902_v48 = vpop.f32.mrb[10].mxu1  ;;  %3420 = vmatprep.mubr.bf16.mxu0 %v3090_v33  ;;  %3517 = vmatprep.mubr.bf16.mxu1 %v3092_v34 }
 0x23d   : > { %v2973_v49 = vmax.f32 %v4429_v37, 0.0  ;;  %v2975_v50 = vmax.f32 %v4461_v38, 0.0  ;;  %v4431_v51 = vadd.f32 %v2450_v47, %v5776_v39  ;;  %v4463_v52 = vadd.f32 %v2902_v48, %v5778_v40  ;;  %v2452_v53 = vpop.f32.mrb[11].mxu0  ;;  %v2904_v54 = vpop.f32.mrb[11].mxu1  ;;  %3421 = vmatmul.mubr.bf16.gmra.mrb[36].mxu0 %v3089_v31  ;;  %3518 = vmatmul.mubr.bf16.gmra.mrb[36].mxu1 %v3091_v32 }
 0x23e   : > { %v2974_v55 = vmax.f32 %v4430_v45, 0.0  ;;  %v2976_v56 = vmax.f32 %v4462_v46, 0.0  ;;  %v4432_v57 = vadd.f32 %v2452_v53, %v5780_v41  ;;  %v4464_v58 = vadd.f32 %v2904_v54, %v5782_v42 }
 0x23f   : > { %3037 = vst [vmem:[%s5793_s29 + $0x80] sm:$0xff] %v2973_v49  ;;  %3039 = vst [vmem:[%s5793_s29 + $0x90] sm:$0xff] %v2975_v50  ;;  %v2977_v59 = vmax.f32 %v4431_v51, 0.0  ;;  %v2979_v60 = vmax.f32 %v4463_v52, 0.0 }
 0x240   : > { %3038 = vst [vmem:[%s5793_s29 + $0x88] sm:$0xff] %v2974_v55  ;;  %3040 = vst [vmem:[%s5793_s29 + $0x98] sm:$0xff] %v2976_v56  ;;  %v2978_v61 = vmax.f32 %v4432_v57, 0.0  ;;  %v2980_v62 = vmax.f32 %v4464_v58, 0.0 }
 0x241   : > { %3041 = vst [vmem:[%s5793_s29 + $0xa0] sm:$0xff] %v2977_v59  ;;  %v3093_v63 = vpack.c.bf16 %v2977_v59, %v2973_v49  ;;  %3043 = vst [vmem:[%s5793_s29 + $0xb0] sm:$0xff] %v2979_v60  ;;  %v3095_v0 = vpack.c.bf16 %v2979_v60, %v2975_v50 }
 0x242   : > { %3042 = vst [vmem:[%s5793_s29 + $0xa8] sm:$0xff] %v2978_v61  ;;  %v3094_v1 = vpack.c.bf16 %v2978_v61, %v2974_v55  ;;  %3044 = vst [vmem:[%s5793_s29 + $0xb8] sm:$0xff] %v2980_v62  ;;  %v3096_v2 = vpack.c.bf16 %v2980_v62, %v2976_v56  ;;  %v2456_v3 = vpop.f32.mrb[12].mxu0  ;;  %v2908_v4 = vpop.f32.mrb[12].mxu1 }
 0x243   : > { %v4433_v5 = vadd.f32 %v2456_v3, %v5776_v39  ;;  %v4465_v6 = vadd.f32 %v2908_v4, %v5778_v40  ;;  %v2458_v7 = vpop.f32.mrb[13].mxu0  ;;  %v2910_v8 = vpop.f32.mrb[13].mxu1 }
 0x244   : > { %v4434_v9 = vadd.f32 %v2458_v7, %v5780_v41  ;;  %v4466_v10 = vadd.f32 %v2910_v8, %v5782_v42  ;;  %v2460_v11 = vpop.f32.mrb[14].mxu0  ;;  %v2912_v12 = vpop.f32.mrb[14].mxu1  ;;  %3428 = vmatprep.mubr.bf16.mxu0 %v3094_v1  ;;  %3525 = vmatprep.mubr.bf16.mxu1 %v3096_v2 }
 0x245   : > { %v2981_v13 = vmax.f32 %v4433_v5, 0.0  ;;  %v2983_v14 = vmax.f32 %v4465_v6, 0.0  ;;  %v4435_v15 = vadd.f32 %v2460_v11, %v5776_v39  ;;  %v4467_v16 = vadd.f32 %v2912_v12, %v5778_v40  ;;  %v2462_v17 = vpop.f32.mrb[15].mxu0  ;;  %v2914_v18 = vpop.f32.mrb[15].mxu1  ;;  %3429 = vmatmul.mubr.bf16.gmra.mrb[40].mxu0 %v3093_v63  ;;  %3526 = vmatmul.mubr.bf16.gmra.mrb[40].mxu1 %v3095_v0 }
 0x246   : > { %v2982_v19 = vmax.f32 %v4434_v9, 0.0  ;;  %v2984_v20 = vmax.f32 %v4466_v10, 0.0  ;;  %v4436_v21 = vadd.f32 %v2462_v17, %v5780_v41  ;;  %v4468_v22 = vadd.f32 %v2914_v18, %v5782_v42 }
 0x247   : > { %3045 = vst [vmem:[%s5793_s29 + $0xc0] sm:$0xff] %v2981_v13  ;;  %3047 = vst [vmem:[%s5793_s29 + $0xd0] sm:$0xff] %v2983_v14  ;;  %v2985_v23 = vmax.f32 %v4435_v15, 0.0  ;;  %v2987_v24 = vmax.f32 %v4467_v16, 0.0 }
 0x248   : > { %3046 = vst [vmem:[%s5793_s29 + $0xc8] sm:$0xff] %v2982_v19  ;;  %3048 = vst [vmem:[%s5793_s29 + $0xd8] sm:$0xff] %v2984_v20  ;;  %v2986_v25 = vmax.f32 %v4436_v21, 0.0  ;;  %v2988_v26 = vmax.f32 %v4468_v22, 0.0 }
 0x249   : > { %3049 = vst [vmem:[%s5793_s29 + $0xe0] sm:$0xff] %v2985_v23  ;;  %v3097_v27 = vpack.c.bf16 %v2985_v23, %v2981_v13  ;;  %3051 = vst [vmem:[%s5793_s29 + $0xf0] sm:$0xff] %v2987_v24  ;;  %v3099_v28 = vpack.c.bf16 %v2987_v24, %v2983_v14 }
 0x24a   : > { %3050 = vst [vmem:[%s5793_s29 + $0xe8] sm:$0xff] %v2986_v25  ;;  %v3098_v29 = vpack.c.bf16 %v2986_v25, %v2982_v19  ;;  %3052 = vst [vmem:[%s5793_s29 + $0xf8] sm:$0xff] %v2988_v26  ;;  %v3100_v30 = vpack.c.bf16 %v2988_v26, %v2984_v20  ;;  %v2466_v31 = vpop.f32.mrb[16].mxu0  ;;  %v2918_v32 = vpop.f32.mrb[16].mxu1 }
 0x24b   : > { %v4437_v33 = vadd.f32 %v2466_v31, %v5776_v39  ;;  %v4469_v34 = vadd.f32 %v2918_v32, %v5778_v40  ;;  %v2468_v35 = vpop.f32.mrb[17].mxu0  ;;  %v2920_v36 = vpop.f32.mrb[17].mxu1 }
 0x24c   : > { %v4438_v37 = vadd.f32 %v2468_v35, %v5780_v41  ;;  %v4470_v38 = vadd.f32 %v2920_v36, %v5782_v42  ;;  %v2470_v43 = vpop.f32.mrb[18].mxu0  ;;  %v2922_v44 = vpop.f32.mrb[18].mxu1  ;;  %3436 = vmatprep.mubr.bf16.mxu0 %v3098_v29  ;;  %3533 = vmatprep.mubr.bf16.mxu1 %v3100_v30 }
 0x24d   : > { %v2989_v45 = vmax.f32 %v4437_v33, 0.0  ;;  %v2991_v46 = vmax.f32 %v4469_v34, 0.0  ;;  %v4439_v47 = vadd.f32 %v2470_v43, %v5776_v39  ;;  %v4471_v48 = vadd.f32 %v2922_v44, %v5778_v40  ;;  %v2472_v49 = vpop.f32.mrb[19].mxu0  ;;  %v2924_v50 = vpop.f32.mrb[19].mxu1  ;;  %3437 = vmatmul.mubr.bf16.gmra.mrb[44].mxu0 %v3097_v27  ;;  %3534 = vmatmul.mubr.bf16.gmra.mrb[44].mxu1 %v3099_v28 }
 0x24e   : > { %v2990_v51 = vmax.f32 %v4438_v37, 0.0  ;;  %v2992_v52 = vmax.f32 %v4470_v38, 0.0  ;;  %v4440_v53 = vadd.f32 %v2472_v49, %v5780_v41  ;;  %v4472_v54 = vadd.f32 %v2924_v50, %v5782_v42 }
 0x24f   : > { %3053 = vst [vmem:[%s5793_s29 + $0x100] sm:$0xff] %v2989_v45  ;;  %3055 = vst [vmem:[%s5793_s29 + $0x110] sm:$0xff] %v2991_v46  ;;  %v2993_v55 = vmax.f32 %v4439_v47, 0.0  ;;  %v2995_v56 = vmax.f32 %v4471_v48, 0.0 }
 0x250   : > { %3054 = vst [vmem:[%s5793_s29 + $0x108] sm:$0xff] %v2990_v51  ;;  %3056 = vst [vmem:[%s5793_s29 + $0x118] sm:$0xff] %v2992_v52  ;;  %v2994_v57 = vmax.f32 %v4440_v53, 0.0  ;;  %v2996_v58 = vmax.f32 %v4472_v54, 0.0 }
 0x251   : > { %3057 = vst [vmem:[%s5793_s29 + $0x120] sm:$0xff] %v2993_v55  ;;  %v3101_v59 = vpack.c.bf16 %v2993_v55, %v2989_v45  ;;  %3059 = vst [vmem:[%s5793_s29 + $0x130] sm:$0xff] %v2995_v56  ;;  %v3103_v60 = vpack.c.bf16 %v2995_v56, %v2991_v46 }
 0x252   : > { %3058 = vst [vmem:[%s5793_s29 + $0x128] sm:$0xff] %v2994_v57  ;;  %v3102_v61 = vpack.c.bf16 %v2994_v57, %v2990_v51  ;;  %3060 = vst [vmem:[%s5793_s29 + $0x138] sm:$0xff] %v2996_v58  ;;  %v3104_v62 = vpack.c.bf16 %v2996_v58, %v2992_v52  ;;  %v2476_v63 = vpop.f32.mrb[20].mxu0  ;;  %v2928_v0 = vpop.f32.mrb[20].mxu1 }
 0x253   : > { %v4441_v1 = vadd.f32 %v2476_v63, %v5776_v39  ;;  %v4473_v2 = vadd.f32 %v2928_v0, %v5778_v40  ;;  %v2478_v3 = vpop.f32.mrb[21].mxu0  ;;  %v2930_v4 = vpop.f32.mrb[21].mxu1 }
 0x254   : > { %v4442_v5 = vadd.f32 %v2478_v3, %v5780_v41  ;;  %v4474_v6 = vadd.f32 %v2930_v4, %v5782_v42  ;;  %v2480_v7 = vpop.f32.mrb[22].mxu0  ;;  %v2932_v8 = vpop.f32.mrb[22].mxu1  ;;  %3444 = vmatprep.mubr.bf16.mxu0 %v3102_v61  ;;  %3541 = vmatprep.mubr.bf16.mxu1 %v3104_v62 }
 0x255   : > { %v2997_v9 = vmax.f32 %v4441_v1, 0.0  ;;  %v2999_v10 = vmax.f32 %v4473_v2, 0.0  ;;  %v4443_v11 = vadd.f32 %v2480_v7, %v5776_v39  ;;  %v4475_v12 = vadd.f32 %v2932_v8, %v5778_v40  ;;  %v2482_v13 = vpop.f32.mrb[23].mxu0  ;;  %v2934_v14 = vpop.f32.mrb[23].mxu1  ;;  %3445 = vmatmul.mubr.bf16.gmra.mrb[48].mxu0 %v3101_v59  ;;  %3542 = vmatmul.mubr.bf16.gmra.mrb[48].mxu1 %v3103_v60 }
 0x256   : > { %v2998_v15 = vmax.f32 %v4442_v5, 0.0  ;;  %v3000_v16 = vmax.f32 %v4474_v6, 0.0  ;;  %v4444_v17 = vadd.f32 %v2482_v13, %v5780_v41  ;;  %v4476_v18 = vadd.f32 %v2934_v14, %v5782_v42 }
 0x257   : > { %3061 = vst [vmem:[%s5793_s29 + $0x140] sm:$0xff] %v2997_v9  ;;  %3063 = vst [vmem:[%s5793_s29 + $0x150] sm:$0xff] %v2999_v10  ;;  %v3001_v19 = vmax.f32 %v4443_v11, 0.0  ;;  %v3003_v20 = vmax.f32 %v4475_v12, 0.0 }
 0x258   : > { %3062 = vst [vmem:[%s5793_s29 + $0x148] sm:$0xff] %v2998_v15  ;;  %3064 = vst [vmem:[%s5793_s29 + $0x158] sm:$0xff] %v3000_v16  ;;  %v3002_v21 = vmax.f32 %v4444_v17, 0.0  ;;  %v3004_v22 = vmax.f32 %v4476_v18, 0.0 }
 0x259   : > { %3065 = vst [vmem:[%s5793_s29 + $0x160] sm:$0xff] %v3001_v19  ;;  %v3105_v23 = vpack.c.bf16 %v3001_v19, %v2997_v9  ;;  %3067 = vst [vmem:[%s5793_s29 + $0x170] sm:$0xff] %v3003_v20  ;;  %v3107_v24 = vpack.c.bf16 %v3003_v20, %v2999_v10 }
 0x25a   : > { %3066 = vst [vmem:[%s5793_s29 + $0x168] sm:$0xff] %v3002_v21  ;;  %v3106_v25 = vpack.c.bf16 %v3002_v21, %v2998_v15  ;;  %3068 = vst [vmem:[%s5793_s29 + $0x178] sm:$0xff] %v3004_v22  ;;  %v3108_v26 = vpack.c.bf16 %v3004_v22, %v3000_v16  ;;  %v2486_v27 = vpop.f32.mrb[24].mxu0  ;;  %v2938_v28 = vpop.f32.mrb[24].mxu1  ;;  %v5918_v21 = vld [vmem:[%s6237_s4] ss:$0 sm:$0xff] }
 0x25b   : > { %v4445_v29 = vadd.f32 %v2486_v27, %v5776_v39  ;;  %v4477_v30 = vadd.f32 %v2938_v28, %v5778_v40  ;;  %v2488_v31 = vpop.f32.mrb[25].mxu0  ;;  %v2940_v32 = vpop.f32.mrb[25].mxu1 }
 0x25c   : > { %v4446_v33 = vadd.f32 %v2488_v31, %v5780_v41  ;;  %v4478_v34 = vadd.f32 %v2940_v32, %v5782_v42  ;;  %v2490_v35 = vpop.f32.mrb[26].mxu0  ;;  %v2942_v36 = vpop.f32.mrb[26].mxu1  ;;  %3452 = vmatprep.mubr.bf16.mxu0 %v3106_v25  ;;  %3549 = vmatprep.mubr.bf16.mxu1 %v3108_v26 }
 0x25d   : > { %v3005_v37 = vmax.f32 %v4445_v29, 0.0  ;;  %v3007_v38 = vmax.f32 %v4477_v30, 0.0  ;;  %v4447_v43 = vadd.f32 %v2490_v35, %v5776_v39  ;;  %v4479_v44 = vadd.f32 %v2942_v36, %v5778_v40  ;;  %v2492_v45 = vpop.f32.mrb[27].mxu0  ;;  %v2944_v46 = vpop.f32.mrb[27].mxu1  ;;  %3453 = vmatmul.mubr.bf16.gmra.mrb[52].mxu0 %v3105_v23  ;;  %3550 = vmatmul.mubr.bf16.gmra.mrb[52].mxu1 %v3107_v24 }
 0x25e   : > { %v3006_v47 = vmax.f32 %v4446_v33, 0.0  ;;  %v3008_v48 = vmax.f32 %v4478_v34, 0.0  ;;  %v4448_v49 = vadd.f32 %v2492_v45, %v5780_v41  ;;  %v4480_v50 = vadd.f32 %v2944_v46, %v5782_v42 }
 0x25f   : > { %3069 = vst [vmem:[%s5793_s29 + $0x180] sm:$0xff] %v3005_v37  ;;  %3071 = vst [vmem:[%s5793_s29 + $0x190] sm:$0xff] %v3007_v38  ;;  %v3009_v51 = vmax.f32 %v4447_v43, 0.0  ;;  %v3011_v52 = vmax.f32 %v4479_v44, 0.0 }
 0x260   : > { %3070 = vst [vmem:[%s5793_s29 + $0x188] sm:$0xff] %v3006_v47  ;;  %3072 = vst [vmem:[%s5793_s29 + $0x198] sm:$0xff] %v3008_v48  ;;  %v3010_v53 = vmax.f32 %v4448_v49, 0.0  ;;  %v3012_v54 = vmax.f32 %v4480_v50, 0.0 }
 0x261   : > { %3073 = vst [vmem:[%s5793_s29 + $0x1a0] sm:$0xff] %v3009_v51  ;;  %v3109_v55 = vpack.c.bf16 %v3009_v51, %v3005_v37  ;;  %3075 = vst [vmem:[%s5793_s29 + $0x1b0] sm:$0xff] %v3011_v52  ;;  %v3111_v56 = vpack.c.bf16 %v3011_v52, %v3007_v38 }
 0x262   : > { %3074 = vst [vmem:[%s5793_s29 + $0x1a8] sm:$0xff] %v3010_v53  ;;  %v3110_v57 = vpack.c.bf16 %v3010_v53, %v3006_v47  ;;  %3076 = vst [vmem:[%s5793_s29 + $0x1b8] sm:$0xff] %v3012_v54  ;;  %v3112_v58 = vpack.c.bf16 %v3012_v54, %v3008_v48  ;;  %v2496_v59 = vpop.f32.mrb[28].mxu0  ;;  %v2948_v60 = vpop.f32.mrb[28].mxu1 }
 0x263   : > { %v4449_v61 = vadd.f32 %v2496_v59, %v5776_v39  ;;  %v4481_v62 = vadd.f32 %v2948_v60, %v5778_v40  ;;  %v2498_v63 = vpop.f32.mrb[29].mxu0  ;;  %v2950_v0 = vpop.f32.mrb[29].mxu1 }
 0x264   : > { %v4450_v1 = vadd.f32 %v2498_v63, %v5780_v41  ;;  %v4482_v2 = vadd.f32 %v2950_v0, %v5782_v42  ;;  %v2500_v3 = vpop.f32.mrb[30].mxu0  ;;  %v2952_v4 = vpop.f32.mrb[30].mxu1  ;;  %3460 = vmatprep.mubr.bf16.mxu0 %v3110_v57  ;;  %3557 = vmatprep.mubr.bf16.mxu1 %v3112_v58 }
 0x265   : > { %v3013_v5 = vmax.f32 %v4449_v61, 0.0  ;;  %v3015_v6 = vmax.f32 %v4481_v62, 0.0  ;;  %v4451_v7 = vadd.f32 %v2500_v3, %v5776_v39  ;;  %v4483_v8 = vadd.f32 %v2952_v4, %v5778_v40  ;;  %v2502_v9 = vpop.f32.mrb[31].mxu0  ;;  %v2954_v10 = vpop.f32.mrb[31].mxu1  ;;  %3461 = vmatmul.mubr.bf16.gmra.mrb[56].mxu0 %v3109_v55  ;;  %3558 = vmatmul.mubr.bf16.gmra.mrb[56].mxu1 %v3111_v56 }
 0x266   : > { %v3014_v11 = vmax.f32 %v4450_v1, 0.0  ;;  %v3016_v12 = vmax.f32 %v4482_v2, 0.0  ;;  %v4452_v13 = vadd.f32 %v2502_v9, %v5780_v41  ;;  %v4484_v14 = vadd.f32 %v2954_v10, %v5782_v42 }
 0x267   : > { %3077 = vst [vmem:[%s5793_s29 + $0x1c0] sm:$0xff] %v3013_v5  ;;  %3079 = vst [vmem:[%s5793_s29 + $0x1d0] sm:$0xff] %v3015_v6  ;;  %v3017_v15 = vmax.f32 %v4451_v7, 0.0  ;;  %v3019_v39 = vmax.f32 %v4483_v8, 0.0 }
 0x268   : > { %3078 = vst [vmem:[%s5793_s29 + $0x1c8] sm:$0xff] %v3014_v11  ;;  %3080 = vst [vmem:[%s5793_s29 + $0x1d8] sm:$0xff] %v3016_v12  ;;  %v3018_v40 = vmax.f32 %v4452_v13, 0.0  ;;  %v3020_v16 = vmax.f32 %v4484_v14, 0.0 }
 0x269   : > { %3081 = vst [vmem:[%s5793_s29 + $0x1e0] sm:$0xff] %v3017_v15  ;;  %v3113_v17 = vpack.c.bf16 %v3017_v15, %v3013_v5  ;;  %3083 = vst [vmem:[%s5793_s29 + $0x1f0] sm:$0xff] %v3019_v39  ;;  %v3115_v18 = vpack.c.bf16 %v3019_v39, %v3015_v6 }
 0x26a   : > { %3082 = vst [vmem:[%s5793_s29 + $0x1e8] sm:$0xff] %v3018_v40  ;;  %v3114_v19 = vpack.c.bf16 %v3018_v40, %v3014_v11  ;;  %3084 = vst [vmem:[%s5793_s29 + $0x1f8] sm:$0xff] %v3020_v16  ;;  %v3116_v20 = vpack.c.bf16 %v3020_v16, %v3016_v12 }
 0x26c   : > { %3468 = vmatprep.mubr.bf16.mxu0 %v3114_v19  ;;  %3565 = vmatprep.mubr.bf16.mxu1 %v3116_v20 }
 0x26d   : > { %3469 = vmatmul.mubr.bf16.gmra.mrb[60].mxu0 %v3113_v17  ;;  %3566 = vmatmul.mubr.bf16.gmra.mrb[60].mxu1 %v3115_v18 }
 0x308   : > { %v4309_v41 = vpop.f32.mrb[32].mxu0  ;;  %v4373_v42 = vpop.f32.mrb[32].mxu1 }
 0x309   : > { %v4310_v22 = vpop.f32.mrb[33].mxu0  ;;  %v4374_v23 = vpop.f32.mrb[33].mxu1 }
 0x30a   : > { %v4311_v24 = vadd.f32 %v4310_v22, %v4309_v41  ;;  %v4375_v25 = vadd.f32 %v4374_v23, %v4373_v42  ;;  %v4312_v26 = vpop.f32.mrb[34].mxu0  ;;  %v4376_v27 = vpop.f32.mrb[34].mxu1 }
 0x30b   : > { %v4313_v28 = vpop.f32.mrb[35].mxu0  ;;  %v4377_v29 = vpop.f32.mrb[35].mxu1 }
 0x30c   : > { %v3415_v30 = vadd.f32 %v4311_v24, %v5918_v21  ;;  %v4314_v31 = vadd.f32 %v4313_v28, %v4312_v26  ;;  %v4378_v32 = vadd.f32 %v4377_v29, %v4376_v27 }
 0x30e   : > { %v5921_v33 = vadd.f32 %v4375_v25, %v3415_v30  ;;  %v3418_v34 = vadd.f32 %v4314_v31, %v5918_v21 }
 0x310   : > { %v5924_v35 = vadd.f32 %v4378_v32, %v3418_v34  ;;  %v4315_v36 = vpop.f32.mrb[36].mxu0  ;;  %v4379_v37 = vpop.f32.mrb[36].mxu1  ;;  %v3575_v38 = vsel %vm3574_vm0, %v5921_v33, -inf }
 0x311   : > { %v4316_v43 = vpop.f32.mrb[37].mxu0  ;;  %v4380_v44 = vpop.f32.mrb[37].mxu1  ;;  %3576 = vmax.xlane.f32.xlu0 %v3575_v38 }
 0x312   : > { %v4317_v45 = vadd.f32 %v4316_v43, %v4315_v36  ;;  %v4381_v46 = vadd.f32 %v4380_v44, %v4379_v37  ;;  %v4318_v47 = vpop.f32.mrb[38].mxu0  ;;  %v4382_v48 = vpop.f32.mrb[38].mxu1  ;;  %v3578_v54 = vsel %vm3574_vm0, %v5924_v35, -inf }
 0x313   : > { %v4319_v49 = vpop.f32.mrb[39].mxu0  ;;  %v4383_v50 = vpop.f32.mrb[39].mxu1 }
 0x314   : > { %v3423_v51 = vadd.f32 %v4317_v45, %v5918_v21  ;;  %v4320_v52 = vadd.f32 %v4319_v49, %v4318_v47  ;;  %v4384_v53 = vadd.f32 %v4383_v50, %v4382_v48 }
 0x315   : > { %3579 = vmax.xlane.f32.xlu0 %v3578_v54 }
 0x316   : > { %v5931_v55 = vadd.f32 %v4381_v46, %v3423_v51  ;;  %v3426_v56 = vadd.f32 %v4320_v52, %v5918_v21 }
 0x318   : > { %v5934_v57 = vadd.f32 %v4384_v53, %v3426_v56  ;;  %v4321_v58 = vpop.f32.mrb[40].mxu0  ;;  %v4385_v59 = vpop.f32.mrb[40].mxu1  ;;  %v3581_v60 = vsel %vm3574_vm0, %v5931_v55, -inf }
 0x319   : > { %v4322_v61 = vpop.f32.mrb[41].mxu0  ;;  %v4386_v62 = vpop.f32.mrb[41].mxu1  ;;  %3582 = vmax.xlane.f32.xlu1 %v3581_v60 }
 0x31a   : > { %v4323_v63 = vadd.f32 %v4322_v61, %v4321_v58  ;;  %v4387_v0 = vadd.f32 %v4386_v62, %v4385_v59  ;;  %v4324_v1 = vpop.f32.mrb[42].mxu0  ;;  %v4388_v2 = vpop.f32.mrb[42].mxu1  ;;  %v3584_v8 = vsel %vm3574_vm0, %v5934_v57, -inf }
 0x31b   : > { %v4325_v3 = vpop.f32.mrb[43].mxu0  ;;  %v4389_v4 = vpop.f32.mrb[43].mxu1 }
 0x31c   : > { %v3431_v5 = vadd.f32 %v4323_v63, %v5918_v21  ;;  %v4326_v6 = vadd.f32 %v4325_v3, %v4324_v1  ;;  %v4390_v7 = vadd.f32 %v4389_v4, %v4388_v2 }
 0x31d   : > { %3585 = vmax.xlane.f32.xlu1 %v3584_v8 }
 0x31e   : > { %v5941_v9 = vadd.f32 %v4387_v0, %v3431_v5  ;;  %v3434_v10 = vadd.f32 %v4326_v6, %v5918_v21 }
 0x320   : > { %v5944_v11 = vadd.f32 %v4390_v7, %v3434_v10  ;;  %v4327_v12 = vpop.f32.mrb[44].mxu0  ;;  %v4391_v13 = vpop.f32.mrb[44].mxu1  ;;  %v3587_v14 = vsel %vm3574_vm0, %v5941_v9, -inf }
 0x321   : > { %v4328_v15 = vpop.f32.mrb[45].mxu0  ;;  %v4392_v39 = vpop.f32.mrb[45].mxu1  ;;  %3588 = vmax.xlane.f32.xlu0 %v3587_v14 }
 0x322   : > { %v4329_v40 = vadd.f32 %v4328_v15, %v4327_v12  ;;  %v4393_v16 = vadd.f32 %v4392_v39, %v4391_v13  ;;  %v4330_v17 = vpop.f32.mrb[46].mxu0  ;;  %v4394_v18 = vpop.f32.mrb[46].mxu1  ;;  %v3590_v19 = vsel %vm3574_vm0, %v5944_v11, -inf }
 0x323   : > { %v4331_v20 = vpop.f32.mrb[47].mxu0  ;;  %v4395_v41 = vpop.f32.mrb[47].mxu1  ;;  %3591 = vmax.xlane.f32.xlu1 %v3590_v19 }
 0x324   : > { %v3439_v42 = vadd.f32 %v4329_v40, %v5918_v21  ;;  %v4332_v22 = vadd.f32 %v4331_v20, %v4330_v17  ;;  %v4396_v23 = vadd.f32 %v4395_v41, %v4394_v18 }
 0x326   : > { %v5951_v24 = vadd.f32 %v4393_v16, %v3439_v42  ;;  %v3442_v25 = vadd.f32 %v4332_v22, %v5918_v21 }
 0x328   : > { %v5954_v26 = vadd.f32 %v4396_v23, %v3442_v25  ;;  %v4333_v27 = vpop.f32.mrb[48].mxu0  ;;  %v4397_v28 = vpop.f32.mrb[48].mxu1  ;;  %v3593_v29 = vsel %vm3574_vm0, %v5951_v24, -inf }
 0x329   : > { %v4334_v30 = vpop.f32.mrb[49].mxu0  ;;  %v4398_v31 = vpop.f32.mrb[49].mxu1  ;;  %3594 = vmax.xlane.f32.xlu0 %v3593_v29 }
 0x32a   : > { %v4335_v32 = vadd.f32 %v4334_v30, %v4333_v27  ;;  %v4399_v34 = vadd.f32 %v4398_v31, %v4397_v28  ;;  %v4336_v36 = vpop.f32.mrb[50].mxu0  ;;  %v4400_v37 = vpop.f32.mrb[50].mxu1  ;;  %v3596_v38 = vsel %vm3574_vm0, %v5954_v26, -inf }
 0x32b   : > { %v4337_v43 = vpop.f32.mrb[51].mxu0  ;;  %v4401_v44 = vpop.f32.mrb[51].mxu1  ;;  %3597 = vmax.xlane.f32.xlu1 %v3596_v38 }
 0x32c   : > { %v3447_v45 = vadd.f32 %v4335_v32, %v5918_v21  ;;  %v4338_v46 = vadd.f32 %v4337_v43, %v4336_v36  ;;  %v4402_v47 = vadd.f32 %v4401_v44, %v4400_v37 }
 0x32e   : > { %v5961_v48 = vadd.f32 %v4399_v34, %v3447_v45  ;;  %v3450_v49 = vadd.f32 %v4338_v46, %v5918_v21 }
 0x330   : > { %v5964_v50 = vadd.f32 %v4402_v47, %v3450_v49  ;;  %v4339_v51 = vpop.f32.mrb[52].mxu0  ;;  %v4403_v52 = vpop.f32.mrb[52].mxu1  ;;  %v3599_v53 = vsel %vm3574_vm0, %v5961_v48, -inf }
 0x331   : > { %v4340_v54 = vpop.f32.mrb[53].mxu0  ;;  %v4404_v56 = vpop.f32.mrb[53].mxu1  ;;  %3600 = vmax.xlane.f32.xlu0 %v3599_v53 }
 0x332   : > { %v4341_v58 = vadd.f32 %v4340_v54, %v4339_v51  ;;  %v4405_v59 = vadd.f32 %v4404_v56, %v4403_v52  ;;  %v4342_v60 = vpop.f32.mrb[54].mxu0  ;;  %v4406_v61 = vpop.f32.mrb[54].mxu1  ;;  %v3602_v62 = vsel %vm3574_vm0, %v5964_v50, -inf }
 0x333   : > { %v4343_v63 = vpop.f32.mrb[55].mxu0  ;;  %v4407_v0 = vpop.f32.mrb[55].mxu1  ;;  %3603 = vmax.xlane.f32.xlu1 %v3602_v62 }
 0x334   : > { %v3455_v1 = vadd.f32 %v4341_v58, %v5918_v21  ;;  %v4344_v2 = vadd.f32 %v4343_v63, %v4342_v60  ;;  %v4408_v3 = vadd.f32 %v4407_v0, %v4406_v61 }
 0x336   : > { %v5971_v4 = vadd.f32 %v4405_v59, %v3455_v1  ;;  %v3458_v5 = vadd.f32 %v4344_v2, %v5918_v21 }
 0x338   : > { %v5974_v6 = vadd.f32 %v4408_v3, %v3458_v5  ;;  %v4345_v7 = vpop.f32.mrb[56].mxu0  ;;  %v4409_v8 = vpop.f32.mrb[56].mxu1  ;;  %v3605_v10 = vsel %vm3574_vm0, %v5971_v4, -inf }
 0x339   : > { %v4346_v12 = vpop.f32.mrb[57].mxu0  ;;  %v4410_v13 = vpop.f32.mrb[57].mxu1  ;;  %3606 = vmax.xlane.f32.xlu0 %v3605_v10 }
 0x33a   : > { %v4347_v14 = vadd.f32 %v4346_v12, %v4345_v7  ;;  %v4411_v15 = vadd.f32 %v4410_v13, %v4409_v8  ;;  %v4348_v39 = vpop.f32.mrb[58].mxu0  ;;  %v4412_v40 = vpop.f32.mrb[58].mxu1  ;;  %v3608_v16 = vsel %vm3574_vm0, %v5974_v6, -inf }
 0x33b   : > { %v4349_v17 = vpop.f32.mrb[59].mxu0  ;;  %v4413_v18 = vpop.f32.mrb[59].mxu1  ;;  %3609 = vmax.xlane.f32.xlu1 %v3608_v16 }
 0x33c   : > { %v3463_v19 = vadd.f32 %v4347_v14, %v5918_v21  ;;  %v4350_v20 = vadd.f32 %v4349_v17, %v4348_v39  ;;  %v4414_v41 = vadd.f32 %v4413_v18, %v4412_v40 }
 0x33e   : > { %v5981_v42 = vadd.f32 %v4411_v15, %v3463_v19  ;;  %v3466_v22 = vadd.f32 %v4350_v20, %v5918_v21 }
 0x340   : > { %v5984_v23 = vadd.f32 %v4414_v41, %v3466_v22  ;;  %v4351_v25 = vpop.f32.mrb[60].mxu0  ;;  %v4415_v27 = vpop.f32.mrb[60].mxu1  ;;  %v3611_v28 = vsel %vm3574_vm0, %v5981_v42, -inf }
 0x341   : > { %v4352_v29 = vpop.f32.mrb[61].mxu0  ;;  %v4416_v30 = vpop.f32.mrb[61].mxu1  ;;  %3612 = vmax.xlane.f32.xlu0 %v3611_v28 }
 0x342   : > { %v4353_v31 = vadd.f32 %v4352_v29, %v4351_v25  ;;  %v4417_v32 = vadd.f32 %v4416_v30, %v4415_v27  ;;  %v4354_v34 = vpop.f32.mrb[62].mxu0  ;;  %v4418_v36 = vpop.f32.mrb[62].mxu1  ;;  %v3614_v37 = vsel %vm3574_vm0, %v5984_v23, -inf }
 0x343   : > { %v4355_v38 = vpop.f32.mrb[63].mxu0  ;;  %v4419_v43 = vpop.f32.mrb[63].mxu1  ;;  %3615 = vmax.xlane.f32.xlu1 %v3614_v37 }
 0x344   : > { %v3471_v44 = vadd.f32 %v4353_v31, %v5918_v21  ;;  %v4356_v45 = vadd.f32 %v4355_v38, %v4354_v34  ;;  %v4420_v46 = vadd.f32 %v4419_v43, %v4418_v36 }
 0x346   : > { %v5991_v47 = vadd.f32 %v4417_v32, %v3471_v44  ;;  %v3474_v49 = vadd.f32 %v4356_v45, %v5918_v21 }
 0x348   : > { %v5994_v51 = vadd.f32 %v4420_v46, %v3474_v49  ;;  %v3617_v52 = vsel %vm3574_vm0, %v5991_v47, -inf }
 0x349   : > { %3618 = vmax.xlane.f32.xlu0 %v3617_v52 }
 0x34a   : > { %v3620_v53 = vsel %vm3574_vm0, %v5994_v51, -inf }
 0x34b   : > { %3621 = vmax.xlane.f32.xlu1 %v3620_v53 }
 0x39e   : > { %v3577_v54 = vpop.xlane.xlu0 %3576 }
 0x39f   : > { %v3623_v56 = vsub.f32 %v5921_v33, %v3577_v54 }
 0x3a1   : > { %v3639_v58 = vmul.f32 1.442695, %v3623_v56 }
 0x3a2   : > { %v3580_v59 = vpop.xlane.xlu0 %3579 }
 0x3a3   : > { %5157 = vpow2.f32 %v3639_v58  ;;  %v3624_v60 = vsub.f32 %v5924_v35, %v3580_v59 }
 0x3a5   : > { %v3641_v61 = vmul.f32 1.442695, %v3624_v60 }
 0x3a6   : > { %v3583_v21 = vpop.xlane.xlu1 %3582 }
 0x3a7   : > { %5159 = vpow2.f32 %v3641_v61  ;;  %v3625_v62 = vsub.f32 %v5931_v55, %v3583_v21 }
 0x3a9   : > { %v3643_v63 = vmul.f32 1.442695, %v3625_v62 }
 0x3aa   : > { %v3586_v0 = vpop.xlane.xlu1 %3585 }
 0x3ab   : > { %5161 = vpow2.f32 %v3643_v63  ;;  %v3626_v1 = vsub.f32 %v5934_v57, %v3586_v0 }
 0x3ad   : > { %v6004_v2 = vpop.eup %5157  ;;  %v3645_v3 = vmul.f32 1.442695, %v3626_v1 }
 0x3ae   : > { %v3589_v5 = vpop.xlane.xlu0 %3588  ;;  %v3671_v7 = vsel %vm3574_vm0, %v6004_v2, 0.0 }
 0x3af   : > { %5163 = vpow2.f32 %v3645_v3  ;;  %v3627_v8 = vsub.f32 %v5941_v9, %v3589_v5  ;;  %3672 = vadd.xlane.f32.xlu0 %v3671_v7 }
 0x3b0   : > { %v3592_v10 = vpop.xlane.xlu1 %3591 }
 0x3b1   : > { %v6009_v12 = vpop.eup %5159  ;;  %v3647_v13 = vmul.f32 1.442695, %v3627_v8  ;;  %v3628_v14 = vsub.f32 %v5944_v11, %v3592_v10 }
 0x3b2   : > { %v3674_v15 = vsel %vm3574_vm0, %v6009_v12, 0.0 }
 0x3b3   : > { %5165 = vpow2.f32 %v3647_v13  ;;  %v3649_v39 = vmul.f32 1.442695, %v3628_v14  ;;  %3675 = vadd.xlane.f32.xlu1 %v3674_v15 }
 0x3b5   : > { %v6014_v40 = vpop.eup %5161  ;;  %5167 = vpow2.f32 %v3649_v39 }
 0x3b6   : > { %v3595_v16 = vpop.xlane.xlu0 %3594  ;;  %v3677_v17 = vsel %vm3574_vm0, %v6014_v40, 0.0 }
 0x3b7   : > { %v3629_v18 = vsub.f32 %v5951_v24, %v3595_v16  ;;  %3678 = vadd.xlane.f32.xlu0 %v3677_v17 }
 0x3b8   : > { %v3598_v19 = vpop.xlane.xlu1 %3597 }
 0x3b9   : > { %v6019_v20 = vpop.eup %5163  ;;  %v3651_v41 = vmul.f32 1.442695, %v3629_v18  ;;  %v3630_v22 = vsub.f32 %v5954_v26, %v3598_v19 }
 0x3ba   : > { %v3680_v25 = vsel %vm3574_vm0, %v6019_v20, 0.0 }
 0x3bb   : > { %5169 = vpow2.f32 %v3651_v41  ;;  %v3653_v27 = vmul.f32 1.442695, %v3630_v22  ;;  %3681 = vadd.xlane.f32.xlu1 %v3680_v25 }
 0x3bd   : > { %v6024_v28 = vpop.eup %5165  ;;  %5171 = vpow2.f32 %v3653_v27 }
 0x3be   : > { %v3601_v29 = vpop.xlane.xlu0 %3600  ;;  %v3683_v30 = vsel %vm3574_vm0, %v6024_v28, 0.0 }
 0x3bf   : > { %v6028_v31 = vpop.eup %5167  ;;  %v3631_v32 = vsub.f32 %v5961_v48, %v3601_v29  ;;  %3684 = vadd.xlane.f32.xlu0 %v3683_v30 }
 0x3c0   : > { %v3604_v34 = vpop.xlane.xlu1 %3603  ;;  %v3686_v36 = vsel %vm3574_vm0, %v6028_v31, 0.0 }
 0x3c1   : > { %v3655_v37 = vmul.f32 1.442695, %v3631_v32  ;;  %v3632_v38 = vsub.f32 %v5964_v50, %v3604_v34  ;;  %3687 = vadd.xlane.f32.xlu1 %v3686_v36 }
 0x3c3   : > { %5173 = vpow2.f32 %v3655_v37  ;;  %v3657_v43 = vmul.f32 1.442695, %v3632_v38 }
 0x3c5   : > { %v6034_v44 = vpop.eup %5169  ;;  %5175 = vpow2.f32 %v3657_v43 }
 0x3c6   : > { %v3607_v45 = vpop.xlane.xlu0 %3606  ;;  %v3689_v46 = vsel %vm3574_vm0, %v6034_v44, 0.0 }
 0x3c7   : > { %v6038_v49 = vpop.eup %5171  ;;  %v3633_v52 = vsub.f32 %v5971_v4, %v3607_v45  ;;  %3690 = vadd.xlane.f32.xlu0 %v3689_v46 }
 0x3c8   : > { %v3610_v53 = vpop.xlane.xlu1 %3609  ;;  %v3692_v54 = vsel %vm3574_vm0, %v6038_v49, 0.0 }
 0x3c9   : > { %v3659_v56 = vmul.f32 1.442695, %v3633_v52  ;;  %v3634_v58 = vsub.f32 %v5974_v6, %v3610_v53  ;;  %3693 = vadd.xlane.f32.xlu1 %v3692_v54 }
 0x3cb   : > { %5177 = vpow2.f32 %v3659_v56  ;;  %v3661_v59 = vmul.f32 1.442695, %v3634_v58 }
 0x3cd   : > { %v6044_v60 = vpop.eup %5173  ;;  %5179 = vpow2.f32 %v3661_v59 }
 0x3ce   : > { %v3613_v61 = vpop.xlane.xlu0 %3612  ;;  %v3695_v21 = vsel %vm3574_vm0, %v6044_v60, 0.0 }
 0x3cf   : > { %v6048_v62 = vpop.eup %5175  ;;  %v3635_v63 = vsub.f32 %v5981_v42, %v3613_v61  ;;  %3696 = vadd.xlane.f32.xlu0 %v3695_v21 }
 0x3d0   : > { %v3616_v0 = vpop.xlane.xlu1 %3615  ;;  %v3698_v1 = vsel %vm3574_vm0, %v6048_v62, 0.0 }
 0x3d1   : > { %v3663_v3 = vmul.f32 1.442695, %v3635_v63  ;;  %v3636_v5 = vsub.f32 %v5984_v23, %v3616_v0  ;;  %3699 = vadd.xlane.f32.xlu1 %v3698_v1 }
 0x3d3   : > { %5181 = vpow2.f32 %v3663_v3  ;;  %v3665_v7 = vmul.f32 1.442695, %v3636_v5 }
 0x3d5   : > { %v6054_v8 = vpop.eup %5177  ;;  %5183 = vpow2.f32 %v3665_v7 }
 0x3d6   : > { %v3619_v10 = vpop.xlane.xlu0 %3618  ;;  %v3701_v13 = vsel %vm3574_vm0, %v6054_v8, 0.0 }
 0x3d7   : > { %v6058_v14 = vpop.eup %5179  ;;  %v3637_v15 = vsub.f32 %v5991_v47, %v3619_v10  ;;  %3702 = vadd.xlane.f32.xlu0 %v3701_v13 }
 0x3d8   : > { %v3622_v39 = vpop.xlane.xlu1 %3621  ;;  %v3704_v16 = vsel %vm3574_vm0, %v6058_v14, 0.0 }
 0x3d9   : > { %v3667_v17 = vmul.f32 1.442695, %v3637_v15  ;;  %v3638_v18 = vsub.f32 %v5994_v51, %v3622_v39  ;;  %3705 = vadd.xlane.f32.xlu1 %v3704_v16 }
 0x3db   : > { %5185 = vpow2.f32 %v3667_v17  ;;  %v3669_v19 = vmul.f32 1.442695, %v3638_v18 }
 0x3dd   : > { %v6064_v41 = vpop.eup %5181  ;;  %5187 = vpow2.f32 %v3669_v19 }
 0x3de   : > { %v3707_v22 = vsel %vm3574_vm0, %v6064_v41, 0.0 }
 0x3df   : > { %v6068_v25 = vpop.eup %5183  ;;  %3708 = vadd.xlane.f32.xlu0 %v3707_v22 }
 0x3e0   : > { %v3710_v27 = vsel %vm3574_vm0, %v6068_v25, 0.0 }
 0x3e1   : > { %3711 = vadd.xlane.f32.xlu1 %v3710_v27 }
 0x3e5   : > { %v6072_v29 = vpop.eup %5185 }
 0x3e6   : > { %v3713_v30 = vsel %vm3574_vm0, %v6072_v29, 0.0 }
 0x3e7   : > { %v6076_v32 = vpop.eup %5187  ;;  %3714 = vadd.xlane.f32.xlu0 %v3713_v30 }
 0x3e8   : > { %v3716_v34 = vsel %vm3574_vm0, %v6076_v32, 0.0 }
 0x3e9   : > { %3717 = vadd.xlane.f32.xlu1 %v3716_v34 }
 0x43c   : > { %v3673_v36 = vpop.xlane.xlu0 %3672 }
 0x43d   : > { %5189 = vrcp.f32 %v3673_v36 }
 0x440   : > { %v3676_v37 = vpop.xlane.xlu1 %3675 }
 0x441   : > { %5191 = vrcp.f32 %v3676_v37 }
 0x444   : > { %v3679_v38 = vpop.xlane.xlu0 %3678 }
 0x445   : > { %5193 = vrcp.f32 %v3679_v38 }
 0x447   : > { %v5190_v43 = vpop.eup %5189 }
 0x448   : > { %v3682_v45 = vpop.xlane.xlu1 %3681  ;;  %v3720_v46 = vmul.f32 %v5190_v43, %v6004_v2 }
 0x449   : > { %5195 = vrcp.f32 %v3682_v45 }
 0x44a   : > { %3767 = vrot.lane.b32.xlu0 %v3720_v46, %s5357_s11 }
 0x44b   : > { %v5192_v52 = vpop.eup %5191 }
 0x44c   : > { %v3685_v53 = vpop.xlane.xlu0 %3684  ;;  %v3722_v54 = vmul.f32 %v5192_v52, %v6009_v12 }
 0x44d   : > { %5197 = vrcp.f32 %v3685_v53 }
 0x44e   : > { %3769 = vrot.lane.b32.xlu1 %v3722_v54, %s5357_s11  ;;  %v3688_v56 = vpop.xlane.xlu1 %3687 }
 0x44f   : > { %v5194_v58 = vpop.eup %5193  ;;  %5199 = vrcp.f32 %v3688_v56 }
 0x450   : > { %v3724_v59 = vmul.f32 %v5194_v58, %v6014_v40 }
 0x452   : > { %3771 = vrot.lane.b32.xlu1 %v3724_v59, %s5357_s11 }
 0x453   : > { %v5196_v61 = vpop.eup %5195 }
 0x454   : > { %v3691_v2 = vpop.xlane.xlu0 %3690  ;;  %v3726_v21 = vmul.f32 %v5196_v61, %v6019_v20 }
 0x455   : > { %5201 = vrcp.f32 %v3691_v2 }
 0x456   : > { %v3694_v63 = vpop.xlane.xlu1 %3693  ;;  %3773 = vrot.lane.b32.xlu1 %v3726_v21, %s5357_s11 }
 0x457   : > { %v5198_v0 = vpop.eup %5197  ;;  %5203 = vrcp.f32 %v3694_v63 }
 0x458   : > { %v3728_v12 = vmul.f32 %v5198_v0, %v6024_v28 }
 0x459   : > { %v5200_v1 = vpop.eup %5199 }
 0x45a   : > { %3775 = vrot.lane.b32.xlu0 %v3728_v12, %s5357_s11  ;;  %v3730_v3 = vmul.f32 %v5200_v1, %v6028_v31 }
 0x45c   : > { %3777 = vrot.lane.b32.xlu1 %v3730_v3, %s5357_s11  ;;  %v3697_v40 = vpop.xlane.xlu0 %3696 }
 0x45d   : > { %5205 = vrcp.f32 %v3697_v40 }
 0x45e   : > { %v3700_v5 = vpop.xlane.xlu1 %3699 }
 0x45f   : > { %v5202_v7 = vpop.eup %5201  ;;  %5207 = vrcp.f32 %v3700_v5 }
 0x460   : > { %v3732_v20 = vmul.f32 %v5202_v7, %v6034_v44 }
 0x461   : > { %v5204_v10 = vpop.eup %5203 }
 0x462   : > { %3779 = vrot.lane.b32.xlu0 %v3732_v20, %s5357_s11  ;;  %v3734_v13 = vmul.f32 %v5204_v10, %v6038_v49 }
 0x464   : > { %3781 = vrot.lane.b32.xlu1 %v3734_v13, %s5357_s11  ;;  %v3703_v28 = vpop.xlane.xlu0 %3702 }
 0x465   : > { %5209 = vrcp.f32 %v3703_v28 }
 0x466   : > { %v3706_v15 = vpop.xlane.xlu1 %3705 }
 0x467   : > { %v5206_v31 = vpop.eup %5205  ;;  %5211 = vrcp.f32 %v3706_v15 }
 0x468   : > { %v3736_v39 = vmul.f32 %v5206_v31, %v6044_v60 }
 0x469   : > { %v5208_v16 = vpop.eup %5207 }
 0x46a   : > { %3783 = vrot.lane.b32.xlu0 %v3736_v39, %s5357_s11  ;;  %v3738_v44 = vmul.f32 %v5208_v16, %v6048_v62 }
 0x46c   : > { %3785 = vrot.lane.b32.xlu1 %v3738_v44, %s5357_s11  ;;  %v3709_v17 = vpop.xlane.xlu0 %3708 }
 0x46d   : > { %5213 = vrcp.f32 %v3709_v17 }
 0x46e   : > { %v3712_v49 = vpop.xlane.xlu1 %3711 }
 0x46f   : > { %v5210_v18 = vpop.eup %5209  ;;  %5215 = vrcp.f32 %v3712_v49 }
 0x470   : > { %v3740_v19 = vmul.f32 %v5210_v18, %v6054_v8 }
 0x471   : > { %v5212_v22 = vpop.eup %5211 }
 0x472   : > { %3787 = vrot.lane.b32.xlu0 %v3740_v19, %s5357_s11  ;;  %v3742_v60 = vmul.f32 %v5212_v22, %v6058_v14 }
 0x474   : > { %3789 = vrot.lane.b32.xlu1 %v3742_v60, %s5357_s11  ;;  %v3715_v27 = vpop.xlane.xlu0 %3714 }
 0x475   : > { %5217 = vrcp.f32 %v3715_v27 }
 0x476   : > { %v3718_v62 = vpop.xlane.xlu1 %3717 }
 0x477   : > { %v5214_v30 = vpop.eup %5213  ;;  %5219 = vrcp.f32 %v3718_v62 }
 0x478   : > { %v3744_v8 = vmul.f32 %v5214_v30, %v6064_v41 }
 0x479   : > { %v5216_v14 = vpop.eup %5215 }
 0x47a   : > { %3791 = vrot.lane.b32.xlu0 %v3744_v8, %s5357_s11  ;;  %v3746_v34 = vmul.f32 %v5216_v14, %v6068_v25 }
 0x47b   : > { %5292 = shalt.err (!%p5289_p7)
}
 0x47c   : > { %s5293_s29 = scalar_lea.hbm %s6109_s26, 8192  ;;  %s5297_s20 = scalar_lea.hbm %s6239_s6, 16384 }
 0x47d   : > { %p5294_p9 = scmp.ne.s32.totalorder %s6109_s26, %s5293_s29  ;;  %p5298_p5 = scmp.lt.u32.totalorder %s6109_s26, %s6239_s6 }
 0x47e   : > { %p5299_p11 = scmp.lt.u32.totalorder %s5297_s20, %s5293_s29  ;;  %p5301_p4 = scmp.lt.u32.totalorder %s5293_s29, %s6109_s26 }
 0x47f   : > { %p5295_p2 = pnand %p5294_p9, %p5487_p12 }
 0x480   : > { %p5300_p1 = por %p5299_p11, %p5298_p5 }
 0x481   : > { %p5296_p0 = pneg %p5295_p2 }
 0x482   : > { %p5302_p6 = por %p5301_p4, %p5300_p1 }
 0x484   : > { %p5303_p8 = pnand %p5302_p6, %p5296_p0 }
 0x486   : > { %5306 = shalt.err (!%p5303_p8)
}
 0x487   : > { %s5359_s17 = smov 512   ;;  %s5360_s15 = smov 32   ;;  %3793 = vrot.lane.b32.xlu1 %v3746_v34, %s5357_s11  ;;  %v5218_v41 = vpop.eup %5217  ;;  %vm3831_vm1 = vcmask 64512  }
 0x488   : > { %4683 = dma.vmem_to_hbm [thread:$0]  (%p5487_p12), %s6112_s18, 8192, %s6109_s26, %s3854_s12, %s5359_s17, %s5359_s17, %s5360_s15   ;;  %v3748_v25 = vmul.f32 %v5218_v41, %v6072_v29  ;;  %v5220_v36 = vpop.eup %5219 }
 0x489   : > { %v3750_v37 = vmul.f32 %v5220_v36, %v6076_v32  ;;  %s3992_s8 = sshll.u32 %s5417_s25, 4 }
 0x48a   : > { %3795 = vrot.lane.b32.xlu0 %v3748_v25, %s5357_s11  ;;  %p296_p10 = scmp.lt.s32.totalorder %s3992_s8, 31 }
 0x48b   : > { %3797 = vrot.lane.b32.xlu1 %v3750_v37, %s5357_s11 }
 0x48c   : > { %s6261_s8 = smov (!%p296_p10, %s3992_s8), 31 }
 0x48d   : > { %s3993_s27 = sshll.u32 %s6261_s8, 3 }
 0x48e   : > { %s6149_s16 = scalar_lea.vmem %s6238_s5, %s3993_s27 }
 0x4bc   : > { %v3768_v29 = vpop.permute.xlu0 %3767 }
 0x4bd   : > { %v3815_v32 = vsel %vm3574_vm0, %v5921_v33, %v3768_v29 }
 0x4be   : > { %3832 = vst.msk [vmem:[%s6149_s16] sm:$0xff] %vm3831_vm1, %v3815_v32 }
 0x4c0   : > { %v3770_v38 = vpop.permute.xlu1 %3769 }
 0x4c1   : > { %v3816_v43 = vsel %vm3574_vm0, %v5924_v35, %v3770_v38 }
 0x4c2   : > { %3833 = vst.msk [vmem:[%s6149_s16 + $0x8] sm:$0xff] %vm3831_vm1, %v3816_v43 }
 0x4c4   : > { %v3772_v45 = vpop.permute.xlu1 %3771 }
 0x4c5   : > { %v3817_v46 = vsel %vm3574_vm0, %v5931_v55, %v3772_v45 }
 0x4c6   : > { %3834 = vst.msk [vmem:[%s6149_s16 + $0x10] sm:$0xff] %vm3831_vm1, %v3817_v46 }
 0x4c8   : > { %v3774_v52 = vpop.permute.xlu1 %3773 }
 0x4c9   : > { %v3818_v33 = vsel %vm3574_vm0, %v5934_v57, %v3774_v52 }
 0x4ca   : > { %3835 = vst.msk [vmem:[%s6149_s16 + $0x18] sm:$0xff] %vm3831_vm1, %v3818_v33 }
 0x4cc   : > { %v3776_v53 = vpop.permute.xlu0 %3775 }
 0x4cd   : > { %v3819_v35 = vsel %vm3574_vm0, %v5941_v9, %v3776_v53 }
 0x4ce   : > { %3836 = vst.msk [vmem:[%s6149_s16 + $0x20] sm:$0xff] %vm3831_vm1, %v3819_v35  ;;  %v3778_v54 = vpop.permute.xlu1 %3777 }
 0x4cf   : > { %v3820_v55 = vsel %vm3574_vm0, %v5944_v11, %v3778_v54 }
 0x4d0   : > { %3837 = vst.msk [vmem:[%s6149_s16 + $0x28] sm:$0xff] %vm3831_vm1, %v3820_v55 }
 0x4d4   : > { %v3780_v56 = vpop.permute.xlu0 %3779 }
 0x4d5   : > { %v3821_v57 = vsel %vm3574_vm0, %v5951_v24, %v3780_v56 }
 0x4d6   : > { %3838 = vst.msk [vmem:[%s6149_s16 + $0x30] sm:$0xff] %vm3831_vm1, %v3821_v57  ;;  %v3782_v58 = vpop.permute.xlu1 %3781 }
 0x4d7   : > { %v3822_v9 = vsel %vm3574_vm0, %v5954_v26, %v3782_v58 }
 0x4d8   : > { %3839 = vst.msk [vmem:[%s6149_s16 + $0x38] sm:$0xff] %vm3831_vm1, %v3822_v9 }
 0x4dc   : > { %v3784_v59 = vpop.permute.xlu0 %3783 }
 0x4dd   : > { %v3823_v11 = vsel %vm3574_vm0, %v5961_v48, %v3784_v59 }
 0x4de   : > { %3840 = vst.msk [vmem:[%s6149_s16 + $0x40] sm:$0xff] %vm3831_vm1, %v3823_v11  ;;  %v3786_v61 = vpop.permute.xlu1 %3785 }
 0x4df   : > { %v3824_v24 = vsel %vm3574_vm0, %v5964_v50, %v3786_v61 }
 0x4e0   : > { %3841 = vst.msk [vmem:[%s6149_s16 + $0x48] sm:$0xff] %vm3831_vm1, %v3824_v24 }
 0x4e4   : > { %v3788_v2 = vpop.permute.xlu0 %3787 }
 0x4e5   : > { %v3825_v26 = vsel %vm3574_vm0, %v5971_v4, %v3788_v2 }
 0x4e6   : > { %3842 = vst.msk [vmem:[%s6149_s16 + $0x50] sm:$0xff] %vm3831_vm1, %v3825_v26  ;;  %v3790_v21 = vpop.permute.xlu1 %3789 }
 0x4e7   : > { %v3826_v48 = vsel %vm3574_vm0, %v5974_v6, %v3790_v21 }
 0x4e8   : > { %3843 = vst.msk [vmem:[%s6149_s16 + $0x58] sm:$0xff] %vm3831_vm1, %v3826_v48 }
 0x4ec   : > { %v3792_v63 = vpop.permute.xlu0 %3791 }
 0x4ed   : > { %v3827_v50 = vsel %vm3574_vm0, %v5981_v42, %v3792_v63 }
 0x4ee   : > { %3844 = vst.msk [vmem:[%s6149_s16 + $0x60] sm:$0xff] %vm3831_vm1, %v3827_v50 }
 0x4f9   : > { %v3794_v0 = vpop.permute.xlu1 %3793 }
 0x4fa   : > { %v3828_v12 = vsel %vm3574_vm0, %v5984_v23, %v3794_v0 }
 0x4fb   : > { %3845 = vst.msk [vmem:[%s6149_s16 + $0x68] sm:$0xff] %vm3831_vm1, %v3828_v12 }
 0x4fc   : > { %v3796_v4 = vpop.permute.xlu0 %3795 }
 0x4fd   : > { %v3829_v1 = vsel %vm3574_vm0, %v5991_v47, %v3796_v4  ;;  %v3798_v6 = vpop.permute.xlu1 %3797 }
 0x4fe   : > { %3846 = vst.msk [vmem:[%s6149_s16 + $0x70] sm:$0xff] %vm3831_vm1, %v3829_v1  ;;  %v3830_v3 = vsel %vm3574_vm0, %v5994_v51, %v3798_v6 }
 0x4ff   : > { %3847 = vst.msk [vmem:[%s6149_s16 + $0x78] sm:$0xff] %vm3831_vm1, %v3830_v3 }
 0x500 PF: > { %s3895_s25 = sand.u32 1, %s5337_s21   ;;  %p6254_p12 = scmp.ne.s32.totalorder %s6244_s28, 0 }
 0x501   : > { %p6255_p13 = scmp.ge.s32.totalorder %s5349_s24, 2  ;;  %s3896_s11 = scalar_lea.sflag [#allocation4], %s3895_s25 }
 0x503   : > { %p4694_p3 = pnand %p6255_p13, %p6254_p12 }
 0x505   : > { %5332 = dma.done.wait (!%p4694_p3), %s3896_s11, 8192  }
 0x506   : > { %5334 = vsyncadd (!%p4694_p3), %s3896_s11, 4294959104  ;;  %p21_p7 = scmp.ge.s32.totalorder %s5452_s9, 4   ;;  %s6256_s21 = smov %s5341_s22 }
 0x507   : > { %s6257_s22 = smov %s5345_s23  ;;  %s6258_s23 = smov %s5483_s13 }
 0x508   : > { %s6259_s24 = smov %s5452_s9  ;;  %23 = sbr.rel (!%p21_p7) target bundleno = 6 (0x6), region = 101 }
 0x50f   :  { %3901 = vsyncpa [#allocation3], 1 }
 0x510   :  { %3903 = vsyncpa [#allocation3 + $0x1], 1 }
 0x511   :  { %3904 = vsyncpa [#allocation6], 1 }
 0x512   :  { %3905 = vsyncpa [#allocation4], 1 }
 0x513   :  { %3907 = vsyncpa [#allocation4 + $0x1], 1 }

// kernel: tpu_custom_call.1
= control target key start
LH: loop header
LB: loop body
LE: loop exit
PB: predicated region body
PF: predicated region fallthrough
CT: control target
= control target key end

     0   :  { %12 = vsyncpa [#allocation3], 0  ;;  %s6233_s0 = inlined_call_operand.hbm [shape: f32[256,1024], index: 0, kind: input, shape index: {}]   ;;  %s6234_s1 = inlined_call_operand.hbm [shape: bf16[1024,512], index: 1, kind: input, shape index: {}]   ;;  %s6235_s2 = inlined_call_operand.vmem [shape: f32[1,512], index: 2, kind: input, shape index: {}]   ;;  %s6236_s3 = inlined_call_operand.vmem [shape: bf16[512,4], index: 3, kind: input, shape index: {}]   ;;  %s6237_s4 = inlined_call_operand.vmem [shape: f32[1,4], index: 4, kind: input, shape index: {}]   ;;  %s6238_s5 = inlined_call_operand.vmem [shape: f32[256,8], index: 5, kind: output, shape index: {0}]   ;;  %s6239_s6 = inlined_call_operand.hbm [shape: f32[256,512], index: 6, kind: output, shape index: {1}]  }
   0x1   :  { %14 = vsyncpa [#allocation3 + $0x1], 0 }
   0x2   :  { %15 = vsyncpa [#allocation6], 0 }
   0x3   :  { %16 = vsyncpa [#allocation4], 0 }
   0x4   :  { %18 = vsyncpa [#allocation4 + $0x1], 0  ;;  %s5396_s21 = smov 0   ;;  %s5398_s22 = smov 0  }
   0x5   :  { %s5400_s23 = smov 0   ;;  %s5402_s24 = smov 0  }
   0x6 LB: > { %s5417_s25 = sadd.s32 4294967295, %s5349_s24   ;;  %s3980_s26 = sadd.s32 4294967294, %s5349_s24   ;;  %s5349_s24 = sphi %s5402_s24, %s6259_s24   ;;  %s5345_s23 = sphi %s5400_s23, %s6258_s23   ;;  %s5341_s22 = sphi %s5398_s22, %s6257_s22   ;;  %s5337_s21 = sphi %s5396_s21, %s6256_s21  }
   0x7   : > { %p44_p0 = scmp.ne.s32.totalorder %s5341_s22, %s5337_s21  ;;  %p6240_p1 = scmp.eq.s32.totalorder %s5417_s25, 0 }
   0x8   : > { %p184_p3 = scmp.eq.s32.totalorder %s3980_s26, 1  ;;  %p3981_p5 = scmp.ge.s32.totalorder %s5349_s24, 1 }
   0x9   : > { %p5426_p4 = por %p6240_p1, %p44_p0  ;;  %p191_p7 = scmp.lt.s32.totalorder %s5349_s24, 3 }
   0xa   : > { %p5431_p6 = por %p184_p3, %p44_p0  ;;  %s5351_s30 = smov [#allocation5]  }
   0xb   : > { %s6243_s27 = scalar_select %p5426_p4, 1, 0 }
   0xc   : > { %s6244_s28 = scalar_select %p5431_p6, 1, 0 }
   0xd   : > { %p5436_p8 = pnand %p3981_p5, %p191_p7  ;;  %s203_s7 = sshll.u32 %s5351_s30, 4  ;;  %s5440_s7 = int_to_ptr.vmem [resolvable:$true] %s203_s7 }
   0xe   : > { %s5452_s9 = sadd.s32 1, %s5349_s24   ;;  %s31_s10 = sadd.s32 1, %s5345_s23 }
   0xf   : > { %s6245_s29 = scalar_select %p5436_p8, 1, 0 }
  0x10   : > { %p4685_p9 = pneg %p5436_p8  ;;  %s28_s11 = ssub.s32 %s5349_s24, %s5452_s9 }
  0x11   : > { %s5221_s14 = scalar_lea.hbm %s6234_s1, 32768 }
  0x12   : > { %p5447_p11 = pnand %p4685_p9, %p6240_p1  ;;  %p5222_p12 = scmp.ne.s32.totalorder %s6234_s1, %s5221_s14 }
  0x13   : > { %p5228_p5 = scmp.lt.u32.totalorder %s5221_s14, %s6234_s1 }
  0x14   : > { %p5223_p13 = pneg %p5447_p11 }
  0x16   : > { %p5224_p0 = pnand %p5223_p13, %p5222_p12 }
  0x18   : > { %p5225_p3 = pneg %p5224_p0 }
  0x1a   : > { %p5230_p7 = pnand %p5228_p5, %p5225_p3 }
  0x1c   : > { %5233 = shalt.err (!%p5230_p7)
}
  0x1d   : > { %s5234_s19 = scalar_lea.vmem %s5440_s7, 32768  ;;  %p5242_p2 = scmp.lt.s32.totalorder %s5440_s7, %s5440_s7 }
  0x1e   : > { %p5235_p9 = scmp.ne.s32.totalorder %s5440_s7, %s5234_s19  ;;  %p5243_p6 = scmp.lt.s32.totalorder %s5234_s19, %s5234_s19 }
  0x20   : > { %p5237_p10 = pnand %p5235_p9, %p5223_p13  ;;  %p5244_p4 = por %p5243_p6, %p5242_p2 }
  0x22   : > { %p5238_p1 = pneg %p5237_p10 }
  0x24   : > { %p5245_p8 = pnand %p5244_p4, %p5238_p1 }
  0x26   : > { %5248 = shalt.err (!%p5245_p8)
}
  0x27   : > { %s5352_s20 = smov 256   ;;  %s5353_s26 = smov 16  }
  0x28   : > { %4688 = dma.hbm_to_vmem [thread:$0]  (!%p5447_p11), %s6234_s1, 32768, %s5440_s7, [#allocation6], %s5352_s20, %s5352_s20, %s5353_s26  }
  0x29   : > { %p29_p2 = scmp.eq.s32.totalorder %s28_s11, 0  ;;  %p38_p1 = scmp.ne.s32.totalorder %s5345_s23, %s5341_s22 }
  0x2a   : > { %p39_p4 = scmp.eq.s32.totalorder %s5349_s24, 0  ;;  %p4698_p6 = scmp.lt.s32.totalorder %s5349_s24, 2 }
  0x2b   : > { %s5483_s13 = scalar_select %p29_p2, %s5345_s23, %s31_s10  }
  0x2c   : > { %p40_p8 = por %p39_p4, %p38_p1  ;;  %p6247_p10 = scmp.eq.s32.totalorder %s5417_s25, 1 }
  0x2d   : > { %s226_s15 = sand.u32 1, %s5345_s23   ;;  %s4290_s16 = sshll.u32 %s5349_s24, 14 }
  0x2e   : > { %p5487_p12 = por %p6247_p10, %p38_p1  ;;  %s3984_s17 = sshll.u32 %s226_s15, 10 }
  0x2f   : > { %s5496_s19 = scalar_lea.hbm %s6233_s0, %s4290_s16  ;;  %s230_s7 = scalar_lea.vmem [#allocation2], %s3984_s17 }
  0x30   : > { %s238_s10 = sshll.u32 %s230_s7, 4  ;;  %p5498_p11 = pnand %p4698_p6, %p40_p8  ;;  %s5502_s10 = int_to_ptr.vmem [resolvable:$true] %s238_s10 }
  0x31   : > { %s5504_s20 = scalar_lea.sflag [#allocation3], %s226_s15  ;;  %s5249_s26 = scalar_lea.hbm %s5496_s19, 16384 }
  0x32   : > { %p5250_p13 = scmp.ne.s32.totalorder %s5496_s19, %s5249_s26  ;;  %p5251_p0 = pneg %p5498_p11 }
  0x33   : > { %s5254_s16 = scalar_lea.hbm %s6233_s0, 32768  ;;  %p5255_p7 = scmp.lt.u32.totalorder %s5496_s19, %s6233_s0 }
  0x34   : > { %p5252_p3 = pnand %p5251_p0, %p5250_p13  ;;  %p5256_p9 = scmp.lt.u32.totalorder %s5254_s16, %s5249_s26 }
  0x35   : > { %p5258_p1 = scmp.lt.u32.totalorder %s5249_s26, %s5496_s19 }
  0x36   : > { %p5253_p5 = pneg %p5252_p3  ;;  %p5257_p2 = por %p5256_p9, %p5255_p7 }
  0x38   : > { %p5259_p4 = por %p5258_p1, %p5257_p2 }
  0x3a   : > { %p5260_p6 = pnand %p5259_p4, %p5253_p5 }
  0x3c   : > { %5263 = shalt.err (!%p5260_p6)
}
  0x3d   : > { %s5264_s15 = scalar_lea.vmem %s5502_s10, 16384  ;;  %s5354_s18 = smov [#allocation2]  }
  0x3e   : > { %p5265_p8 = scmp.ne.s32.totalorder %s5502_s10, %s5264_s15  ;;  %s5269_s7 = sshll.u32 %s5354_s18, 4  ;;  %s5270_s7 = int_to_ptr.vmem [resolvable:$false] %s5269_s7 }
  0x3f   : > { %s5271_s30 = scalar_lea.vmem %s5270_s7, 32768  ;;  %p5272_p3 = scmp.lt.s32.totalorder %s5502_s10, %s5270_s7 }
  0x40   : > { %p5267_p10 = pnand %p5265_p8, %p5251_p0  ;;  %p5273_p7 = scmp.lt.s32.totalorder %s5271_s30, %s5264_s15 }
  0x42   : > { %p5268_p13 = pneg %p5267_p10  ;;  %p5274_p9 = por %p5273_p7, %p5272_p3 }
  0x44   : > { %p5275_p2 = pnand %p5274_p9, %p5268_p13 }
  0x46   : > { %5278 = shalt.err (!%p5275_p2)
}
  0x47   : > { %s5355_s26 = smov 1024   ;;  %s5356_s12 = smov 64  }
  0x48   : > { %4692 = dma.hbm_to_vmem [thread:$0]  (!%p5498_p11), %s5496_s19, 16384, %s5502_s10, %s5504_s20, %s5355_s26, %s5355_s26, %s5356_s12  }
  0x49   : > { %p6250_p0 = scmp.ne.s32.totalorder %s6245_s29, 0 }
  0x4a   : > { %s5535_s16 = sand.u32 (!%p6250_p0), 1, %s5341_s22   ;;  %p6251_p5 = scmp.ne.s32.totalorder (!%p6250_p0), %s6243_s27, 0 }
  0x4b   : > { %250 = sbr.rel (%p6250_p0) target bundleno = 1280 (0x500), region = 40  ;;  %s3989_s17 = sshll.u32 (!%p6250_p0), %s5535_s16, 10 }
  0x4c   : > { %s253_s8 = scalar_lea.sflag (!%p6250_p0), [#allocation3], %s5535_s16  ;;  %s5539_s15 = scalar_lea.vmem (!%p6250_p0), [#allocation2], %s3989_s17 }
  0x52   : > { %5324 = dma.done.wait (%p6251_p5), %s253_s8, 16384  }
  0x53   : > { %5326 = vsyncadd (%p6251_p5), %s253_s8, 4294950912  ;;  %p6252_p11 = scmp.eq.s32.totalorder %s5417_s25, 0 }
  0x55   : > { %5328 = dma.done.wait (%p6252_p11), [#allocation6], 32768   ;;  %p6253_p1 = pmov %p6252_p11 }
  0x56   : > { %v4741_v0 = vld [vmem:[#allocation5 + $0x4] ss:$16 sps:$4 sm:$0xff]   ;;  %v4743_v1 = vld [vmem:[#allocation5 + $0xc] ss:$16 sps:$4 sm:$0xff]   ;;  %v4745_v2 = vld [vmem:[#allocation5] ss:$16 sps:$4 sm:$0xff]  }
  0x57   : > { %5330 = vsyncadd (%p6253_p1), [#allocation6], 4294934528  ;;  %2053 = vmatprep.subr.bf16.mxu0 %v4741_v0  ;;  %v4746_v3 = vld [vmem:[#allocation5 + $0x8] ss:$16 sps:$4 sm:$0xff]   ;;  %2505 = vmatprep.subr.bf16.mxu1 %v4743_v1  ;;  %v4747_v4 = vld [vmem:[#allocation5 + $0x24] ss:$16 sps:$4 sm:$0xff]  }
  0x58   : > { %2054 = vmatpush1.bf16.msra.mxu0 %v4745_v2  ;;  %2506 = vmatpush1.bf16.msra.mxu1 %v4746_v3  ;;  %v4749_v5 = vld [vmem:[#allocation5 + $0x2c] ss:$16 sps:$4 sm:$0xff]   ;;  %v4751_v6 = vld [vmem:[#allocation5 + $0x20] ss:$16 sps:$4 sm:$0xff]   ;;  %v4752_v7 = vld [vmem:[#allocation5 + $0x28] ss:$16 sps:$4 sm:$0xff]  }
  0x59   : > { %2055 = vmatprep.subr.bf16.mxu0 %v4747_v4  ;;  %2507 = vmatprep.subr.bf16.mxu1 %v4749_v5  ;;  %v4753_v8 = vld [vmem:[#allocation5 + $0x44] ss:$16 sps:$4 sm:$0xff]   ;;  %v4755_v9 = vld [vmem:[#allocation5 + $0x4c] ss:$16 sps:$4 sm:$0xff]   ;;  %v4757_v10 = vld [vmem:[#allocation5 + $0x40] ss:$16 sps:$4 sm:$0xff]  }
  0x5a   : > { %v4758_v11 = vld [vmem:[#allocation5 + $0x48] ss:$16 sps:$4 sm:$0xff]   ;;  %v4759_v12 = vld [vmem:[#allocation5 + $0x64] ss:$16 sps:$4 sm:$0xff]   ;;  %v4761_v13 = vld [vmem:[#allocation5 + $0x6c] ss:$16 sps:$4 sm:$0xff]  }
  0x5b   : > { %v4763_v14 = vld [vmem:[#allocation5 + $0x60] ss:$16 sps:$4 sm:$0xff]   ;;  %v4764_v15 = vld [vmem:[#allocation5 + $0x68] ss:$16 sps:$4 sm:$0xff]   ;;  %v4765_v16 = vld [vmem:[#allocation5 + $0x84] ss:$16 sps:$4 sm:$0xff]  }
  0x5c   : > { %2056 = vmatpush1.bf16.msra.mxu0 %v4751_v6  ;;  %2508 = vmatpush1.bf16.msra.mxu1 %v4752_v7  ;;  %v4767_v17 = vld [vmem:[#allocation5 + $0x8c] ss:$16 sps:$4 sm:$0xff]   ;;  %v4769_v18 = vld [vmem:[#allocation5 + $0x80] ss:$16 sps:$4 sm:$0xff]   ;;  %v4770_v19 = vld [vmem:[#allocation5 + $0x88] ss:$16 sps:$4 sm:$0xff]  }
  0x5d   : > { %2057 = vmatprep.subr.bf16.mxu0 %v4753_v8  ;;  %2509 = vmatprep.subr.bf16.mxu1 %v4755_v9  ;;  %v4771_v20 = vld [vmem:[#allocation5 + $0xa4] ss:$16 sps:$4 sm:$0xff]   ;;  %v4773_v21 = vld [vmem:[#allocation5 + $0xac] ss:$16 sps:$4 sm:$0xff]   ;;  %v4775_v22 = vld [vmem:[#allocation5 + $0xa0] ss:$16 sps:$4 sm:$0xff]  }
  0x5e   : > { %v4776_v23 = vld [vmem:[#allocation5 + $0xa8] ss:$16 sps:$4 sm:$0xff]   ;;  %v4777_v24 = vld [vmem:[#allocation5 + $0xc4] ss:$16 sps:$4 sm:$0xff]   ;;  %v4779_v25 = vld [vmem:[#allocation5 + $0xcc] ss:$16 sps:$4 sm:$0xff]  }
  0x5f   : > { %v4781_v26 = vld [vmem:[#allocation5 + $0xc0] ss:$16 sps:$4 sm:$0xff]   ;;  %v4782_v27 = vld [vmem:[#allocation5 + $0xc8] ss:$16 sps:$4 sm:$0xff]   ;;  %v4783_v28 = vld [vmem:[#allocation5 + $0xe4] ss:$16 sps:$4 sm:$0xff]  }
  0x60   : > { %2058 = vmatpush1.bf16.msra.mxu0 %v4757_v10  ;;  %2510 = vmatpush1.bf16.msra.mxu1 %v4758_v11  ;;  %v4785_v29 = vld [vmem:[#allocation5 + $0xec] ss:$16 sps:$4 sm:$0xff]   ;;  %v4787_v30 = vld [vmem:[#allocation5 + $0xe0] ss:$16 sps:$4 sm:$0xff]   ;;  %v4788_v31 = vld [vmem:[#allocation5 + $0xe8] ss:$16 sps:$4 sm:$0xff]  }
  0x61   : > { %2059 = vmatprep.subr.bf16.mxu0 %v4759_v12  ;;  %2511 = vmatprep.subr.bf16.mxu1 %v4761_v13  ;;  %v4789_v32 = vld [vmem:[#allocation5 + $0x104] ss:$16 sps:$4 sm:$0xff]   ;;  %v4791_v33 = vld [vmem:[#allocation5 + $0x10c] ss:$16 sps:$4 sm:$0xff]   ;;  %v4793_v34 = vld [vmem:[#allocation5 + $0x100] ss:$16 sps:$4 sm:$0xff]  }
  0x62   : > { %v4794_v35 = vld [vmem:[#allocation5 + $0x108] ss:$16 sps:$4 sm:$0xff]   ;;  %v4795_v36 = vld [vmem:[#allocation5 + $0x124] ss:$16 sps:$4 sm:$0xff]   ;;  %v4797_v37 = vld [vmem:[#allocation5 + $0x12c] ss:$16 sps:$4 sm:$0xff]  }
  0x63   : > { %v4799_v38 = vld [vmem:[#allocation5 + $0x120] ss:$16 sps:$4 sm:$0xff]   ;;  %v4800_v39 = vld [vmem:[#allocation5 + $0x128] ss:$16 sps:$4 sm:$0xff]   ;;  %v4801_v40 = vld [vmem:[#allocation5 + $0x144] ss:$16 sps:$4 sm:$0xff]  }
  0x64   : > { %2060 = vmatpush1.bf16.msra.mxu0 %v4763_v14  ;;  %2512 = vmatpush1.bf16.msra.mxu1 %v4764_v15  ;;  %v4803_v41 = vld [vmem:[#allocation5 + $0x14c] ss:$16 sps:$4 sm:$0xff]   ;;  %v4805_v42 = vld [vmem:[#allocation5 + $0x140] ss:$16 sps:$4 sm:$0xff]   ;;  %v4806_v43 = vld [vmem:[#allocation5 + $0x148] ss:$16 sps:$4 sm:$0xff]  }
  0x65   : > { %2061 = vmatprep.subr.bf16.mxu0 %v4765_v16  ;;  %2513 = vmatprep.subr.bf16.mxu1 %v4767_v17  ;;  %v4807_v44 = vld [vmem:[#allocation5 + $0x164] ss:$16 sps:$4 sm:$0xff]   ;;  %v4809_v45 = vld [vmem:[#allocation5 + $0x16c] ss:$16 sps:$4 sm:$0xff]   ;;  %v4811_v47 = vld [vmem:[#allocation5 + $0x160] ss:$16 sps:$4 sm:$0xff]  }
  0x66   : > { %v304_v46 = vld [vmem:[%s5539_s15 + $0x8] sm:$0xff]  ;;  %v4813_v50 = vld [vmem:[#allocation5 + $0x184] ss:$16 sps:$4 sm:$0xff]   ;;  %v4817_v53 = vld [vmem:[#allocation5 + $0x180] ss:$16 sps:$4 sm:$0xff]   ;;  %s3991_s27 = sshll.u32 %s5535_s16, 9 }
  0x67   : > { %v4812_v48 = vld [vmem:[#allocation5 + $0x168] ss:$16 sps:$4 sm:$0xff]   ;;  %v4815_v52 = vld [vmem:[#allocation5 + $0x18c] ss:$16 sps:$4 sm:$0xff]   ;;  %v4819_v55 = vld [vmem:[#allocation5 + $0x1a4] ss:$16 sps:$4 sm:$0xff]  }
  0x68   : > { %2062 = vmatpush1.bf16.msra.mxu0 %v4769_v18  ;;  %2514 = vmatpush1.bf16.msra.mxu1 %v4770_v19  ;;  %v312_v49 = vld [vmem:[%s5539_s15 + $0x48] sm:$0xff]  ;;  %v4823_v57 = vld [vmem:[#allocation5 + $0x1a0] ss:$16 sps:$4 sm:$0xff]   ;;  %v4825_v59 = vld [vmem:[#allocation5 + $0x1c4] ss:$16 sps:$4 sm:$0xff]   ;;  %s5793_s29 = scalar_lea.vmem [#allocation7], %s3991_s27 }
  0x69   : > { %2063 = vmatprep.subr.bf16.mxu0 %v4771_v20  ;;  %2515 = vmatprep.subr.bf16.mxu1 %v4773_v21  ;;  %v432_v51 = vpack.c.bf16 %v312_v49, %v304_v46  ;;  %v4818_v54 = vld [vmem:[#allocation5 + $0x188] ss:$16 sps:$4 sm:$0xff]   ;;  %v4821_v56 = vld [vmem:[#allocation5 + $0x1ac] ss:$16 sps:$4 sm:$0xff]   ;;  %v4829_v61 = vld [vmem:[#allocation5 + $0x1c0] ss:$16 sps:$4 sm:$0xff]  }
  0x6a   : > { %v4824_v58 = vld [vmem:[#allocation5 + $0x1a8] ss:$16 sps:$4 sm:$0xff]   ;;  %v4827_v60 = vld [vmem:[#allocation5 + $0x1cc] ss:$16 sps:$4 sm:$0xff]   ;;  %v4831_v63 = vld [vmem:[#allocation5 + $0x1e4] ss:$16 sps:$4 sm:$0xff]  }
  0x6b   : > { %2085 = vmatprep.mubr.bf16.mxu0 %v432_v51  ;;  %2537 = vmatprep.mubr.bf16.mxu1 %v432_v51  ;;  %v4830_v62 = vld [vmem:[#allocation5 + $0x1c8] ss:$16 sps:$4 sm:$0xff]   ;;  %v4833_v0 = vld [vmem:[#allocation5 + $0x1ec] ss:$16 sps:$4 sm:$0xff]   ;;  %v4835_v1 = vld [vmem:[#allocation5 + $0x1e0] ss:$16 sps:$4 sm:$0xff]  }
  0x6c   : > { %2064 = vmatpush1.bf16.msra.mxu0 %v4775_v22  ;;  %2516 = vmatpush1.bf16.msra.mxu1 %v4776_v23  ;;  %v4836_v2 = vld [vmem:[#allocation5 + $0x1e8] ss:$16 sps:$4 sm:$0xff]   ;;  %v303_v3 = vld [vmem:[%s5539_s15] sm:$0xff]  ;;  %v4842_v6 = vld [vmem:[#allocation5 + $0x20c] ss:$16 sps:$4 sm:$0xff]   ;;  %vm3574_vm0 = vcmask 31744  }
  0x6d   : > { %2065 = vmatprep.subr.bf16.mxu0 %v4777_v24  ;;  %2517 = vmatprep.subr.bf16.mxu1 %v4779_v25  ;;  %v311_v4 = vld [vmem:[%s5539_s15 + $0x40] sm:$0xff]  ;;  %v4840_v9 = vld [vmem:[#allocation5 + $0x208] ss:$16 sps:$4 sm:$0xff]   ;;  %v4848_v13 = vld [vmem:[#allocation5 + $0x22c] ss:$16 sps:$4 sm:$0xff]   ;;  %s5357_s11 = smov 4  }
  0x6e   : > { %v4839_v5 = vld [vmem:[#allocation5 + $0x204] ss:$16 sps:$4 sm:$0xff]   ;;  %v4837_v7 = vld [vmem:[#allocation5 + $0x200] ss:$16 sps:$4 sm:$0xff]   ;;  %v431_v8 = vpack.c.bf16 %v311_v4, %v303_v3  ;;  %v320_v10 = vld [vmem:[%s5539_s15 + $0x88] sm:$0xff]  ;;  %s4292_s20 = sshll.u32 %s5417_s25, 13 }
  0x6f   : > { %v328_v11 = vld [vmem:[%s5539_s15 + $0xc8] sm:$0xff]  ;;  %v4845_v12 = vld [vmem:[#allocation5 + $0x224] ss:$16 sps:$4 sm:$0xff]   ;;  %v4843_v14 = vld [vmem:[#allocation5 + $0x220] ss:$16 sps:$4 sm:$0xff]   ;;  %s3872_s18 = sshll.u32 %s5793_s29, 4  ;;  %s6109_s26 = scalar_lea.hbm %s6239_s6, %s4292_s20  ;;  %s6112_s18 = int_to_ptr.vmem [resolvable:$true] %s3872_s18 }
  0x70   : > { %2066 = vmatpush1.bf16.msra.mxu0 %v4781_v26  ;;  %2518 = vmatpush1.bf16.msra.mxu1 %v4782_v27  ;;  %v440_v15 = vpack.c.bf16 %v328_v11, %v320_v10  ;;  %v4846_v16 = vld [vmem:[#allocation5 + $0x228] ss:$16 sps:$4 sm:$0xff]   ;;  %v319_v17 = vld [vmem:[%s5539_s15 + $0x80] sm:$0xff]  ;;  %v4854_v20 = vld [vmem:[#allocation5 + $0x24c] ss:$16 sps:$4 sm:$0xff]   ;;  %s3854_s12 = scalar_lea.sflag [#allocation4], %s5535_s16 }
  0x71   : > { %2067 = vmatprep.subr.bf16.mxu0 %v4783_v28  ;;  %2519 = vmatprep.subr.bf16.mxu1 %v4785_v29  ;;  %v327_v18 = vld [vmem:[%s5539_s15 + $0xc0] sm:$0xff]  ;;  %v4852_v22 = vld [vmem:[#allocation5 + $0x248] ss:$16 sps:$4 sm:$0xff]   ;;  %v4860_v27 = vld [vmem:[#allocation5 + $0x26c] ss:$16 sps:$4 sm:$0xff]   ;;  %s5279_s17 = scalar_lea.vmem %s6112_s18, 8192 }
  0x72   : > { %v4851_v19 = vld [vmem:[#allocation5 + $0x244] ss:$16 sps:$4 sm:$0xff]   ;;  %v4849_v21 = vld [vmem:[#allocation5 + $0x240] ss:$16 sps:$4 sm:$0xff]   ;;  %v439_v23 = vpack.c.bf16 %v327_v18, %v319_v17  ;;  %v336_v24 = vld [vmem:[%s5539_s15 + $0x108] sm:$0xff]  ;;  %p5280_p4 = scmp.ne.s32.totalorder %s6112_s18, %s5279_s17 }
  0x73   : > { %v344_v25 = vld [vmem:[%s5539_s15 + $0x148] sm:$0xff]  ;;  %v4857_v26 = vld [vmem:[#allocation5 + $0x264] ss:$16 sps:$4 sm:$0xff]   ;;  %v4855_v29 = vld [vmem:[#allocation5 + $0x260] ss:$16 sps:$4 sm:$0xff]  }
  0x74   : > { %2068 = vmatpush1.bf16.msra.mxu0 %v4787_v30  ;;  %2520 = vmatpush1.bf16.msra.mxu1 %v4788_v31  ;;  %v448_v28 = vpack.c.bf16 %v344_v25, %v336_v24  ;;  %v4858_v30 = vld [vmem:[#allocation5 + $0x268] ss:$16 sps:$4 sm:$0xff]   ;;  %v335_v31 = vld [vmem:[%s5539_s15 + $0x100] sm:$0xff]  ;;  %p5281_p6 = pnand %p5280_p4, %p5487_p12 }
  0x75   : > { %2069 = vmatprep.subr.bf16.mxu0 %v4789_v32  ;;  %2521 = vmatprep.subr.bf16.mxu1 %v4791_v33  ;;  %v343_v32 = vld [vmem:[%s5539_s15 + $0x140] sm:$0xff]  ;;  %v368_v51 = vld [vmem:[%s5539_s15 + $0x208] sm:$0xff] }
  0x76   : > { %v4863_v33 = vld [vmem:[#allocation5 + $0x284] ss:$16 sps:$4 sm:$0xff]   ;;  %v4873_v49 = vld [vmem:[#allocation5 + $0x2c0] ss:$16 sps:$4 sm:$0xff]   ;;  %v4888_v3 = vld [vmem:[#allocation5 + $0x308] ss:$16 sps:$4 sm:$0xff]   ;;  %p5282_p8 = pneg %p5281_p6 }
  0x77   : > { %v359_v46 = vld [vmem:[%s5539_s15 + $0x1c0] sm:$0xff]  ;;  %v408_v17 = vld [vmem:[%s5539_s15 + $0x348] sm:$0xff] }
  0x78   : > { %2070 = vmatpush1.bf16.msra.mxu0 %v4793_v34  ;;  %2522 = vmatpush1.bf16.msra.mxu1 %v4794_v35  ;;  %v4866_v34 = vld [vmem:[#allocation5 + $0x28c] ss:$16 sps:$4 sm:$0xff]   ;;  %v4861_v35 = vld [vmem:[#allocation5 + $0x280] ss:$16 sps:$4 sm:$0xff]   ;;  %v4893_v4 = vld [vmem:[#allocation5 + $0x324] ss:$16 sps:$4 sm:$0xff]  }
  0x79   : > { %2071 = vmatprep.subr.bf16.mxu0 %v4795_v36  ;;  %2523 = vmatprep.subr.bf16.mxu1 %v4797_v37  ;;  %v4864_v36 = vld [vmem:[#allocation5 + $0x288] ss:$16 sps:$4 sm:$0xff]   ;;  %v447_v37 = vpack.c.bf16 %v343_v32, %v335_v31  ;;  %v391_v10 = vld [vmem:[%s5539_s15 + $0x2c0] sm:$0xff] }
  0x7a   : > { %v4899_v11 = vld [vmem:[#allocation5 + $0x344] ss:$16 sps:$4 sm:$0xff]   ;;  %v424_v31 = vld [vmem:[%s5539_s15 + $0x3c8] sm:$0xff] }
  0x7b   : > { %v4905_v18 = vld [vmem:[#allocation5 + $0x364] ss:$16 sps:$4 sm:$0xff]  }
  0x7c   : > { %2072 = vmatpush1.bf16.msra.mxu0 %v4799_v38  ;;  %2524 = vmatpush1.bf16.msra.mxu1 %v4800_v39  ;;  %v352_v38 = vld [vmem:[%s5539_s15 + $0x188] sm:$0xff]  ;;  %v407_v24 = vld [vmem:[%s5539_s15 + $0x340] sm:$0xff] }
  0x7d   : > { %2073 = vmatprep.subr.bf16.mxu0 %v4801_v40  ;;  %2525 = vmatprep.subr.bf16.mxu1 %v4803_v41  ;;  %v360_v39 = vld [vmem:[%s5539_s15 + $0x1c8] sm:$0xff]  ;;  %v4869_v40 = vld [vmem:[#allocation5 + $0x2a4] ss:$16 sps:$4 sm:$0xff]  }
  0x7e   : > { %v4872_v41 = vld [vmem:[#allocation5 + $0x2ac] ss:$16 sps:$4 sm:$0xff]   ;;  %v4911_v25 = vld [vmem:[#allocation5 + $0x384] ss:$16 sps:$4 sm:$0xff]  }
  0x7f   : > { %v4917_v32 = vld [vmem:[#allocation5 + $0x3a4] ss:$16 sps:$4 sm:$0xff]  }
  0x80   : > { %2074 = vmatpush1.bf16.msra.mxu0 %v4805_v42  ;;  %2526 = vmatpush1.bf16.msra.mxu1 %v4806_v43  ;;  %v4867_v42 = vld [vmem:[#allocation5 + $0x2a0] ss:$16 sps:$4 sm:$0xff]   ;;  %v456_v43 = vpack.c.bf16 %v360_v39, %v352_v38  ;;  %v4923_v39 = vld [vmem:[#allocation5 + $0x3c4] ss:$16 sps:$4 sm:$0xff]  }
  0x81   : > { %2075 = vmatprep.subr.bf16.mxu0 %v4807_v44  ;;  %2527 = vmatprep.subr.bf16.mxu1 %v4809_v45  ;;  %v4870_v44 = vld [vmem:[#allocation5 + $0x2a8] ss:$16 sps:$4 sm:$0xff]   ;;  %v351_v45 = vld [vmem:[%s5539_s15 + $0x180] sm:$0xff] }
  0x82   : > { %v423_v38 = vld [vmem:[%s5539_s15 + $0x3c0] sm:$0xff] }
  0x84   : > { %2076 = vmatpush1.bf16.msra.mxu0 %v4811_v47  ;;  %2528 = vmatpush1.bf16.msra.mxu1 %v4812_v48  ;;  %v4875_v47 = vld [vmem:[#allocation5 + $0x2c4] ss:$16 sps:$4 sm:$0xff]   ;;  %v4878_v48 = vld [vmem:[#allocation5 + $0x2cc] ss:$16 sps:$4 sm:$0xff]  }
  0x85   : > { %2077 = vmatprep.subr.bf16.mxu0 %v4813_v50  ;;  %2529 = vmatprep.subr.bf16.mxu1 %v4815_v52  ;;  %v455_v50 = vpack.c.bf16 %v359_v46, %v351_v45  ;;  %v376_v52 = vld [vmem:[%s5539_s15 + $0x248] sm:$0xff]  ;;  %v314_v45 = vld [vmem:[%s5539_s15 + $0x58] sm:$0xff]  ;;  %v4929_v46 = vld [vmem:[#allocation5 + $0x3e4] ss:$16 sps:$4 sm:$0xff]  }
  0x88   : > { %2078 = vmatpush1.bf16.msra.mxu0 %v4817_v53  ;;  %2530 = vmatpush1.bf16.msra.mxu1 %v4818_v54  ;;  %v4876_v53 = vld [vmem:[#allocation5 + $0x2c8] ss:$16 sps:$4 sm:$0xff]   ;;  %v4881_v54 = vld [vmem:[#allocation5 + $0x2e4] ss:$16 sps:$4 sm:$0xff]  }
  0x89   : > { %2079 = vmatprep.subr.bf16.mxu0 %v4819_v55  ;;  %2531 = vmatprep.subr.bf16.mxu1 %v4821_v56  ;;  %v4884_v55 = vld [vmem:[#allocation5 + $0x2ec] ss:$16 sps:$4 sm:$0xff]   ;;  %v4879_v56 = vld [vmem:[#allocation5 + $0x2e0] ss:$16 sps:$4 sm:$0xff]  }
  0x8c   : > { %2080 = vmatpush1.bf16.msra.mxu0 %v4823_v57  ;;  %2532 = vmatpush1.bf16.msra.mxu1 %v4824_v58  ;;  %v4882_v57 = vld [vmem:[#allocation5 + $0x2e8] ss:$16 sps:$4 sm:$0xff]   ;;  %v464_v58 = vpack.c.bf16 %v376_v52, %v368_v51  ;;  %v305_v51 = vld [vmem:[%s5539_s15 + $0x10] sm:$0xff] }
  0x8d   : > { %2081 = vmatprep.subr.bf16.mxu0 %v4825_v59  ;;  %2533 = vmatprep.subr.bf16.mxu1 %v4827_v60  ;;  %v367_v59 = vld [vmem:[%s5539_s15 + $0x200] sm:$0xff]  ;;  %v313_v52 = vld [vmem:[%s5539_s15 + $0x50] sm:$0xff] }
  0x8e   : > { %v375_v60 = vld [vmem:[%s5539_s15 + $0x240] sm:$0xff] }
  0x90   : > { %2082 = vmatpush1.bf16.msra.mxu0 %v4829_v61  ;;  %2534 = vmatpush1.bf16.msra.mxu1 %v4830_v62  ;;  %v4887_v61 = vld [vmem:[#allocation5 + $0x304] ss:$16 sps:$4 sm:$0xff]   ;;  %v4890_v62 = vld [vmem:[#allocation5 + $0x30c] ss:$16 sps:$4 sm:$0xff]  }
  0x91   : > { %2083 = vmatprep.subr.bf16.mxu0 %v4831_v63  ;;  %2535 = vmatprep.subr.bf16.mxu1 %v4833_v0  ;;  %v463_v63 = vpack.c.bf16 %v375_v60, %v367_v59  ;;  %v384_v0 = vld [vmem:[%s5539_s15 + $0x288] sm:$0xff]  ;;  %v4941_v60 = vld [vmem:[#allocation5 + $0x424] ss:$16 sps:$4 sm:$0xff]  }
  0x92   : > { %v4936_v59 = vld [vmem:[#allocation5 + $0x408] ss:$16 sps:$4 sm:$0xff]  }
  0x94   : > { %2084 = vmatpush1.bf16.msra.mxu0 %v4835_v1  ;;  %2536 = vmatpush1.bf16.msra.mxu1 %v4836_v2  ;;  %v392_v1 = vld [vmem:[%s5539_s15 + $0x2c8] sm:$0xff]  ;;  %v4885_v2 = vld [vmem:[#allocation5 + $0x300] ss:$16 sps:$4 sm:$0xff]  }
  0x95   : > { %2166 = vmatprep.subr.bf16.mxu0 %v4839_v5  ;;  %2618 = vmatprep.subr.bf16.mxu1 %v4842_v6  ;;  %v4896_v5 = vld [vmem:[#allocation5 + $0x32c] ss:$16 sps:$4 sm:$0xff]   ;;  %v4891_v6 = vld [vmem:[#allocation5 + $0x320] ss:$16 sps:$4 sm:$0xff]  }
  0x97   : > { %2086 = vmatmul.mubr.bf16.vlgmr.msra.gmra.mrb[0].mxu0 %v431_v8  ;;  %2538 = vmatmul.mubr.bf16.vlgmr.msra.gmra.mrb[0].mxu1 %v431_v8  ;;  %v472_v8 = vpack.c.bf16 %v392_v1, %v384_v0  ;;  %v321_v1 = vld [vmem:[%s5539_s15 + $0x90] sm:$0xff] }
  0x98   : > { %2167 = vmatpush1.bf16.msra.mxu0 %v4837_v7  ;;  %2619 = vmatpush1.bf16.msra.mxu1 %v4840_v9  ;;  %v4894_v7 = vld [vmem:[#allocation5 + $0x328] ss:$16 sps:$4 sm:$0xff]   ;;  %v383_v9 = vld [vmem:[%s5539_s15 + $0x280] sm:$0xff] }
  0x99   : > { %2168 = vmatprep.subr.bf16.mxu0 %v4845_v12  ;;  %2620 = vmatprep.subr.bf16.mxu1 %v4848_v13  ;;  %v4902_v12 = vld [vmem:[#allocation5 + $0x34c] ss:$16 sps:$4 sm:$0xff]   ;;  %v4897_v13 = vld [vmem:[#allocation5 + $0x340] ss:$16 sps:$4 sm:$0xff]  }
  0x9a   : > { %2095 = vmatprep.mubr.bf16.mxu0 %v440_v15  ;;  %2547 = vmatprep.mubr.bf16.mxu1 %v440_v15  ;;  %v4900_v15 = vld [vmem:[#allocation5 + $0x348] ss:$16 sps:$4 sm:$0xff]  }
  0x9c   : > { %2169 = vmatpush1.bf16.msra.mxu0 %v4843_v14  ;;  %2621 = vmatpush1.bf16.msra.mxu1 %v4846_v16  ;;  %v471_v14 = vpack.c.bf16 %v391_v10, %v383_v9  ;;  %v400_v16 = vld [vmem:[%s5539_s15 + $0x308] sm:$0xff]  ;;  %v4953_v10 = vld [vmem:[#allocation5 + $0x464] ss:$16 sps:$4 sm:$0xff]  }
  0x9d   : > { %2170 = vmatprep.subr.bf16.mxu0 %v4851_v19  ;;  %2622 = vmatprep.subr.bf16.mxu1 %v4854_v20  ;;  %v4908_v19 = vld [vmem:[#allocation5 + $0x36c] ss:$16 sps:$4 sm:$0xff]   ;;  %v4903_v20 = vld [vmem:[#allocation5 + $0x360] ss:$16 sps:$4 sm:$0xff]   ;;  %v4948_v9 = vld [vmem:[#allocation5 + $0x448] ss:$16 sps:$4 sm:$0xff]  }
  0x9f   : > { %2096 = vmatmul.mubr.bf16.gmra.mrb[4].mxu0 %v439_v23  ;;  %2548 = vmatmul.mubr.bf16.gmra.mrb[4].mxu1 %v439_v23  ;;  %v399_v23 = vld [vmem:[%s5539_s15 + $0x300] sm:$0xff] }
  0xa0   : > { %2171 = vmatpush1.bf16.msra.mxu0 %v4849_v21  ;;  %2623 = vmatpush1.bf16.msra.mxu1 %v4852_v22  ;;  %v480_v21 = vpack.c.bf16 %v408_v17, %v400_v16  ;;  %v4906_v22 = vld [vmem:[#allocation5 + $0x368] ss:$16 sps:$4 sm:$0xff]   ;;  %v345_v16 = vld [vmem:[%s5539_s15 + $0x150] sm:$0xff] }
  0xa1   : > { %2172 = vmatprep.subr.bf16.mxu0 %v4857_v26  ;;  %2624 = vmatprep.subr.bf16.mxu1 %v4860_v27  ;;  %v4914_v26 = vld [vmem:[#allocation5 + $0x38c] ss:$16 sps:$4 sm:$0xff]   ;;  %v4909_v27 = vld [vmem:[#allocation5 + $0x380] ss:$16 sps:$4 sm:$0xff]   ;;  %v4959_v17 = vld [vmem:[#allocation5 + $0x484] ss:$16 sps:$4 sm:$0xff]  }
  0xa2   : > { %2105 = vmatprep.mubr.bf16.mxu0 %v448_v28  ;;  %2557 = vmatprep.mubr.bf16.mxu1 %v448_v28  ;;  %v4912_v28 = vld [vmem:[#allocation5 + $0x388] ss:$16 sps:$4 sm:$0xff]  }
  0xa4   : > { %2173 = vmatpush1.bf16.msra.mxu0 %v4855_v29  ;;  %2625 = vmatpush1.bf16.msra.mxu1 %v4858_v30  ;;  %v479_v29 = vpack.c.bf16 %v407_v24, %v399_v23  ;;  %v416_v30 = vld [vmem:[%s5539_s15 + $0x388] sm:$0xff]  ;;  %v362_v23 = vld [vmem:[%s5539_s15 + $0x1d8] sm:$0xff]  ;;  %v4965_v24 = vld [vmem:[#allocation5 + $0x4a4] ss:$16 sps:$4 sm:$0xff]  }
  0xa5   : > { %2174 = vmatprep.subr.bf16.mxu0 %v4863_v33  ;;  %2626 = vmatprep.subr.bf16.mxu1 %v4866_v34  ;;  %v4920_v33 = vld [vmem:[#allocation5 + $0x3ac] ss:$16 sps:$4 sm:$0xff]   ;;  %v488_v34 = vpack.c.bf16 %v424_v31, %v416_v30  ;;  %v361_v30 = vld [vmem:[%s5539_s15 + $0x1d0] sm:$0xff] }
  0xa6   : > { %v4971_v31 = vld [vmem:[#allocation5 + $0x4c4] ss:$16 sps:$4 sm:$0xff]  }
  0xa7   : > { %2106 = vmatmul.mubr.bf16.gmra.mrb[8].mxu0 %v447_v37  ;;  %2558 = vmatmul.mubr.bf16.gmra.mrb[8].mxu1 %v447_v37  ;;  %v415_v37 = vld [vmem:[%s5539_s15 + $0x380] sm:$0xff] }
  0xa8   : > { %2175 = vmatpush1.bf16.msra.mxu0 %v4861_v35  ;;  %2627 = vmatpush1.bf16.msra.mxu1 %v4864_v36  ;;  %v4915_v35 = vld [vmem:[#allocation5 + $0x3a0] ss:$16 sps:$4 sm:$0xff]   ;;  %v4918_v36 = vld [vmem:[#allocation5 + $0x3a8] ss:$16 sps:$4 sm:$0xff]  }
  0xa9   : > { %2176 = vmatprep.subr.bf16.mxu0 %v4869_v40  ;;  %2628 = vmatprep.subr.bf16.mxu1 %v4872_v41  ;;  %v4926_v40 = vld [vmem:[#allocation5 + $0x3cc] ss:$16 sps:$4 sm:$0xff]   ;;  %v4921_v41 = vld [vmem:[#allocation5 + $0x3c0] ss:$16 sps:$4 sm:$0xff]  }
  0xaa   : > { %2115 = vmatprep.mubr.bf16.mxu0 %v456_v43  ;;  %2567 = vmatprep.mubr.bf16.mxu1 %v456_v43  ;;  %v487_v43 = vpack.c.bf16 %v423_v38, %v415_v37  ;;  %v378_v37 = vld [vmem:[%s5539_s15 + $0x258] sm:$0xff]  ;;  %v4977_v38 = vld [vmem:[#allocation5 + $0x4e4] ss:$16 sps:$4 sm:$0xff]  }
  0xac   : > { %2177 = vmatpush1.bf16.msra.mxu0 %v4867_v42  ;;  %2629 = vmatpush1.bf16.msra.mxu1 %v4870_v44  ;;  %v4924_v42 = vld [vmem:[#allocation5 + $0x3c8] ss:$16 sps:$4 sm:$0xff]  }
  0xad   : > { %2178 = vmatprep.subr.bf16.mxu0 %v4875_v47  ;;  %2630 = vmatprep.subr.bf16.mxu1 %v4878_v48  ;;  %v306_v44 = vld [vmem:[%s5539_s15 + $0x18] sm:$0xff]  ;;  %v4927_v48 = vld [vmem:[#allocation5 + $0x3e0] ss:$16 sps:$4 sm:$0xff]  }
  0xae   : > { %v4932_v47 = vld [vmem:[#allocation5 + $0x3ec] ss:$16 sps:$4 sm:$0xff]  }
  0xaf   : > { %2116 = vmatmul.mubr.bf16.gmra.mrb[12].mxu0 %v455_v50  ;;  %2568 = vmatmul.mubr.bf16.gmra.mrb[12].mxu1 %v455_v50  ;;  %v4930_v50 = vld [vmem:[#allocation5 + $0x3e8] ss:$16 sps:$4 sm:$0xff]  }
  0xb0   : > { %2179 = vmatpush1.bf16.msra.mxu0 %v4873_v49  ;;  %2631 = vmatpush1.bf16.msra.mxu1 %v4876_v53  ;;  %v434_v49 = vpack.c.bf16 %v314_v45, %v306_v44  ;;  %v4935_v53 = vld [vmem:[#allocation5 + $0x404] ss:$16 sps:$4 sm:$0xff]  }
  0xb1   : > { %2180 = vmatprep.subr.bf16.mxu0 %v4881_v54  ;;  %2632 = vmatprep.subr.bf16.mxu1 %v4884_v55  ;;  %v4938_v54 = vld [vmem:[#allocation5 + $0x40c] ss:$16 sps:$4 sm:$0xff]   ;;  %v4933_v55 = vld [vmem:[#allocation5 + $0x400] ss:$16 sps:$4 sm:$0xff]   ;;  %v4983_v45 = vld [vmem:[#allocation5 + $0x504] ss:$16 sps:$4 sm:$0xff]  }
  0xb2   : > { %2125 = vmatprep.mubr.bf16.mxu0 %v464_v58  ;;  %2577 = vmatprep.mubr.bf16.mxu1 %v464_v58  ;;  %v330_v58 = vld [vmem:[%s5539_s15 + $0xd8] sm:$0xff]  ;;  %v377_v44 = vld [vmem:[%s5539_s15 + $0x250] sm:$0xff] }
  0xb4   : > { %2181 = vmatpush1.bf16.msra.mxu0 %v4879_v56  ;;  %2633 = vmatpush1.bf16.msra.mxu1 %v4882_v57  ;;  %v433_v56 = vpack.c.bf16 %v313_v52, %v305_v51  ;;  %v322_v57 = vld [vmem:[%s5539_s15 + $0x98] sm:$0xff]  ;;  %v4989_v52 = vld [vmem:[#allocation5 + $0x524] ss:$16 sps:$4 sm:$0xff]  }
  0xb5   : > { %2182 = vmatprep.subr.bf16.mxu0 %v4887_v61  ;;  %2634 = vmatprep.subr.bf16.mxu1 %v4890_v62  ;;  %v4944_v61 = vld [vmem:[#allocation5 + $0x42c] ss:$16 sps:$4 sm:$0xff]   ;;  %v4939_v62 = vld [vmem:[#allocation5 + $0x420] ss:$16 sps:$4 sm:$0xff]   ;;  %v442_v0 = vpack.c.bf16 %v330_v58, %v322_v57 }
  0xb6   : > { %v394_v51 = vld [vmem:[%s5539_s15 + $0x2d8] sm:$0xff]  ;;  %v385_v57 = vld [vmem:[%s5539_s15 + $0x290] sm:$0xff] }
  0xb7   : > { %2126 = vmatmul.mubr.bf16.gmra.mrb[16].mxu0 %v463_v63  ;;  %2578 = vmatmul.mubr.bf16.gmra.mrb[16].mxu1 %v463_v63  ;;  %v4942_v63 = vld [vmem:[#allocation5 + $0x428] ss:$16 sps:$4 sm:$0xff]   ;;  %v393_v58 = vld [vmem:[%s5539_s15 + $0x2d0] sm:$0xff] }
  0xb8   : > { %2183 = vmatpush1.bf16.msra.mxu0 %v4885_v2  ;;  %2635 = vmatpush1.bf16.msra.mxu1 %v4888_v3  ;;  %v329_v2 = vld [vmem:[%s5539_s15 + $0xd0] sm:$0xff] }
  0xb9   : > { %2184 = vmatprep.subr.bf16.mxu0 %v4893_v4  ;;  %2636 = vmatprep.subr.bf16.mxu1 %v4896_v5  ;;  %v4947_v3 = vld [vmem:[#allocation5 + $0x444] ss:$16 sps:$4 sm:$0xff]   ;;  %v4950_v4 = vld [vmem:[#allocation5 + $0x44c] ss:$16 sps:$4 sm:$0xff]   ;;  %v441_v5 = vpack.c.bf16 %v329_v2, %v321_v1  ;;  %v4996_v1 = vld [vmem:[#allocation5 + $0x548] ss:$16 sps:$4 sm:$0xff]  }
  0xba   : > { %2135 = vmatprep.mubr.bf16.mxu0 %v472_v8  ;;  %2587 = vmatprep.mubr.bf16.mxu1 %v472_v8  ;;  %v4945_v8 = vld [vmem:[#allocation5 + $0x440] ss:$16 sps:$4 sm:$0xff]   ;;  %v5001_v2 = vld [vmem:[#allocation5 + $0x564] ss:$16 sps:$4 sm:$0xff]  }
  0xbc   : > { %2185 = vmatpush1.bf16.msra.mxu0 %v4891_v6  ;;  %2637 = vmatpush1.bf16.msra.mxu1 %v4894_v7  ;;  %v338_v6 = vld [vmem:[%s5539_s15 + $0x118] sm:$0xff] }
  0xbd   : > { %2186 = vmatprep.subr.bf16.mxu0 %v4899_v11  ;;  %2638 = vmatprep.subr.bf16.mxu1 %v4902_v12  ;;  %v346_v7 = vld [vmem:[%s5539_s15 + $0x158] sm:$0xff]  ;;  %v4951_v12 = vld [vmem:[#allocation5 + $0x460] ss:$16 sps:$4 sm:$0xff]  }
  0xbe   : > { %v4956_v11 = vld [vmem:[#allocation5 + $0x46c] ss:$16 sps:$4 sm:$0xff]  }
  0xbf   : > { %2136 = vmatmul.mubr.bf16.gmra.mrb[20].mxu0 %v471_v14  ;;  %2588 = vmatmul.mubr.bf16.gmra.mrb[20].mxu1 %v471_v14  ;;  %v450_v14 = vpack.c.bf16 %v346_v7, %v338_v6  ;;  %v401_v7 = vld [vmem:[%s5539_s15 + $0x310] sm:$0xff] }
  0xc0   : > { %2187 = vmatpush1.bf16.msra.mxu0 %v4897_v13  ;;  %2639 = vmatpush1.bf16.msra.mxu1 %v4900_v15  ;;  %v4954_v13 = vld [vmem:[#allocation5 + $0x468] ss:$16 sps:$4 sm:$0xff]   ;;  %v337_v15 = vld [vmem:[%s5539_s15 + $0x110] sm:$0xff] }
  0xc1   : > { %2188 = vmatprep.subr.bf16.mxu0 %v4905_v18  ;;  %2640 = vmatprep.subr.bf16.mxu1 %v4908_v19  ;;  %v4962_v18 = vld [vmem:[#allocation5 + $0x48c] ss:$16 sps:$4 sm:$0xff]   ;;  %v4957_v19 = vld [vmem:[#allocation5 + $0x480] ss:$16 sps:$4 sm:$0xff]  }
  0xc2   : > { %2145 = vmatprep.mubr.bf16.mxu0 %v480_v21  ;;  %2597 = vmatprep.mubr.bf16.mxu1 %v480_v21  ;;  %v4960_v21 = vld [vmem:[#allocation5 + $0x488] ss:$16 sps:$4 sm:$0xff]  }
  0xc4   : > { %2189 = vmatpush1.bf16.msra.mxu0 %v4903_v20  ;;  %2641 = vmatpush1.bf16.msra.mxu1 %v4906_v22  ;;  %v449_v20 = vpack.c.bf16 %v345_v16, %v337_v15  ;;  %v354_v22 = vld [vmem:[%s5539_s15 + $0x198] sm:$0xff]  ;;  %v5013_v16 = vld [vmem:[#allocation5 + $0x5a4] ss:$16 sps:$4 sm:$0xff]  }
  0xc5   : > { %2190 = vmatprep.subr.bf16.mxu0 %v4911_v25  ;;  %2642 = vmatprep.subr.bf16.mxu1 %v4914_v26  ;;  %v4968_v25 = vld [vmem:[#allocation5 + $0x4ac] ss:$16 sps:$4 sm:$0xff]   ;;  %v4963_v26 = vld [vmem:[#allocation5 + $0x4a0] ss:$16 sps:$4 sm:$0xff]   ;;  %v5008_v15 = vld [vmem:[#allocation5 + $0x588] ss:$16 sps:$4 sm:$0xff]  }
  0xc7   : > { %2146 = vmatmul.mubr.bf16.gmra.mrb[24].mxu0 %v479_v29  ;;  %2598 = vmatmul.mubr.bf16.gmra.mrb[24].mxu1 %v479_v29  ;;  %v353_v29 = vld [vmem:[%s5539_s15 + $0x190] sm:$0xff] }
  0xc8   : > { %2191 = vmatpush1.bf16.msra.mxu0 %v4909_v27  ;;  %2643 = vmatpush1.bf16.msra.mxu1 %v4912_v28  ;;  %v458_v27 = vpack.c.bf16 %v362_v23, %v354_v22  ;;  %v4966_v28 = vld [vmem:[#allocation5 + $0x4a8] ss:$16 sps:$4 sm:$0xff]   ;;  %v425_v22 = vld [vmem:[%s5539_s15 + $0x3d0] sm:$0xff] }
  0xc9   : > { %2192 = vmatprep.subr.bf16.mxu0 %v4917_v32  ;;  %2644 = vmatprep.subr.bf16.mxu1 %v4920_v33  ;;  %v4974_v32 = vld [vmem:[#allocation5 + $0x4cc] ss:$16 sps:$4 sm:$0xff]   ;;  %v4969_v33 = vld [vmem:[#allocation5 + $0x4c0] ss:$16 sps:$4 sm:$0xff]   ;;  %v5019_v23 = vld [vmem:[#allocation5 + $0x5c4] ss:$16 sps:$4 sm:$0xff]  }
  0xca   : > { %2155 = vmatprep.mubr.bf16.mxu0 %v488_v34  ;;  %2607 = vmatprep.mubr.bf16.mxu1 %v488_v34  ;;  %v4972_v34 = vld [vmem:[#allocation5 + $0x4c8] ss:$16 sps:$4 sm:$0xff]  }
  0xcc   : > { %2193 = vmatpush1.bf16.msra.mxu0 %v4915_v35  ;;  %2645 = vmatpush1.bf16.msra.mxu1 %v4918_v36  ;;  %v457_v35 = vpack.c.bf16 %v361_v30, %v353_v29  ;;  %v370_v36 = vld [vmem:[%s5539_s15 + $0x218] sm:$0xff]  ;;  %v316_v29 = vld [vmem:[%s5539_s15 + $0x68] sm:$0xff]  ;;  %v5025_v30 = vld [vmem:[#allocation5 + $0x5e4] ss:$16 sps:$4 sm:$0xff]  }
  0xcd   : > { %2194 = vmatprep.subr.bf16.mxu0 %v4923_v39  ;;  %2646 = vmatprep.subr.bf16.mxu1 %v4926_v40  ;;  %v4980_v39 = vld [vmem:[#allocation5 + $0x4ec] ss:$16 sps:$4 sm:$0xff]   ;;  %v466_v40 = vpack.c.bf16 %v378_v37, %v370_v36  ;;  %v315_v36 = vld [vmem:[%s5539_s15 + $0x60] sm:$0xff] }
  0xce   : > { %v5031_v37 = vld [vmem:[#allocation5 + $0x604] ss:$16 sps:$4 sm:$0xff]  }
  0xcf   : > { %2156 = vmatmul.mubr.bf16.gmra.mrb[28].mxu0 %v487_v43  ;;  %2608 = vmatmul.mubr.bf16.gmra.mrb[28].mxu1 %v487_v43  ;;  %v369_v43 = vld [vmem:[%s5539_s15 + $0x210] sm:$0xff] }
  0xd0   : > { %2195 = vmatpush1.bf16.msra.mxu0 %v4921_v41  ;;  %2647 = vmatpush1.bf16.msra.mxu1 %v4924_v42  ;;  %v4975_v41 = vld [vmem:[#allocation5 + $0x4e0] ss:$16 sps:$4 sm:$0xff]   ;;  %v4978_v42 = vld [vmem:[#allocation5 + $0x4e8] ss:$16 sps:$4 sm:$0xff]  }
  0xd1   : > { %2196 = vmatprep.subr.bf16.mxu0 %v4929_v46  ;;  %2648 = vmatprep.subr.bf16.mxu1 %v4932_v47  ;;  %v4986_v46 = vld [vmem:[#allocation5 + $0x50c] ss:$16 sps:$4 sm:$0xff]   ;;  %v4981_v47 = vld [vmem:[#allocation5 + $0x500] ss:$16 sps:$4 sm:$0xff]  }
  0xd2   : > { %2198 = vmatprep.mubr.bf16.mxu0 %v434_v49  ;;  %2650 = vmatprep.mubr.bf16.mxu1 %v434_v49  ;;  %v465_v49 = vpack.c.bf16 %v377_v44, %v369_v43  ;;  %v332_v43 = vld [vmem:[%s5539_s15 + $0xe8] sm:$0xff]  ;;  %v5037_v44 = vld [vmem:[#allocation5 + $0x624] ss:$16 sps:$4 sm:$0xff]  }
  0xd4   : > { %2197 = vmatpush1.bf16.msra.mxu0 %v4927_v48  ;;  %2649 = vmatpush1.bf16.msra.mxu1 %v4930_v50  ;;  %v4984_v48 = vld [vmem:[#allocation5 + $0x508] ss:$16 sps:$4 sm:$0xff]  }
  0xd5   : > { %2279 = vmatprep.subr.bf16.mxu0 %v4935_v53  ;;  %2731 = vmatprep.subr.bf16.mxu1 %v4938_v54  ;;  %v386_v50 = vld [vmem:[%s5539_s15 + $0x298] sm:$0xff]  ;;  %v4987_v54 = vld [vmem:[#allocation5 + $0x520] ss:$16 sps:$4 sm:$0xff]  }
  0xd6   : > { %v4992_v53 = vld [vmem:[#allocation5 + $0x52c] ss:$16 sps:$4 sm:$0xff]  }
  0xd7   : > { %2199 = vmatmul.mubr.bf16.vlgmr.msra.gmra.mrb[0].mxu0 %v433_v56  ;;  %2651 = vmatmul.mubr.bf16.vlgmr.msra.gmra.mrb[0].mxu1 %v433_v56  ;;  %v4990_v56 = vld [vmem:[#allocation5 + $0x528] ss:$16 sps:$4 sm:$0xff]  }
  0xd8   : > { %2280 = vmatpush1.bf16.msra.mxu0 %v4933_v55  ;;  %2732 = vmatpush1.bf16.msra.mxu1 %v4936_v59  ;;  %v474_v55 = vpack.c.bf16 %v394_v51, %v386_v50  ;;  %v4995_v59 = vld [vmem:[#allocation5 + $0x544] ss:$16 sps:$4 sm:$0xff]  }
  0xd9   : > { %2281 = vmatprep.subr.bf16.mxu0 %v4941_v60  ;;  %2733 = vmatprep.subr.bf16.mxu1 %v4944_v61  ;;  %v4998_v60 = vld [vmem:[#allocation5 + $0x54c] ss:$16 sps:$4 sm:$0xff]   ;;  %v4993_v61 = vld [vmem:[#allocation5 + $0x540] ss:$16 sps:$4 sm:$0xff]   ;;  %v5043_v51 = vld [vmem:[#allocation5 + $0x644] ss:$16 sps:$4 sm:$0xff]  }
  0xda   : > { %2208 = vmatprep.mubr.bf16.mxu0 %v442_v0  ;;  %2660 = vmatprep.mubr.bf16.mxu1 %v442_v0  ;;  %v410_v0 = vld [vmem:[%s5539_s15 + $0x358] sm:$0xff]  ;;  %v331_v50 = vld [vmem:[%s5539_s15 + $0xe0] sm:$0xff] }
  0xdc   : > { %2282 = vmatpush1.bf16.msra.mxu0 %v4939_v62  ;;  %2734 = vmatpush1.bf16.msra.mxu1 %v4942_v63  ;;  %v473_v62 = vpack.c.bf16 %v393_v58, %v385_v57  ;;  %v402_v63 = vld [vmem:[%s5539_s15 + $0x318] sm:$0xff]  ;;  %v348_v57 = vld [vmem:[%s5539_s15 + $0x168] sm:$0xff]  ;;  %v5049_v58 = vld [vmem:[#allocation5 + $0x664] ss:$16 sps:$4 sm:$0xff]  }
  0xdd   : > { %2283 = vmatprep.subr.bf16.mxu0 %v4947_v3  ;;  %2735 = vmatprep.subr.bf16.mxu1 %v4950_v4  ;;  %v5004_v3 = vld [vmem:[#allocation5 + $0x56c] ss:$16 sps:$4 sm:$0xff]   ;;  %v4999_v4 = vld [vmem:[#allocation5 + $0x560] ss:$16 sps:$4 sm:$0xff]   ;;  %v482_v6 = vpack.c.bf16 %v410_v0, %v402_v63 }
  0xde   : > { %v339_v63 = vld [vmem:[%s5539_s15 + $0x120] sm:$0xff] }
  0xdf   : > { %2209 = vmatmul.mubr.bf16.gmra.mrb[4].mxu0 %v441_v5  ;;  %2661 = vmatmul.mubr.bf16.gmra.mrb[4].mxu1 %v441_v5  ;;  %v5002_v5 = vld [vmem:[#allocation5 + $0x568] ss:$16 sps:$4 sm:$0xff]   ;;  %v347_v0 = vld [vmem:[%s5539_s15 + $0x160] sm:$0xff] }
  0xe0   : > { %2284 = vmatpush1.bf16.msra.mxu0 %v4945_v8  ;;  %2736 = vmatpush1.bf16.msra.mxu1 %v4948_v9  ;;  %v409_v8 = vld [vmem:[%s5539_s15 + $0x350] sm:$0xff] }
  0xe1   : > { %2285 = vmatprep.subr.bf16.mxu0 %v4953_v10  ;;  %2737 = vmatprep.subr.bf16.mxu1 %v4956_v11  ;;  %v5007_v9 = vld [vmem:[#allocation5 + $0x584] ss:$16 sps:$4 sm:$0xff]   ;;  %v5010_v10 = vld [vmem:[#allocation5 + $0x58c] ss:$16 sps:$4 sm:$0xff]   ;;  %v481_v11 = vpack.c.bf16 %v409_v8, %v401_v7  ;;  %v5056_v7 = vld [vmem:[#allocation5 + $0x688] ss:$16 sps:$4 sm:$0xff]  }
  0xe2   : > { %2218 = vmatprep.mubr.bf16.mxu0 %v450_v14  ;;  %2670 = vmatprep.mubr.bf16.mxu1 %v450_v14  ;;  %v5005_v14 = vld [vmem:[#allocation5 + $0x580] ss:$16 sps:$4 sm:$0xff]   ;;  %v5061_v8 = vld [vmem:[#allocation5 + $0x6a4] ss:$16 sps:$4 sm:$0xff]  }
  0xe4   : > { %2286 = vmatpush1.bf16.msra.mxu0 %v4951_v12  ;;  %2738 = vmatpush1.bf16.msra.mxu1 %v4954_v13  ;;  %v418_v12 = vld [vmem:[%s5539_s15 + $0x398] sm:$0xff] }
  0xe5   : > { %2287 = vmatprep.subr.bf16.mxu0 %v4959_v17  ;;  %2739 = vmatprep.subr.bf16.mxu1 %v4962_v18  ;;  %v426_v13 = vld [vmem:[%s5539_s15 + $0x3d8] sm:$0xff]  ;;  %v5011_v18 = vld [vmem:[#allocation5 + $0x5a0] ss:$16 sps:$4 sm:$0xff]  }
  0xe6   : > { %v5016_v17 = vld [vmem:[#allocation5 + $0x5ac] ss:$16 sps:$4 sm:$0xff]  }
  0xe7   : > { %2219 = vmatmul.mubr.bf16.gmra.mrb[8].mxu0 %v449_v20  ;;  %2671 = vmatmul.mubr.bf16.gmra.mrb[8].mxu1 %v449_v20  ;;  %v490_v20 = vpack.c.bf16 %v426_v13, %v418_v12  ;;  %v5062_v12 = vld [vmem:[#allocation5 + $0x6a8] ss:$16 sps:$4 sm:$0xff]   ;;  %v355_v13 = vld [vmem:[%s5539_s15 + $0x1a0] sm:$0xff] }
  0xe8   : > { %2288 = vmatpush1.bf16.msra.mxu0 %v4957_v19  ;;  %2740 = vmatpush1.bf16.msra.mxu1 %v4960_v21  ;;  %v5014_v19 = vld [vmem:[#allocation5 + $0x5a8] ss:$16 sps:$4 sm:$0xff]   ;;  %v417_v21 = vld [vmem:[%s5539_s15 + $0x390] sm:$0xff] }
  0xe9   : > { %2289 = vmatprep.subr.bf16.mxu0 %v4965_v24  ;;  %2741 = vmatprep.subr.bf16.mxu1 %v4968_v25  ;;  %v5022_v24 = vld [vmem:[#allocation5 + $0x5cc] ss:$16 sps:$4 sm:$0xff]   ;;  %v5017_v25 = vld [vmem:[#allocation5 + $0x5c0] ss:$16 sps:$4 sm:$0xff]  }
  0xea   : > { %2228 = vmatprep.mubr.bf16.mxu0 %v458_v27  ;;  %2680 = vmatprep.mubr.bf16.mxu1 %v458_v27  ;;  %v5020_v27 = vld [vmem:[#allocation5 + $0x5c8] ss:$16 sps:$4 sm:$0xff]  }
  0xec   : > { %2290 = vmatpush1.bf16.msra.mxu0 %v4963_v26  ;;  %2742 = vmatpush1.bf16.msra.mxu1 %v4966_v28  ;;  %v489_v26 = vpack.c.bf16 %v425_v22, %v417_v21  ;;  %v308_v28 = vld [vmem:[%s5539_s15 + $0x28] sm:$0xff]  ;;  %v5073_v22 = vld [vmem:[#allocation5 + $0x6e4] ss:$16 sps:$4 sm:$0xff]  }
  0xed   : > { %2291 = vmatprep.subr.bf16.mxu0 %v4971_v31  ;;  %2743 = vmatprep.subr.bf16.mxu1 %v4974_v32  ;;  %v5028_v31 = vld [vmem:[#allocation5 + $0x5ec] ss:$16 sps:$4 sm:$0xff]   ;;  %v5023_v32 = vld [vmem:[#allocation5 + $0x5e0] ss:$16 sps:$4 sm:$0xff]  }
  0xee   : > { %v380_v21 = vld [vmem:[%s5539_s15 + $0x268] sm:$0xff] }
  0xef   : > { %2229 = vmatmul.mubr.bf16.gmra.mrb[12].mxu0 %v457_v35  ;;  %2681 = vmatmul.mubr.bf16.gmra.mrb[12].mxu1 %v457_v35  ;;  %v307_v35 = vld [vmem:[%s5539_s15 + $0x20] sm:$0xff] }
  0xf0   : > { %2292 = vmatpush1.bf16.msra.mxu0 %v4969_v33  ;;  %2744 = vmatpush1.bf16.msra.mxu1 %v4972_v34  ;;  %v436_v33 = vpack.c.bf16 %v316_v29, %v308_v28  ;;  %v5026_v34 = vld [vmem:[#allocation5 + $0x5e8] ss:$16 sps:$4 sm:$0xff]   ;;  %v379_v28 = vld [vmem:[%s5539_s15 + $0x260] sm:$0xff] }
  0xf1   : > { %2293 = vmatprep.subr.bf16.mxu0 %v4977_v38  ;;  %2745 = vmatprep.subr.bf16.mxu1 %v4980_v39  ;;  %v5034_v38 = vld [vmem:[#allocation5 + $0x60c] ss:$16 sps:$4 sm:$0xff]   ;;  %v5029_v39 = vld [vmem:[#allocation5 + $0x600] ss:$16 sps:$4 sm:$0xff]   ;;  %v5079_v29 = vld [vmem:[#allocation5 + $0x704] ss:$16 sps:$4 sm:$0xff]  }
  0xf2   : > { %2238 = vmatprep.mubr.bf16.mxu0 %v466_v40  ;;  %2690 = vmatprep.mubr.bf16.mxu1 %v466_v40  ;;  %v5032_v40 = vld [vmem:[#allocation5 + $0x608] ss:$16 sps:$4 sm:$0xff]  }
  0xf4   : > { %2294 = vmatpush1.bf16.msra.mxu0 %v4975_v41  ;;  %2746 = vmatpush1.bf16.msra.mxu1 %v4978_v42  ;;  %v435_v41 = vpack.c.bf16 %v315_v36, %v307_v35  ;;  %v324_v42 = vld [vmem:[%s5539_s15 + $0xa8] sm:$0xff]  ;;  %v5085_v36 = vld [vmem:[#allocation5 + $0x724] ss:$16 sps:$4 sm:$0xff]  }
  0xf5   : > { %2295 = vmatprep.subr.bf16.mxu0 %v4983_v45  ;;  %2747 = vmatprep.subr.bf16.mxu1 %v4986_v46  ;;  %v5040_v45 = vld [vmem:[#allocation5 + $0x62c] ss:$16 sps:$4 sm:$0xff]   ;;  %v444_v46 = vpack.c.bf16 %v332_v43, %v324_v42  ;;  %v395_v42 = vld [vmem:[%s5539_s15 + $0x2e0] sm:$0xff] }
  0xf6   : > { %v396_v35 = vld [vmem:[%s5539_s15 + $0x2e8] sm:$0xff]  ;;  %v5091_v43 = vld [vmem:[#allocation5 + $0x744] ss:$16 sps:$4 sm:$0xff]  }
  0xf7   : > { %2239 = vmatmul.mubr.bf16.gmra.mrb[16].mxu0 %v465_v49  ;;  %2691 = vmatmul.mubr.bf16.gmra.mrb[16].mxu1 %v465_v49  ;;  %v323_v49 = vld [vmem:[%s5539_s15 + $0xa0] sm:$0xff] }
  0xf8   : > { %2296 = vmatpush1.bf16.msra.mxu0 %v4981_v47  ;;  %2748 = vmatpush1.bf16.msra.mxu1 %v4984_v48  ;;  %v5035_v47 = vld [vmem:[#allocation5 + $0x620] ss:$16 sps:$4 sm:$0xff]   ;;  %v5038_v48 = vld [vmem:[#allocation5 + $0x628] ss:$16 sps:$4 sm:$0xff]  }
  0xf9   : > { %2297 = vmatprep.subr.bf16.mxu0 %v4989_v52  ;;  %2749 = vmatprep.subr.bf16.mxu1 %v4992_v53  ;;  %v5046_v52 = vld [vmem:[#allocation5 + $0x64c] ss:$16 sps:$4 sm:$0xff]   ;;  %v5041_v53 = vld [vmem:[#allocation5 + $0x640] ss:$16 sps:$4 sm:$0xff]  }
  0xfa   : > { %2248 = vmatprep.mubr.bf16.mxu0 %v474_v55  ;;  %2700 = vmatprep.mubr.bf16.mxu1 %v474_v55  ;;  %v443_v55 = vpack.c.bf16 %v331_v50, %v323_v49  ;;  %v412_v49 = vld [vmem:[%s5539_s15 + $0x368] sm:$0xff]  ;;  %v5097_v50 = vld [vmem:[#allocation5 + $0x764] ss:$16 sps:$4 sm:$0xff]  }
  0xfc   : > { %2298 = vmatpush1.bf16.msra.mxu0 %v4987_v54  ;;  %2750 = vmatpush1.bf16.msra.mxu1 %v4990_v56  ;;  %v5044_v54 = vld [vmem:[#allocation5 + $0x648] ss:$16 sps:$4 sm:$0xff]  }
  0xfd   : > { %2299 = vmatprep.subr.bf16.mxu0 %v4995_v59  ;;  %2751 = vmatprep.subr.bf16.mxu1 %v4998_v60  ;;  %v340_v56 = vld [vmem:[%s5539_s15 + $0x128] sm:$0xff] }
  0xfe   : > { %v5052_v59 = vld [vmem:[#allocation5 + $0x66c] ss:$16 sps:$4 sm:$0xff]   ;;  %v452_v60 = vpack.c.bf16 %v348_v57, %v340_v56  ;;  %v411_v56 = vld [vmem:[%s5539_s15 + $0x360] sm:$0xff] }
  0xff   : > { %2249 = vmatmul.mubr.bf16.gmra.mrb[20].mxu0 %v473_v62  ;;  %2701 = vmatmul.mubr.bf16.gmra.mrb[20].mxu1 %v473_v62  ;;  %v5050_v62 = vld [vmem:[#allocation5 + $0x668] ss:$16 sps:$4 sm:$0xff]   ;;  %v5103_v57 = vld [vmem:[#allocation5 + $0x784] ss:$16 sps:$4 sm:$0xff]  }
 0x100   : > { %2300 = vmatpush1.bf16.msra.mxu0 %v4993_v61  ;;  %2752 = vmatpush1.bf16.msra.mxu1 %v4996_v1  ;;  %v5047_v61 = vld [vmem:[#allocation5 + $0x660] ss:$16 sps:$4 sm:$0xff]   ;;  %v5055_v1 = vld [vmem:[#allocation5 + $0x684] ss:$16 sps:$4 sm:$0xff]  }
 0x101   : > { %2301 = vmatprep.subr.bf16.mxu0 %v5001_v2  ;;  %2753 = vmatprep.subr.bf16.mxu1 %v5004_v3  ;;  %v5058_v2 = vld [vmem:[#allocation5 + $0x68c] ss:$16 sps:$4 sm:$0xff]   ;;  %v451_v3 = vpack.c.bf16 %v347_v0, %v339_v63  ;;  %v5104_v63 = vld [vmem:[#allocation5 + $0x788] ss:$16 sps:$4 sm:$0xff]   ;;  %v5109_v0 = vld [vmem:[#allocation5 + $0x7a4] ss:$16 sps:$4 sm:$0xff]  }
 0x102   : > { %2258 = vmatprep.mubr.bf16.mxu0 %v482_v6  ;;  %2710 = vmatprep.mubr.bf16.mxu1 %v482_v6  ;;  %v5053_v6 = vld [vmem:[#allocation5 + $0x680] ss:$16 sps:$4 sm:$0xff]  }
 0x104   : > { %2302 = vmatpush1.bf16.msra.mxu0 %v4999_v4  ;;  %2754 = vmatpush1.bf16.msra.mxu1 %v5002_v5  ;;  %v356_v4 = vld [vmem:[%s5539_s15 + $0x1a8] sm:$0xff] }
 0x105   : > { %2303 = vmatprep.subr.bf16.mxu0 %v5007_v9  ;;  %2755 = vmatprep.subr.bf16.mxu1 %v5010_v10  ;;  %v364_v5 = vld [vmem:[%s5539_s15 + $0x1e8] sm:$0xff] }
 0x106   : > { %v5064_v9 = vld [vmem:[#allocation5 + $0x6ac] ss:$16 sps:$4 sm:$0xff]   ;;  %v460_v10 = vpack.c.bf16 %v364_v5, %v356_v4  ;;  %v419_v5 = vld [vmem:[%s5539_s15 + $0x3a0] sm:$0xff] }
 0x107   : > { %2259 = vmatmul.mubr.bf16.gmra.mrb[24].mxu0 %v481_v11  ;;  %2711 = vmatmul.mubr.bf16.gmra.mrb[24].mxu1 %v481_v11  ;;  %v5059_v11 = vld [vmem:[#allocation5 + $0x6a0] ss:$16 sps:$4 sm:$0xff]  }
 0x108   : > { %2304 = vmatpush1.bf16.msra.mxu0 %v5005_v14  ;;  %2756 = vmatpush1.bf16.msra.mxu1 %v5008_v15  ;;  %v363_v14 = vld [vmem:[%s5539_s15 + $0x1e0] sm:$0xff] }
 0x109   : > { %2305 = vmatprep.subr.bf16.mxu0 %v5013_v16  ;;  %2757 = vmatprep.subr.bf16.mxu1 %v5016_v17  ;;  %v5067_v15 = vld [vmem:[#allocation5 + $0x6c4] ss:$16 sps:$4 sm:$0xff]   ;;  %v5070_v16 = vld [vmem:[#allocation5 + $0x6cc] ss:$16 sps:$4 sm:$0xff]   ;;  %v5065_v17 = vld [vmem:[#allocation5 + $0x6c0] ss:$16 sps:$4 sm:$0xff]  }
 0x10a   : > { %2268 = vmatprep.mubr.bf16.mxu0 %v490_v20  ;;  %2720 = vmatprep.mubr.bf16.mxu1 %v490_v20  ;;  %v459_v20 = vpack.c.bf16 %v363_v14, %v355_v13  ;;  %v5116_v13 = vld [vmem:[#allocation5 + $0x7c8] ss:$16 sps:$4 sm:$0xff]   ;;  %v5121_v14 = vld [vmem:[#allocation5 + $0x7e4] ss:$16 sps:$4 sm:$0xff]  }
 0x10c   : > { %2306 = vmatpush1.bf16.msra.mxu0 %v5011_v18  ;;  %2758 = vmatpush1.bf16.msra.mxu1 %v5014_v19  ;;  %v5068_v18 = vld [vmem:[#allocation5 + $0x6c8] ss:$16 sps:$4 sm:$0xff]  }
 0x10d   : > { %2307 = vmatprep.subr.bf16.mxu0 %v5019_v23  ;;  %2759 = vmatprep.subr.bf16.mxu1 %v5022_v24  ;;  %v372_v19 = vld [vmem:[%s5539_s15 + $0x228] sm:$0xff]  ;;  %v5071_v24 = vld [vmem:[#allocation5 + $0x6e0] ss:$16 sps:$4 sm:$0xff]  }
 0x10e   : > { %v5076_v23 = vld [vmem:[#allocation5 + $0x6ec] ss:$16 sps:$4 sm:$0xff]  }
 0x10f   : > { %2269 = vmatmul.mubr.bf16.gmra.mrb[28].mxu0 %v489_v26  ;;  %2721 = vmatmul.mubr.bf16.gmra.mrb[28].mxu1 %v489_v26  ;;  %v468_v26 = vpack.c.bf16 %v380_v21, %v372_v19  ;;  %v309_v19 = vld [vmem:[%s5539_s15 + $0x30] sm:$0xff]  ;;  %v326_v21 = vld [vmem:[%s5539_s15 + $0xb8] sm:$0xff] }
 0x110   : > { %2308 = vmatpush1.bf16.msra.mxu0 %v5017_v25  ;;  %2760 = vmatpush1.bf16.msra.mxu1 %v5020_v27  ;;  %v5074_v25 = vld [vmem:[#allocation5 + $0x6e8] ss:$16 sps:$4 sm:$0xff]   ;;  %v371_v27 = vld [vmem:[%s5539_s15 + $0x220] sm:$0xff] }
 0x111   : > { %2309 = vmatprep.subr.bf16.mxu0 %v5025_v30  ;;  %2761 = vmatprep.subr.bf16.mxu1 %v5028_v31  ;;  %v5082_v30 = vld [vmem:[#allocation5 + $0x70c] ss:$16 sps:$4 sm:$0xff]   ;;  %v5077_v31 = vld [vmem:[#allocation5 + $0x700] ss:$16 sps:$4 sm:$0xff]  }
 0x112   : > { %2311 = vmatprep.mubr.bf16.mxu0 %v436_v33  ;;  %2763 = vmatprep.mubr.bf16.mxu1 %v436_v33  ;;  %v388_v33 = vld [vmem:[%s5539_s15 + $0x2a8] sm:$0xff] }
 0x114   : > { %2310 = vmatpush1.bf16.msra.mxu0 %v5023_v32  ;;  %2762 = vmatpush1.bf16.msra.mxu1 %v5026_v34  ;;  %v5080_v32 = vld [vmem:[#allocation5 + $0x708] ss:$16 sps:$4 sm:$0xff]   ;;  %v467_v34 = vpack.c.bf16 %v379_v28, %v371_v27  ;;  %v5126_v27 = vld [vmem:[%s6236_s3] sm:$0xff]  }
 0x115   : > { %2392 = vmatprep.subr.bf16.mxu0 %v5031_v37  ;;  %2844 = vmatprep.subr.bf16.mxu1 %v5034_v38  ;;  %v5088_v37 = vld [vmem:[#allocation5 + $0x72c] ss:$16 sps:$4 sm:$0xff]   ;;  %v5083_v38 = vld [vmem:[#allocation5 + $0x720] ss:$16 sps:$4 sm:$0xff]  }
 0x116   : > { %v5128_v28 = vld [vmem:[%s6236_s3 + $0x80] sm:$0xff]  }
 0x117   : > { %2312 = vmatmul.mubr.bf16.vlgmr.msra.gmra.mrb[0].mxu0 %v435_v41  ;;  %2764 = vmatmul.mubr.bf16.vlgmr.msra.gmra.mrb[0].mxu1 %v435_v41  ;;  %v387_v41 = vld [vmem:[%s5539_s15 + $0x2a0] sm:$0xff] }
 0x118   : > { %2393 = vmatpush1.bf16.msra.mxu0 %v5029_v39  ;;  %2845 = vmatpush1.bf16.msra.mxu1 %v5032_v40  ;;  %v5086_v39 = vld [vmem:[#allocation5 + $0x728] ss:$16 sps:$4 sm:$0xff]   ;;  %v476_v40 = vpack.c.bf16 %v396_v35, %v388_v33 }
 0x119   : > { %2394 = vmatprep.subr.bf16.mxu0 %v5037_v44  ;;  %2846 = vmatprep.subr.bf16.mxu1 %v5040_v45  ;;  %v5094_v44 = vld [vmem:[#allocation5 + $0x74c] ss:$16 sps:$4 sm:$0xff]   ;;  %v5089_v45 = vld [vmem:[#allocation5 + $0x740] ss:$16 sps:$4 sm:$0xff]  }
 0x11a   : > { %2321 = vmatprep.mubr.bf16.mxu0 %v444_v46  ;;  %2773 = vmatprep.mubr.bf16.mxu1 %v444_v46  ;;  %v5092_v46 = vld [vmem:[#allocation5 + $0x748] ss:$16 sps:$4 sm:$0xff]  }
 0x11b   : > { %v342_v33 = vld [vmem:[%s5539_s15 + $0x138] sm:$0xff]  ;;  %v5130_v35 = vld [vmem:[%s6236_s3 + $0x8] sm:$0xff]  }
 0x11c   : > { %2395 = vmatpush1.bf16.msra.mxu0 %v5035_v47  ;;  %2847 = vmatpush1.bf16.msra.mxu1 %v5038_v48  ;;  %v404_v47 = vld [vmem:[%s5539_s15 + $0x328] sm:$0xff]  ;;  %v475_v48 = vpack.c.bf16 %v395_v42, %v387_v41  ;;  %v5134_v41 = vld [vmem:[%s6236_s3 + $0x10] sm:$0xff]  }
 0x11d   : > { %2396 = vmatprep.subr.bf16.mxu0 %v5043_v51  ;;  %2848 = vmatprep.subr.bf16.mxu1 %v5046_v52  ;;  %v5100_v51 = vld [vmem:[#allocation5 + $0x76c] ss:$16 sps:$4 sm:$0xff]   ;;  %v5095_v52 = vld [vmem:[#allocation5 + $0x760] ss:$16 sps:$4 sm:$0xff]  }
 0x11e   : > { %v5136_v42 = vld [vmem:[%s6236_s3 + $0x90] sm:$0xff]  }
 0x11f   : > { %2322 = vmatmul.mubr.bf16.gmra.mrb[4].mxu0 %v443_v55  ;;  %2774 = vmatmul.mubr.bf16.gmra.mrb[4].mxu1 %v443_v55  ;;  %v403_v55 = vld [vmem:[%s5539_s15 + $0x320] sm:$0xff] }
 0x120   : > { %2397 = vmatpush1.bf16.msra.mxu0 %v5041_v53  ;;  %2849 = vmatpush1.bf16.msra.mxu1 %v5044_v54  ;;  %v5098_v53 = vld [vmem:[#allocation5 + $0x768] ss:$16 sps:$4 sm:$0xff]   ;;  %v484_v54 = vpack.c.bf16 %v412_v49, %v404_v47 }
 0x121   : > { %2398 = vmatprep.subr.bf16.mxu0 %v5049_v58  ;;  %2850 = vmatprep.subr.bf16.mxu1 %v5052_v59  ;;  %v5106_v58 = vld [vmem:[#allocation5 + $0x78c] ss:$16 sps:$4 sm:$0xff]   ;;  %v5101_v59 = vld [vmem:[#allocation5 + $0x780] ss:$16 sps:$4 sm:$0xff]  }
 0x122   : > { %2331 = vmatprep.mubr.bf16.mxu0 %v452_v60  ;;  %2783 = vmatprep.mubr.bf16.mxu1 %v452_v60  ;;  %v420_v60 = vld [vmem:[%s5539_s15 + $0x3a8] sm:$0xff]  ;;  %v358_v47 = vld [vmem:[%s5539_s15 + $0x1b8] sm:$0xff] }
 0x123   : > { %v5138_v49 = vld [vmem:[%s6236_s3 + $0x18] sm:$0xff]  }
 0x124   : > { %2399 = vmatpush1.bf16.msra.mxu0 %v5047_v61  ;;  %2851 = vmatpush1.bf16.msra.mxu1 %v5050_v62  ;;  %v483_v61 = vpack.c.bf16 %v411_v56, %v403_v55  ;;  %v428_v62 = vld [vmem:[%s5539_s15 + $0x3e8] sm:$0xff]  ;;  %v5142_v55 = vld [vmem:[%s6236_s3 + $0x20] sm:$0xff]  }
 0x125   : > { %2400 = vmatprep.subr.bf16.mxu0 %v5055_v1  ;;  %2852 = vmatprep.subr.bf16.mxu1 %v5058_v2  ;;  %v5112_v1 = vld [vmem:[#allocation5 + $0x7ac] ss:$16 sps:$4 sm:$0xff]   ;;  %v5107_v2 = vld [vmem:[#allocation5 + $0x7a0] ss:$16 sps:$4 sm:$0xff]   ;;  %v492_v4 = vpack.c.bf16 %v428_v62, %v420_v60 }
 0x126   : > { %v5144_v56 = vld [vmem:[%s6236_s3 + $0xa0] sm:$0xff]   ;;  %v365_v60 = vld [vmem:[%s5539_s15 + $0x1f0] sm:$0xff]  ;;  %v382_v62 = vld [vmem:[%s5539_s15 + $0x278] sm:$0xff] }
 0x127   : > { %2332 = vmatmul.mubr.bf16.gmra.mrb[8].mxu0 %v451_v3  ;;  %2784 = vmatmul.mubr.bf16.gmra.mrb[8].mxu1 %v451_v3  ;;  %v5110_v3 = vld [vmem:[#allocation5 + $0x7a8] ss:$16 sps:$4 sm:$0xff]  }
 0x128   : > { %2401 = vmatpush1.bf16.msra.mxu0 %v5053_v6  ;;  %2853 = vmatpush1.bf16.msra.mxu1 %v5056_v7  ;;  %v427_v6 = vld [vmem:[%s5539_s15 + $0x3e0] sm:$0xff] }
 0x129   : > { %2402 = vmatprep.subr.bf16.mxu0 %v5061_v8  ;;  %2854 = vmatprep.subr.bf16.mxu1 %v5064_v9  ;;  %v5115_v7 = vld [vmem:[#allocation5 + $0x7c4] ss:$16 sps:$4 sm:$0xff]   ;;  %v5118_v8 = vld [vmem:[#allocation5 + $0x7cc] ss:$16 sps:$4 sm:$0xff]   ;;  %v491_v9 = vpack.c.bf16 %v427_v6, %v419_v5 }
 0x12a   : > { %2341 = vmatprep.mubr.bf16.mxu0 %v460_v10  ;;  %2793 = vmatprep.mubr.bf16.mxu1 %v460_v10  ;;  %v310_v10 = vld [vmem:[%s5539_s15 + $0x38] sm:$0xff]  ;;  %v5150_v5 = vld [vmem:[%s6236_s3 + $0x30] sm:$0xff]  }
 0x12b   : > { %v5152_v6 = vld [vmem:[%s6236_s3 + $0xb0] sm:$0xff]  }
 0x12c   : > { %2403 = vmatpush1.bf16.msra.mxu0 %v5059_v11  ;;  %2855 = vmatpush1.bf16.msra.mxu1 %v5062_v12  ;;  %v318_v11 = vld [vmem:[%s5539_s15 + $0x78] sm:$0xff]  ;;  %v5113_v12 = vld [vmem:[#allocation5 + $0x7c0] ss:$16 sps:$4 sm:$0xff]  }
 0x12d   : > { %2404 = vmatprep.subr.bf16.mxu0 %v5067_v15  ;;  %2856 = vmatprep.subr.bf16.mxu1 %v5070_v16  ;;  %v5124_v15 = vld [vmem:[#allocation5 + $0x7ec] ss:$16 sps:$4 sm:$0xff]   ;;  %v438_v16 = vpack.c.bf16 %v318_v11, %v310_v10 }
 0x12e   : > { %v398_v10 = vld [vmem:[%s5539_s15 + $0x2f8] sm:$0xff] }
 0x12f   : > { %2342 = vmatmul.mubr.bf16.gmra.mrb[12].mxu0 %v459_v20  ;;  %2794 = vmatmul.mubr.bf16.gmra.mrb[12].mxu1 %v459_v20  ;;  %v317_v20 = vld [vmem:[%s5539_s15 + $0x70] sm:$0xff] }
 0x130   : > { %2405 = vmatpush1.bf16.msra.mxu0 %v5065_v17  ;;  %2857 = vmatpush1.bf16.msra.mxu1 %v5068_v18  ;;  %v5119_v17 = vld [vmem:[#allocation5 + $0x7e0] ss:$16 sps:$4 sm:$0xff]   ;;  %v5122_v18 = vld [vmem:[#allocation5 + $0x7e8] ss:$16 sps:$4 sm:$0xff]  }
 0x131   : > { %2406 = vmatprep.subr.bf16.mxu0 %v5073_v22  ;;  %2858 = vmatprep.subr.bf16.mxu1 %v5076_v23  ;;  %v334_v22 = vld [vmem:[%s5539_s15 + $0xf8] sm:$0xff]  ;;  %v5125_v23 = vld [vmem:[%s6236_s3 + $0x40] sm:$0xff]  }
 0x132   : > { %2351 = vmatprep.mubr.bf16.mxu0 %v468_v26  ;;  %2803 = vmatprep.mubr.bf16.mxu1 %v468_v26  ;;  %v446_v26 = vpack.c.bf16 %v334_v22, %v326_v21  ;;  %v422_v21 = vld [vmem:[%s5539_s15 + $0x3b8] sm:$0xff] }
 0x133   : > { %v430_v22 = vld [vmem:[%s5539_s15 + $0x3f8] sm:$0xff] }
 0x134   : > { %2407 = vmatpush1.bf16.msra.mxu0 %v5071_v24  ;;  %2859 = vmatpush1.bf16.msra.mxu1 %v5074_v25  ;;  %v5127_v24 = vld [vmem:[%s6236_s3 + $0xc0] sm:$0xff]   ;;  %v437_v25 = vpack.c.bf16 %v317_v20, %v309_v19  ;;  %v405_v19 = vld [vmem:[%s5539_s15 + $0x330] sm:$0xff] }
 0x135   : > { %2408 = vmatprep.subr.bf16.mxu0 %v5079_v29  ;;  %2860 = vmatprep.subr.bf16.mxu1 %v5082_v30  ;;  %v5129_v29 = vld [vmem:[%s6236_s3 + $0x48] sm:$0xff]   ;;  %v413_v20 = vld [vmem:[%s5539_s15 + $0x370] sm:$0xff] }
 0x136   : > { %v5131_v30 = vld [vmem:[%s6236_s3 + $0xc8] sm:$0xff]  }
 0x137   : > { %2352 = vmatmul.mubr.bf16.gmra.mrb[16].mxu0 %v467_v34  ;;  %2804 = vmatmul.mubr.bf16.gmra.mrb[16].mxu1 %v467_v34  ;;  %v350_v34 = vld [vmem:[%s5539_s15 + $0x178] sm:$0xff] }
 0x138   : > { %2409 = vmatpush1.bf16.msra.mxu0 %v5077_v31  ;;  %2861 = vmatpush1.bf16.msra.mxu1 %v5080_v32  ;;  %v325_v31 = vld [vmem:[%s5539_s15 + $0xb0] sm:$0xff] }
 0x139   : > { %2410 = vmatprep.subr.bf16.mxu0 %v5085_v36  ;;  %2862 = vmatprep.subr.bf16.mxu1 %v5088_v37  ;;  %v333_v32 = vld [vmem:[%s5539_s15 + $0xf0] sm:$0xff]  ;;  %v5132_v36 = vld [vmem:[%s6236_s3 + $0x88] sm:$0xff]  }
 0x13a   : > { %2361 = vmatprep.mubr.bf16.mxu0 %v476_v40  ;;  %2813 = vmatprep.mubr.bf16.mxu1 %v476_v40  ;;  %v5133_v37 = vld [vmem:[%s6236_s3 + $0x50] sm:$0xff]   ;;  %v454_v40 = vpack.c.bf16 %v350_v34, %v342_v33 }
 0x13c   : > { %2411 = vmatpush1.bf16.msra.mxu0 %v5083_v38  ;;  %2863 = vmatpush1.bf16.msra.mxu1 %v5086_v39  ;;  %v5135_v38 = vld [vmem:[%s6236_s3 + $0xd0] sm:$0xff]   ;;  %v445_v39 = vpack.c.bf16 %v333_v32, %v325_v31  ;;  %v5156_v31 = vld [vmem:[%s6236_s3 + $0xb8] sm:$0xff]   ;;  %v753_v32 = vlaneseq }
 0x13d   : > { %2412 = vmatprep.subr.bf16.mxu0 %v5091_v43  ;;  %2864 = vmatprep.subr.bf16.mxu1 %v5094_v44  ;;  %v5137_v43 = vld [vmem:[%s6236_s3 + $0x58] sm:$0xff]  }
 0x13e   : > { %v5139_v44 = vld [vmem:[%s6236_s3 + $0xd8] sm:$0xff]   ;;  %v754_v33 = vshrl.u32 %v753_v32, 7 }
 0x13f   : > { %2362 = vmatmul.mubr.bf16.gmra.mrb[20].mxu0 %v475_v48  ;;  %2814 = vmatmul.mubr.bf16.gmra.mrb[20].mxu1 %v475_v48  ;;  %v366_v48 = vld [vmem:[%s5539_s15 + $0x1f8] sm:$0xff] }
 0x140   : > { %2413 = vmatpush1.bf16.msra.mxu0 %v5089_v45  ;;  %2865 = vmatpush1.bf16.msra.mxu1 %v5092_v46  ;;  %v341_v45 = vld [vmem:[%s5539_s15 + $0x130] sm:$0xff]  ;;  %v755_v34 = vsub.s32 0, %v754_v33 }
 0x141   : > { %2414 = vmatprep.subr.bf16.mxu0 %v5097_v50  ;;  %2866 = vmatprep.subr.bf16.mxu1 %v5100_v51  ;;  %v349_v46 = vld [vmem:[%s5539_s15 + $0x170] sm:$0xff]  ;;  %v5140_v50 = vld [vmem:[%s6236_s3 + $0x98] sm:$0xff]   ;;  %v5141_v51 = vld [vmem:[%s6236_s3 + $0x60] sm:$0xff]  }
 0x142   : > { %2371 = vmatprep.mubr.bf16.mxu0 %v484_v54  ;;  %2823 = vmatprep.mubr.bf16.mxu1 %v484_v54  ;;  %v462_v54 = vpack.c.bf16 %v366_v48, %v358_v47 }
 0x144   : > { %2415 = vmatpush1.bf16.msra.mxu0 %v5095_v52  ;;  %2867 = vmatpush1.bf16.msra.mxu1 %v5098_v53  ;;  %v5143_v52 = vld [vmem:[%s6236_s3 + $0xe0] sm:$0xff]   ;;  %v453_v53 = vpack.c.bf16 %v349_v46, %v341_v45 }
 0x145   : > { %2416 = vmatprep.subr.bf16.mxu0 %v5103_v57  ;;  %2868 = vmatprep.subr.bf16.mxu1 %v5106_v58  ;;  %v5145_v57 = vld [vmem:[%s6236_s3 + $0x68] sm:$0xff]  }
 0x146   : > { %v5147_v58 = vld [vmem:[%s6236_s3 + $0xe8] sm:$0xff]  }
 0x147   : > { %2372 = vmatmul.mubr.bf16.gmra.mrb[24].mxu0 %v483_v61  ;;  %2824 = vmatmul.mubr.bf16.gmra.mrb[24].mxu1 %v483_v61  ;;  %v374_v61 = vld [vmem:[%s5539_s15 + $0x238] sm:$0xff] }
 0x148   : > { %2417 = vmatpush1.bf16.msra.mxu0 %v5101_v59  ;;  %2869 = vmatpush1.bf16.msra.mxu1 %v5104_v63  ;;  %v357_v59 = vld [vmem:[%s5539_s15 + $0x1b0] sm:$0xff]  ;;  %v5146_v63 = vld [vmem:[%s6236_s3 + $0x28] sm:$0xff]  }
 0x149   : > { %2418 = vmatprep.subr.bf16.mxu0 %v5109_v0  ;;  %2870 = vmatprep.subr.bf16.mxu1 %v5112_v1  ;;  %v5148_v0 = vld [vmem:[%s6236_s3 + $0xa8] sm:$0xff]   ;;  %v5149_v1 = vld [vmem:[%s6236_s3 + $0x70] sm:$0xff]  }
 0x14a   : > { %2381 = vmatprep.mubr.bf16.mxu0 %v492_v4  ;;  %2833 = vmatprep.mubr.bf16.mxu1 %v492_v4  ;;  %v470_v4 = vpack.c.bf16 %v382_v62, %v374_v61 }
 0x14c   : > { %2419 = vmatpush1.bf16.msra.mxu0 %v5107_v2  ;;  %2871 = vmatpush1.bf16.msra.mxu1 %v5110_v3  ;;  %v5151_v2 = vld [vmem:[%s6236_s3 + $0xf0] sm:$0xff]   ;;  %v461_v3 = vpack.c.bf16 %v365_v60, %v357_v59 }
 0x14d   : > { %2420 = vmatprep.subr.bf16.mxu0 %v5115_v7  ;;  %2872 = vmatprep.subr.bf16.mxu1 %v5118_v8  ;;  %v373_v7 = vld [vmem:[%s5539_s15 + $0x230] sm:$0xff] }
 0x14e   : > { %v381_v8 = vld [vmem:[%s5539_s15 + $0x270] sm:$0xff] }
 0x14f   : > { %2382 = vmatmul.mubr.bf16.gmra.mrb[28].mxu0 %v491_v9  ;;  %2834 = vmatmul.mubr.bf16.gmra.mrb[28].mxu1 %v491_v9  ;;  %v390_v9 = vld [vmem:[%s5539_s15 + $0x2b8] sm:$0xff]  ;;  %v469_v11 = vpack.c.bf16 %v381_v8, %v373_v7 }
 0x150   : > { %2421 = vmatpush1.bf16.msra.mxu0 %v5113_v12  ;;  %2873 = vmatpush1.bf16.msra.mxu1 %v5116_v13  ;;  %v478_v12 = vpack.c.bf16 %v398_v10, %v390_v9  ;;  %v389_v13 = vld [vmem:[%s5539_s15 + $0x2b0] sm:$0xff] }
 0x151   : > { %2422 = vmatprep.subr.bf16.mxu0 %v5121_v14  ;;  %2874 = vmatprep.subr.bf16.mxu1 %v5124_v15  ;;  %v397_v14 = vld [vmem:[%s5539_s15 + $0x2f0] sm:$0xff]  ;;  %v406_v15 = vld [vmem:[%s5539_s15 + $0x338] sm:$0xff] }
 0x152   : > { %2424 = vmatprep.mubr.bf16.mxu0 %v438_v16  ;;  %2876 = vmatprep.mubr.bf16.mxu1 %v438_v16  ;;  %v414_v16 = vld [vmem:[%s5539_s15 + $0x378] sm:$0xff] }
 0x154   : > { %2423 = vmatpush1.bf16.msra.mxu0 %v5119_v17  ;;  %2875 = vmatpush1.bf16.msra.mxu1 %v5122_v18  ;;  %v477_v17 = vpack.c.bf16 %v397_v14, %v389_v13  ;;  %v486_v18 = vpack.c.bf16 %v414_v16, %v406_v15 }
 0x155   : > { %4293 = vmatprep.subr.bf16.mxu0 %v5125_v23  ;;  %4357 = vmatprep.subr.bf16.mxu1 %v5127_v24  ;;  %v485_v23 = vpack.c.bf16 %v413_v20, %v405_v19  ;;  %v494_v24 = vpack.c.bf16 %v430_v22, %v422_v21 }
 0x157   : > { %2425 = vmatmul.mubr.bf16.vlgmr.msra.gmra.mrb[0].mxu0 %v437_v25  ;;  %2877 = vmatmul.mubr.bf16.vlgmr.msra.gmra.mrb[0].mxu1 %v437_v25  ;;  %v421_v25 = vld [vmem:[%s5539_s15 + $0x3b0] sm:$0xff] }
 0x158   : > { %2434 = vmatprep.mubr.bf16.mxu0 %v446_v26  ;;  %2886 = vmatprep.mubr.bf16.mxu1 %v446_v26  ;;  %v429_v26 = vld [vmem:[%s5539_s15 + $0x3f0] sm:$0xff]  ;;  %s5358_s15 = smov [#allocation7]  }
 0x159   : > { %4294 = vmatpush3.bf16.msra.mxu0 %v5126_v27  ;;  %4358 = vmatpush3.bf16.msra.mxu1 %v5128_v28  ;;  %v493_v27 = vpack.c.bf16 %v429_v26, %v421_v25  ;;  %v5153_v28 = vld [vmem:[%s6236_s3 + $0x78] sm:$0xff]   ;;  %s5283_s8 = sshll.u32 %s5358_s15, 4  ;;  %s5284_s8 = int_to_ptr.vmem [resolvable:$false] %s5283_s8 }
 0x15a   : > { %4295 = vmatprep.subr.bf16.mxu0 %v5129_v29  ;;  %4359 = vmatprep.subr.bf16.mxu1 %v5131_v30  ;;  %v5155_v29 = vld [vmem:[%s6236_s3 + $0xf8] sm:$0xff]   ;;  %s5285_s27 = scalar_lea.vmem %s5284_s8, 16384  ;;  %p5286_p10 = scmp.lt.s32.totalorder %s6112_s18, %s5284_s8 }
 0x15b   : > { %v5154_v30 = vld [vmem:[%s6236_s3 + $0x38] sm:$0xff]   ;;  %p5287_p13 = scmp.lt.s32.totalorder %s5285_s27, %s5279_s17 }
 0x15d   : > { %4296 = vmatpush3.bf16.msra.mxu0 %v5130_v35  ;;  %4360 = vmatpush3.bf16.msra.mxu1 %v5132_v36  ;;  %v763_v35 = vsub.s32 2, %v754_v33  ;;  %v751_v36 = vld [vmem:[%s6235_s2] sm:$0xf]  ;;  %p5288_p3 = por %p5287_p13, %p5286_p10 }
 0x15e   : > { %4297 = vmatprep.subr.bf16.mxu0 %v5133_v37  ;;  %4361 = vmatprep.subr.bf16.mxu1 %v5135_v38  ;;  %v759_v37 = vsub.s32 1, %v754_v33  ;;  %v767_v38 = vsub.s32 3, %v754_v33 }
 0x15f   : > { %2435 = vmatmul.mubr.bf16.gmra.mrb[4].mxu0 %v445_v39  ;;  %2887 = vmatmul.mubr.bf16.gmra.mrb[4].mxu1 %v445_v39  ;;  %v5776_v39 = vrot.slane %v751_v36, %v755_v34  ;;  %p5289_p7 = pnand %p5288_p3, %p5282_p8 }
 0x160   : > { %2444 = vmatprep.mubr.bf16.mxu0 %v454_v40  ;;  %2896 = vmatprep.mubr.bf16.mxu1 %v454_v40  ;;  %v5778_v40 = vrot.slane %v751_v36, %v763_v35 }
 0x161   : > { %4298 = vmatpush3.bf16.msra.mxu0 %v5134_v41  ;;  %4362 = vmatpush3.bf16.msra.mxu1 %v5136_v42  ;;  %v5780_v41 = vrot.slane %v751_v36, %v759_v37  ;;  %v5782_v42 = vrot.slane %v751_v36, %v767_v38 }
 0x162   : > { %4299 = vmatprep.subr.bf16.mxu0 %v5137_v43  ;;  %4363 = vmatprep.subr.bf16.mxu1 %v5139_v44 }
 0x165   : > { %4300 = vmatpush3.bf16.msra.mxu0 %v5138_v49  ;;  %4364 = vmatpush3.bf16.msra.mxu1 %v5140_v50 }
 0x166   : > { %4301 = vmatprep.subr.bf16.mxu0 %v5141_v51  ;;  %4365 = vmatprep.subr.bf16.mxu1 %v5143_v52 }
 0x167   : > { %2445 = vmatmul.mubr.bf16.gmra.mrb[8].mxu0 %v453_v53  ;;  %2897 = vmatmul.mubr.bf16.gmra.mrb[8].mxu1 %v453_v53 }
 0x168   : > { %2454 = vmatprep.mubr.bf16.mxu0 %v462_v54  ;;  %2906 = vmatprep.mubr.bf16.mxu1 %v462_v54 }
 0x169   : > { %4302 = vmatpush3.bf16.msra.mxu0 %v5142_v55  ;;  %4366 = vmatpush3.bf16.msra.mxu1 %v5144_v56 }
 0x16a   : > { %4303 = vmatprep.subr.bf16.mxu0 %v5145_v57  ;;  %4367 = vmatprep.subr.bf16.mxu1 %v5147_v58 }
 0x16d   : > { %4304 = vmatpush3.bf16.msra.mxu0 %v5146_v63  ;;  %4368 = vmatpush3.bf16.msra.mxu1 %v5148_v0 }
 0x16e   : > { %4305 = vmatprep.subr.bf16.mxu0 %v5149_v1  ;;  %4369 = vmatprep.subr.bf16.mxu1 %v5151_v2 }
 0x16f   : > { %2455 = vmatmul.mubr.bf16.gmra.mrb[12].mxu0 %v461_v3  ;;  %2907 = vmatmul.mubr.bf16.gmra.mrb[12].mxu1 %v461_v3 }
 0x170   : > { %2464 = vmatprep.mubr.bf16.mxu0 %v470_v4  ;;  %2916 = vmatprep.mubr.bf16.mxu1 %v470_v4 }
 0x171   : > { %4306 = vmatpush3.bf16.msra.mxu0 %v5150_v5  ;;  %4370 = vmatpush3.bf16.msra.mxu1 %v5152_v6 }
 0x172   : > { %4307 = vmatprep.subr.bf16.mxu0 %v5153_v28  ;;  %4371 = vmatprep.subr.bf16.mxu1 %v5155_v29 }
 0x175   : > { %4308 = vmatpush3.bf16.msra.mxu0 %v5154_v30  ;;  %4372 = vmatpush3.bf16.msra.mxu1 %v5156_v31 }
 0x177   : > { %2465 = vmatmul.mubr.bf16.gmra.mrb[16].mxu0 %v469_v11  ;;  %2917 = vmatmul.mubr.bf16.gmra.mrb[16].mxu1 %v469_v11 }
 0x178   : > { %2474 = vmatprep.mubr.bf16.mxu0 %v478_v12  ;;  %2926 = vmatprep.mubr.bf16.mxu1 %v478_v12 }
 0x17f   : > { %2475 = vmatmul.mubr.bf16.gmra.mrb[20].mxu0 %v477_v17  ;;  %2927 = vmatmul.mubr.bf16.gmra.mrb[20].mxu1 %v477_v17 }
 0x180   : > { %2484 = vmatprep.mubr.bf16.mxu0 %v486_v18  ;;  %2936 = vmatprep.mubr.bf16.mxu1 %v486_v18 }
 0x187   : > { %2485 = vmatmul.mubr.bf16.gmra.mrb[24].mxu0 %v485_v23  ;;  %2937 = vmatmul.mubr.bf16.gmra.mrb[24].mxu1 %v485_v23 }
 0x188   : > { %2494 = vmatprep.mubr.bf16.mxu0 %v494_v24  ;;  %2946 = vmatprep.mubr.bf16.mxu1 %v494_v24 }
 0x18f   : > { %2495 = vmatmul.mubr.bf16.gmra.mrb[28].mxu0 %v493_v27  ;;  %2947 = vmatmul.mubr.bf16.gmra.mrb[28].mxu1 %v493_v27 }
 0x22a   : > { %v2426_v43 = vpop.f32.mrb[0].mxu0  ;;  %v2878_v44 = vpop.f32.mrb[0].mxu1 }
 0x22b   : > { %v4421_v45 = vadd.f32 %v2426_v43, %v5776_v39  ;;  %v4453_v46 = vadd.f32 %v2878_v44, %v5778_v40  ;;  %v2428_v47 = vpop.f32.mrb[1].mxu0  ;;  %v2880_v48 = vpop.f32.mrb[1].mxu1 }
 0x22c   : > { %v4422_v49 = vadd.f32 %v2428_v47, %v5780_v41  ;;  %v4454_v50 = vadd.f32 %v2880_v48, %v5782_v42  ;;  %v2430_v51 = vpop.f32.mrb[2].mxu0  ;;  %v2882_v52 = vpop.f32.mrb[2].mxu1 }
 0x22d   : > { %v2957_v53 = vmax.f32 %v4421_v45, 0.0  ;;  %v2959_v54 = vmax.f32 %v4453_v46, 0.0  ;;  %v4423_v55 = vadd.f32 %v2430_v51, %v5776_v39  ;;  %v4455_v56 = vadd.f32 %v2882_v52, %v5778_v40  ;;  %v2432_v57 = vpop.f32.mrb[3].mxu0  ;;  %v2884_v58 = vpop.f32.mrb[3].mxu1 }
 0x22e   : > { %v2958_v59 = vmax.f32 %v4422_v49, 0.0  ;;  %v2960_v60 = vmax.f32 %v4454_v50, 0.0  ;;  %v4424_v61 = vadd.f32 %v2432_v57, %v5780_v41  ;;  %v4456_v62 = vadd.f32 %v2884_v58, %v5782_v42 }
 0x22f   : > { %3021 = vst [vmem:[%s5793_s29] sm:$0xff] %v2957_v53  ;;  %3023 = vst [vmem:[%s5793_s29 + $0x10] sm:$0xff] %v2959_v54  ;;  %v2961_v63 = vmax.f32 %v4423_v55, 0.0  ;;  %v2963_v0 = vmax.f32 %v4455_v56, 0.0 }
 0x230   : > { %3022 = vst [vmem:[%s5793_s29 + $0x8] sm:$0xff] %v2958_v59  ;;  %3024 = vst [vmem:[%s5793_s29 + $0x18] sm:$0xff] %v2960_v60  ;;  %v2962_v1 = vmax.f32 %v4424_v61, 0.0  ;;  %v2964_v2 = vmax.f32 %v4456_v62, 0.0 }
 0x231   : > { %3025 = vst [vmem:[%s5793_s29 + $0x20] sm:$0xff] %v2961_v63  ;;  %v3085_v3 = vpack.c.bf16 %v2961_v63, %v2957_v53  ;;  %3027 = vst [vmem:[%s5793_s29 + $0x30] sm:$0xff] %v2963_v0  ;;  %v3087_v4 = vpack.c.bf16 %v2963_v0, %v2959_v54 }
 0x232   : > { %3026 = vst [vmem:[%s5793_s29 + $0x28] sm:$0xff] %v2962_v1  ;;  %v3086_v5 = vpack.c.bf16 %v2962_v1, %v2958_v59  ;;  %3028 = vst [vmem:[%s5793_s29 + $0x38] sm:$0xff] %v2964_v2  ;;  %v3088_v6 = vpack.c.bf16 %v2964_v2, %v2960_v60  ;;  %v2436_v7 = vpop.f32.mrb[4].mxu0  ;;  %v2888_v8 = vpop.f32.mrb[4].mxu1 }
 0x233   : > { %v4425_v9 = vadd.f32 %v2436_v7, %v5776_v39  ;;  %v4457_v10 = vadd.f32 %v2888_v8, %v5778_v40  ;;  %v2438_v11 = vpop.f32.mrb[5].mxu0  ;;  %v2890_v12 = vpop.f32.mrb[5].mxu1 }
 0x234   : > { %v4426_v13 = vadd.f32 %v2438_v11, %v5780_v41  ;;  %v4458_v14 = vadd.f32 %v2890_v12, %v5782_v42  ;;  %v2440_v15 = vpop.f32.mrb[6].mxu0  ;;  %v2892_v16 = vpop.f32.mrb[6].mxu1  ;;  %3412 = vmatprep.mubr.bf16.mxu0 %v3086_v5  ;;  %3509 = vmatprep.mubr.bf16.mxu1 %v3088_v6 }
 0x235   : > { %v2965_v17 = vmax.f32 %v4425_v9, 0.0  ;;  %v2967_v18 = vmax.f32 %v4457_v10, 0.0  ;;  %v4427_v19 = vadd.f32 %v2440_v15, %v5776_v39  ;;  %v4459_v20 = vadd.f32 %v2892_v16, %v5778_v40  ;;  %v2442_v21 = vpop.f32.mrb[7].mxu0  ;;  %v2894_v22 = vpop.f32.mrb[7].mxu1  ;;  %3413 = vmatmul.mubr.bf16.vlgmr.msra.gmra.mrb[32].mxu0 %v3085_v3  ;;  %3510 = vmatmul.mubr.bf16.vlgmr.msra.gmra.mrb[32].mxu1 %v3087_v4 }
 0x236   : > { %v2966_v23 = vmax.f32 %v4426_v13, 0.0  ;;  %v2968_v24 = vmax.f32 %v4458_v14, 0.0  ;;  %v4428_v25 = vadd.f32 %v2442_v21, %v5780_v41  ;;  %v4460_v26 = vadd.f32 %v2894_v22, %v5782_v42 }
 0x237   : > { %3029 = vst [vmem:[%s5793_s29 + $0x40] sm:$0xff] %v2965_v17  ;;  %3031 = vst [vmem:[%s5793_s29 + $0x50] sm:$0xff] %v2967_v18  ;;  %v2969_v27 = vmax.f32 %v4427_v19, 0.0  ;;  %v2971_v28 = vmax.f32 %v4459_v20, 0.0 }
 0x238   : > { %3030 = vst [vmem:[%s5793_s29 + $0x48] sm:$0xff] %v2966_v23  ;;  %3032 = vst [vmem:[%s5793_s29 + $0x58] sm:$0xff] %v2968_v24  ;;  %v2970_v29 = vmax.f32 %v4428_v25, 0.0  ;;  %v2972_v30 = vmax.f32 %v4460_v26, 0.0 }
 0x239   : > { %3033 = vst [vmem:[%s5793_s29 + $0x60] sm:$0xff] %v2969_v27  ;;  %v3089_v31 = vpack.c.bf16 %v2969_v27, %v2965_v17  ;;  %3035 = vst [vmem:[%s5793_s29 + $0x70] sm:$0xff] %v2971_v28  ;;  %v3091_v32 = vpack.c.bf16 %v2971_v28, %v2967_v18 }
 0x23a   : > { %3034 = vst [vmem:[%s5793_s29 + $0x68] sm:$0xff] %v2970_v29  ;;  %v3090_v33 = vpack.c.bf16 %v2970_v29, %v2966_v23  ;;  %3036 = vst [vmem:[%s5793_s29 + $0x78] sm:$0xff] %v2972_v30  ;;  %v3092_v34 = vpack.c.bf16 %v2972_v30, %v2968_v24  ;;  %v2446_v35 = vpop.f32.mrb[8].mxu0  ;;  %v2898_v36 = vpop.f32.mrb[8].mxu1 }
 0x23b   : > { %v4429_v37 = vadd.f32 %v2446_v35, %v5776_v39  ;;  %v4461_v38 = vadd.f32 %v2898_v36, %v5778_v40  ;;  %v2448_v43 = vpop.f32.mrb[9].mxu0  ;;  %v2900_v44 = vpop.f32.mrb[9].mxu1 }
 0x23c   : > { %v4430_v45 = vadd.f32 %v2448_v43, %v5780_v41  ;;  %v4462_v46 = vadd.f32 %v2900_v44, %v5782_v42  ;;  %v2450_v47 = vpop.f32.mrb[10].mxu0  ;;  %v2902_v48 = vpop.f32.mrb[10].mxu1  ;;  %3420 = vmatprep.mubr.bf16.mxu0 %v3090_v33  ;;  %3517 = vmatprep.mubr.bf16.mxu1 %v3092_v34 }
 0x23d   : > { %v2973_v49 = vmax.f32 %v4429_v37, 0.0  ;;  %v2975_v50 = vmax.f32 %v4461_v38, 0.0  ;;  %v4431_v51 = vadd.f32 %v2450_v47, %v5776_v39  ;;  %v4463_v52 = vadd.f32 %v2902_v48, %v5778_v40  ;;  %v2452_v53 = vpop.f32.mrb[11].mxu0  ;;  %v2904_v54 = vpop.f32.mrb[11].mxu1  ;;  %3421 = vmatmul.mubr.bf16.gmra.mrb[36].mxu0 %v3089_v31  ;;  %3518 = vmatmul.mubr.bf16.gmra.mrb[36].mxu1 %v3091_v32 }
 0x23e   : > { %v2974_v55 = vmax.f32 %v4430_v45, 0.0  ;;  %v2976_v56 = vmax.f32 %v4462_v46, 0.0  ;;  %v4432_v57 = vadd.f32 %v2452_v53, %v5780_v41  ;;  %v4464_v58 = vadd.f32 %v2904_v54, %v5782_v42 }
 0x23f   : > { %3037 = vst [vmem:[%s5793_s29 + $0x80] sm:$0xff] %v2973_v49  ;;  %3039 = vst [vmem:[%s5793_s29 + $0x90] sm:$0xff] %v2975_v50  ;;  %v2977_v59 = vmax.f32 %v4431_v51, 0.0  ;;  %v2979_v60 = vmax.f32 %v4463_v52, 0.0 }
 0x240   : > { %3038 = vst [vmem:[%s5793_s29 + $0x88] sm:$0xff] %v2974_v55  ;;  %3040 = vst [vmem:[%s5793_s29 + $0x98] sm:$0xff] %v2976_v56  ;;  %v2978_v61 = vmax.f32 %v4432_v57, 0.0  ;;  %v2980_v62 = vmax.f32 %v4464_v58, 0.0 }
 0x241   : > { %3041 = vst [vmem:[%s5793_s29 + $0xa0] sm:$0xff] %v2977_v59  ;;  %v3093_v63 = vpack.c.bf16 %v2977_v59, %v2973_v49  ;;  %3043 = vst [vmem:[%s5793_s29 + $0xb0] sm:$0xff] %v2979_v60  ;;  %v3095_v0 = vpack.c.bf16 %v2979_v60, %v2975_v50 }
 0x242   : > { %3042 = vst [vmem:[%s5793_s29 + $0xa8] sm:$0xff] %v2978_v61  ;;  %v3094_v1 = vpack.c.bf16 %v2978_v61, %v2974_v55  ;;  %3044 = vst [vmem:[%s5793_s29 + $0xb8] sm:$0xff] %v2980_v62  ;;  %v3096_v2 = vpack.c.bf16 %v2980_v62, %v2976_v56  ;;  %v2456_v3 = vpop.f32.mrb[12].mxu0  ;;  %v2908_v4 = vpop.f32.mrb[12].mxu1 }
 0x243   : > { %v4433_v5 = vadd.f32 %v2456_v3, %v5776_v39  ;;  %v4465_v6 = vadd.f32 %v2908_v4, %v5778_v40  ;;  %v2458_v7 = vpop.f32.mrb[13].mxu0  ;;  %v2910_v8 = vpop.f32.mrb[13].mxu1 }
 0x244   : > { %v4434_v9 = vadd.f32 %v2458_v7, %v5780_v41  ;;  %v4466_v10 = vadd.f32 %v2910_v8, %v5782_v42  ;;  %v2460_v11 = vpop.f32.mrb[14].mxu0  ;;  %v2912_v12 = vpop.f32.mrb[14].mxu1  ;;  %3428 = vmatprep.mubr.bf16.mxu0 %v3094_v1  ;;  %3525 = vmatprep.mubr.bf16.mxu1 %v3096_v2 }
 0x245   : > { %v2981_v13 = vmax.f32 %v4433_v5, 0.0  ;;  %v2983_v14 = vmax.f32 %v4465_v6, 0.0  ;;  %v4435_v15 = vadd.f32 %v2460_v11, %v5776_v39  ;;  %v4467_v16 = vadd.f32 %v2912_v12, %v5778_v40  ;;  %v2462_v17 = vpop.f32.mrb[15].mxu0  ;;  %v2914_v18 = vpop.f32.mrb[15].mxu1  ;;  %3429 = vmatmul.mubr.bf16.gmra.mrb[40].mxu0 %v3093_v63  ;;  %3526 = vmatmul.mubr.bf16.gmra.mrb[40].mxu1 %v3095_v0 }
 0x246   : > { %v2982_v19 = vmax.f32 %v4434_v9, 0.0  ;;  %v2984_v20 = vmax.f32 %v4466_v10, 0.0  ;;  %v4436_v21 = vadd.f32 %v2462_v17, %v5780_v41  ;;  %v4468_v22 = vadd.f32 %v2914_v18, %v5782_v42 }
 0x247   : > { %3045 = vst [vmem:[%s5793_s29 + $0xc0] sm:$0xff] %v2981_v13  ;;  %3047 = vst [vmem:[%s5793_s29 + $0xd0] sm:$0xff] %v2983_v14  ;;  %v2985_v23 = vmax.f32 %v4435_v15, 0.0  ;;  %v2987_v24 = vmax.f32 %v4467_v16, 0.0 }
 0x248   : > { %3046 = vst [vmem:[%s5793_s29 + $0xc8] sm:$0xff] %v2982_v19  ;;  %3048 = vst [vmem:[%s5793_s29 + $0xd8] sm:$0xff] %v2984_v20  ;;  %v2986_v25 = vmax.f32 %v4436_v21, 0.0  ;;  %v2988_v26 = vmax.f32 %v4468_v22, 0.0 }
 0x249   : > { %3049 = vst [vmem:[%s5793_s29 + $0xe0] sm:$0xff] %v2985_v23  ;;  %v3097_v27 = vpack.c.bf16 %v2985_v23, %v2981_v13  ;;  %3051 = vst [vmem:[%s5793_s29 + $0xf0] sm:$0xff] %v2987_v24  ;;  %v3099_v28 = vpack.c.bf16 %v2987_v24, %v2983_v14 }
 0x24a   : > { %3050 = vst [vmem:[%s5793_s29 + $0xe8] sm:$0xff] %v2986_v25  ;;  %v3098_v29 = vpack.c.bf16 %v2986_v25, %v2982_v19  ;;  %3052 = vst [vmem:[%s5793_s29 + $0xf8] sm:$0xff] %v2988_v26  ;;  %v3100_v30 = vpack.c.bf16 %v2988_v26, %v2984_v20  ;;  %v2466_v31 = vpop.f32.mrb[16].mxu0  ;;  %v2918_v32 = vpop.f32.mrb[16].mxu1 }
 0x24b   : > { %v4437_v33 = vadd.f32 %v2466_v31, %v5776_v39  ;;  %v4469_v34 = vadd.f32 %v2918_v32, %v5778_v40  ;;  %v2468_v35 = vpop.f32.mrb[17].mxu0  ;;  %v2920_v36 = vpop.f32.mrb[17].mxu1 }
 0x24c   : > { %v4438_v37 = vadd.f32 %v2468_v35, %v5780_v41  ;;  %v4470_v38 = vadd.f32 %v2920_v36, %v5782_v42  ;;  %v2470_v43 = vpop.f32.mrb[18].mxu0  ;;  %v2922_v44 = vpop.f32.mrb[18].mxu1  ;;  %3436 = vmatprep.mubr.bf16.mxu0 %v3098_v29  ;;  %3533 = vmatprep.mubr.bf16.mxu1 %v3100_v30 }
 0x24d   : > { %v2989_v45 = vmax.f32 %v4437_v33, 0.0  ;;  %v2991_v46 = vmax.f32 %v4469_v34, 0.0  ;;  %v4439_v47 = vadd.f32 %v2470_v43, %v5776_v39  ;;  %v4471_v48 = vadd.f32 %v2922_v44, %v5778_v40  ;;  %v2472_v49 = vpop.f32.mrb[19].mxu0  ;;  %v2924_v50 = vpop.f32.mrb[19].mxu1  ;;  %3437 = vmatmul.mubr.bf16.gmra.mrb[44].mxu0 %v3097_v27  ;;  %3534 = vmatmul.mubr.bf16.gmra.mrb[44].mxu1 %v3099_v28 }
 0x24e   : > { %v2990_v51 = vmax.f32 %v4438_v37, 0.0  ;;  %v2992_v52 = vmax.f32 %v4470_v38, 0.0  ;;  %v4440_v53 = vadd.f32 %v2472_v49, %v5780_v41  ;;  %v4472_v54 = vadd.f32 %v2924_v50, %v5782_v42 }
 0x24f   : > { %3053 = vst [vmem:[%s5793_s29 + $0x100] sm:$0xff] %v2989_v45  ;;  %3055 = vst [vmem:[%s5793_s29 + $0x110] sm:$0xff] %v2991_v46  ;;  %v2993_v55 = vmax.f32 %v4439_v47, 0.0  ;;  %v2995_v56 = vmax.f32 %v4471_v48, 0.0 }
 0x250   : > { %3054 = vst [vmem:[%s5793_s29 + $0x108] sm:$0xff] %v2990_v51  ;;  %3056 = vst [vmem:[%s5793_s29 + $0x118] sm:$0xff] %v2992_v52  ;;  %v2994_v57 = vmax.f32 %v4440_v53, 0.0  ;;  %v2996_v58 = vmax.f32 %v4472_v54, 0.0 }
 0x251   : > { %3057 = vst [vmem:[%s5793_s29 + $0x120] sm:$0xff] %v2993_v55  ;;  %v3101_v59 = vpack.c.bf16 %v2993_v55, %v2989_v45  ;;  %3059 = vst [vmem:[%s5793_s29 + $0x130] sm:$0xff] %v2995_v56  ;;  %v3103_v60 = vpack.c.bf16 %v2995_v56, %v2991_v46 }
 0x252   : > { %3058 = vst [vmem:[%s5793_s29 + $0x128] sm:$0xff] %v2994_v57  ;;  %v3102_v61 = vpack.c.bf16 %v2994_v57, %v2990_v51  ;;  %3060 = vst [vmem:[%s5793_s29 + $0x138] sm:$0xff] %v2996_v58  ;;  %v3104_v62 = vpack.c.bf16 %v2996_v58, %v2992_v52  ;;  %v2476_v63 = vpop.f32.mrb[20].mxu0  ;;  %v2928_v0 = vpop.f32.mrb[20].mxu1 }
 0x253   : > { %v4441_v1 = vadd.f32 %v2476_v63, %v5776_v39  ;;  %v4473_v2 = vadd.f32 %v2928_v0, %v5778_v40  ;;  %v2478_v3 = vpop.f32.mrb[21].mxu0  ;;  %v2930_v4 = vpop.f32.mrb[21].mxu1 }
 0x254   : > { %v4442_v5 = vadd.f32 %v2478_v3, %v5780_v41  ;;  %v4474_v6 = vadd.f32 %v2930_v4, %v5782_v42  ;;  %v2480_v7 = vpop.f32.mrb[22].mxu0  ;;  %v2932_v8 = vpop.f32.mrb[22].mxu1  ;;  %3444 = vmatprep.mubr.bf16.mxu0 %v3102_v61  ;;  %3541 = vmatprep.mubr.bf16.mxu1 %v3104_v62 }
 0x255   : > { %v2997_v9 = vmax.f32 %v4441_v1, 0.0  ;;  %v2999_v10 = vmax.f32 %v4473_v2, 0.0  ;;  %v4443_v11 = vadd.f32 %v2480_v7, %v5776_v39  ;;  %v4475_v12 = vadd.f32 %v2932_v8, %v5778_v40  ;;  %v2482_v13 = vpop.f32.mrb[23].mxu0  ;;  %v2934_v14 = vpop.f32.mrb[23].mxu1  ;;  %3445 = vmatmul.mubr.bf16.gmra.mrb[48].mxu0 %v3101_v59  ;;  %3542 = vmatmul.mubr.bf16.gmra.mrb[48].mxu1 %v3103_v60 }
 0x256   : > { %v2998_v15 = vmax.f32 %v4442_v5, 0.0  ;;  %v3000_v16 = vmax.f32 %v4474_v6, 0.0  ;;  %v4444_v17 = vadd.f32 %v2482_v13, %v5780_v41  ;;  %v4476_v18 = vadd.f32 %v2934_v14, %v5782_v42 }
 0x257   : > { %3061 = vst [vmem:[%s5793_s29 + $0x140] sm:$0xff] %v2997_v9  ;;  %3063 = vst [vmem:[%s5793_s29 + $0x150] sm:$0xff] %v2999_v10  ;;  %v3001_v19 = vmax.f32 %v4443_v11, 0.0  ;;  %v3003_v20 = vmax.f32 %v4475_v12, 0.0 }
 0x258   : > { %3062 = vst [vmem:[%s5793_s29 + $0x148] sm:$0xff] %v2998_v15  ;;  %3064 = vst [vmem:[%s5793_s29 + $0x158] sm:$0xff] %v3000_v16  ;;  %v3002_v21 = vmax.f32 %v4444_v17, 0.0  ;;  %v3004_v22 = vmax.f32 %v4476_v18, 0.0 }
 0x259   : > { %3065 = vst [vmem:[%s5793_s29 + $0x160] sm:$0xff] %v3001_v19  ;;  %v3105_v23 = vpack.c.bf16 %v3001_v19, %v2997_v9  ;;  %3067 = vst [vmem:[%s5793_s29 + $0x170] sm:$0xff] %v3003_v20  ;;  %v3107_v24 = vpack.c.bf16 %v3003_v20, %v2999_v10 }
 0x25a   : > { %3066 = vst [vmem:[%s5793_s29 + $0x168] sm:$0xff] %v3002_v21  ;;  %v3106_v25 = vpack.c.bf16 %v3002_v21, %v2998_v15  ;;  %3068 = vst [vmem:[%s5793_s29 + $0x178] sm:$0xff] %v3004_v22  ;;  %v3108_v26 = vpack.c.bf16 %v3004_v22, %v3000_v16  ;;  %v2486_v27 = vpop.f32.mrb[24].mxu0  ;;  %v2938_v28 = vpop.f32.mrb[24].mxu1  ;;  %v5918_v21 = vld [vmem:[%s6237_s4] ss:$0 sm:$0xff] }
 0x25b   : > { %v4445_v29 = vadd.f32 %v2486_v27, %v5776_v39  ;;  %v4477_v30 = vadd.f32 %v2938_v28, %v5778_v40  ;;  %v2488_v31 = vpop.f32.mrb[25].mxu0  ;;  %v2940_v32 = vpop.f32.mrb[25].mxu1 }
 0x25c   : > { %v4446_v33 = vadd.f32 %v2488_v31, %v5780_v41  ;;  %v4478_v34 = vadd.f32 %v2940_v32, %v5782_v42  ;;  %v2490_v35 = vpop.f32.mrb[26].mxu0  ;;  %v2942_v36 = vpop.f32.mrb[26].mxu1  ;;  %3452 = vmatprep.mubr.bf16.mxu0 %v3106_v25  ;;  %3549 = vmatprep.mubr.bf16.mxu1 %v3108_v26 }
 0x25d   : > { %v3005_v37 = vmax.f32 %v4445_v29, 0.0  ;;  %v3007_v38 = vmax.f32 %v4477_v30, 0.0  ;;  %v4447_v43 = vadd.f32 %v2490_v35, %v5776_v39  ;;  %v4479_v44 = vadd.f32 %v2942_v36, %v5778_v40  ;;  %v2492_v45 = vpop.f32.mrb[27].mxu0  ;;  %v2944_v46 = vpop.f32.mrb[27].mxu1  ;;  %3453 = vmatmul.mubr.bf16.gmra.mrb[52].mxu0 %v3105_v23  ;;  %3550 = vmatmul.mubr.bf16.gmra.mrb[52].mxu1 %v3107_v24 }
 0x25e   : > { %v3006_v47 = vmax.f32 %v4446_v33, 0.0  ;;  %v3008_v48 = vmax.f32 %v4478_v34, 0.0  ;;  %v4448_v49 = vadd.f32 %v2492_v45, %v5780_v41  ;;  %v4480_v50 = vadd.f32 %v2944_v46, %v5782_v42 }
 0x25f   : > { %3069 = vst [vmem:[%s5793_s29 + $0x180] sm:$0xff] %v3005_v37  ;;  %3071 = vst [vmem:[%s5793_s29 + $0x190] sm:$0xff] %v3007_v38  ;;  %v3009_v51 = vmax.f32 %v4447_v43, 0.0  ;;  %v3011_v52 = vmax.f32 %v4479_v44, 0.0 }
 0x260   : > { %3070 = vst [vmem:[%s5793_s29 + $0x188] sm:$0xff] %v3006_v47  ;;  %3072 = vst [vmem:[%s5793_s29 + $0x198] sm:$0xff] %v3008_v48  ;;  %v3010_v53 = vmax.f32 %v4448_v49, 0.0  ;;  %v3012_v54 = vmax.f32 %v4480_v50, 0.0 }
 0x261   : > { %3073 = vst [vmem:[%s5793_s29 + $0x1a0] sm:$0xff] %v3009_v51  ;;  %v3109_v55 = vpack.c.bf16 %v3009_v51, %v3005_v37  ;;  %3075 = vst [vmem:[%s5793_s29 + $0x1b0] sm:$0xff] %v3011_v52  ;;  %v3111_v56 = vpack.c.bf16 %v3011_v52, %v3007_v38 }
 0x262   : > { %3074 = vst [vmem:[%s5793_s29 + $0x1a8] sm:$0xff] %v3010_v53  ;;  %v3110_v57 = vpack.c.bf16 %v3010_v53, %v3006_v47  ;;  %3076 = vst [vmem:[%s5793_s29 + $0x1b8] sm:$0xff] %v3012_v54  ;;  %v3112_v58 = vpack.c.bf16 %v3012_v54, %v3008_v48  ;;  %v2496_v59 = vpop.f32.mrb[28].mxu0  ;;  %v2948_v60 = vpop.f32.mrb[28].mxu1 }
 0x263   : > { %v4449_v61 = vadd.f32 %v2496_v59, %v5776_v39  ;;  %v4481_v62 = vadd.f32 %v2948_v60, %v5778_v40  ;;  %v2498_v63 = vpop.f32.mrb[29].mxu0  ;;  %v2950_v0 = vpop.f32.mrb[29].mxu1 }
 0x264   : > { %v4450_v1 = vadd.f32 %v2498_v63, %v5780_v41  ;;  %v4482_v2 = vadd.f32 %v2950_v0, %v5782_v42  ;;  %v2500_v3 = vpop.f32.mrb[30].mxu0  ;;  %v2952_v4 = vpop.f32.mrb[30].mxu1  ;;  %3460 = vmatprep.mubr.bf16.mxu0 %v3110_v57  ;;  %3557 = vmatprep.mubr.bf16.mxu1 %v3112_v58 }
 0x265   : > { %v3013_v5 = vmax.f32 %v4449_v61, 0.0  ;;  %v3015_v6 = vmax.f32 %v4481_v62, 0.0  ;;  %v4451_v7 = vadd.f32 %v2500_v3, %v5776_v39  ;;  %v4483_v8 = vadd.f32 %v2952_v4, %v5778_v40  ;;  %v2502_v9 = vpop.f32.mrb[31].mxu0  ;;  %v2954_v10 = vpop.f32.mrb[31].mxu1  ;;  %3461 = vmatmul.mubr.bf16.gmra.mrb[56].mxu0 %v3109_v55  ;;  %3558 = vmatmul.mubr.bf16.gmra.mrb[56].mxu1 %v3111_v56 }
 0x266   : > { %v3014_v11 = vmax.f32 %v4450_v1, 0.0  ;;  %v3016_v12 = vmax.f32 %v4482_v2, 0.0  ;;  %v4452_v13 = vadd.f32 %v2502_v9, %v5780_v41  ;;  %v4484_v14 = vadd.f32 %v2954_v10, %v5782_v42 }
 0x267   : > { %3077 = vst [vmem:[%s5793_s29 + $0x1c0] sm:$0xff] %v3013_v5  ;;  %3079 = vst [vmem:[%s5793_s29 + $0x1d0] sm:$0xff] %v3015_v6  ;;  %v3017_v15 = vmax.f32 %v4451_v7, 0.0  ;;  %v3019_v39 = vmax.f32 %v4483_v8, 0.0 }
 0x268   : > { %3078 = vst [vmem:[%s5793_s29 + $0x1c8] sm:$0xff] %v3014_v11  ;;  %3080 = vst [vmem:[%s5793_s29 + $0x1d8] sm:$0xff] %v3016_v12  ;;  %v3018_v40 = vmax.f32 %v4452_v13, 0.0  ;;  %v3020_v16 = vmax.f32 %v4484_v14, 0.0 }
 0x269   : > { %3081 = vst [vmem:[%s5793_s29 + $0x1e0] sm:$0xff] %v3017_v15  ;;  %v3113_v17 = vpack.c.bf16 %v3017_v15, %v3013_v5  ;;  %3083 = vst [vmem:[%s5793_s29 + $0x1f0] sm:$0xff] %v3019_v39  ;;  %v3115_v18 = vpack.c.bf16 %v3019_v39, %v3015_v6 }
 0x26a   : > { %3082 = vst [vmem:[%s5793_s29 + $0x1e8] sm:$0xff] %v3018_v40  ;;  %v3114_v19 = vpack.c.bf16 %v3018_v40, %v3014_v11  ;;  %3084 = vst [vmem:[%s5793_s29 + $0x1f8] sm:$0xff] %v3020_v16  ;;  %v3116_v20 = vpack.c.bf16 %v3020_v16, %v3016_v12 }
 0x26c   : > { %3468 = vmatprep.mubr.bf16.mxu0 %v3114_v19  ;;  %3565 = vmatprep.mubr.bf16.mxu1 %v3116_v20 }
 0x26d   : > { %3469 = vmatmul.mubr.bf16.gmra.mrb[60].mxu0 %v3113_v17  ;;  %3566 = vmatmul.mubr.bf16.gmra.mrb[60].mxu1 %v3115_v18 }
 0x308   : > { %v4309_v41 = vpop.f32.mrb[32].mxu0  ;;  %v4373_v42 = vpop.f32.mrb[32].mxu1 }
 0x309   : > { %v4310_v22 = vpop.f32.mrb[33].mxu0  ;;  %v4374_v23 = vpop.f32.mrb[33].mxu1 }
 0x30a   : > { %v4311_v24 = vadd.f32 %v4310_v22, %v4309_v41  ;;  %v4375_v25 = vadd.f32 %v4374_v23, %v4373_v42  ;;  %v4312_v26 = vpop.f32.mrb[34].mxu0  ;;  %v4376_v27 = vpop.f32.mrb[34].mxu1 }
 0x30b   : > { %v4313_v28 = vpop.f32.mrb[35].mxu0  ;;  %v4377_v29 = vpop.f32.mrb[35].mxu1 }
 0x30c   : > { %v3415_v30 = vadd.f32 %v4311_v24, %v5918_v21  ;;  %v4314_v31 = vadd.f32 %v4313_v28, %v4312_v26  ;;  %v4378_v32 = vadd.f32 %v4377_v29, %v4376_v27 }
 0x30e   : > { %v5921_v33 = vadd.f32 %v4375_v25, %v3415_v30  ;;  %v3418_v34 = vadd.f32 %v4314_v31, %v5918_v21 }
 0x310   : > { %v5924_v35 = vadd.f32 %v4378_v32, %v3418_v34  ;;  %v4315_v36 = vpop.f32.mrb[36].mxu0  ;;  %v4379_v37 = vpop.f32.mrb[36].mxu1  ;;  %v3575_v38 = vsel %vm3574_vm0, %v5921_v33, -inf }
 0x311   : > { %v4316_v43 = vpop.f32.mrb[37].mxu0  ;;  %v4380_v44 = vpop.f32.mrb[37].mxu1  ;;  %3576 = vmax.xlane.f32.xlu0 %v3575_v38 }
 0x312   : > { %v4317_v45 = vadd.f32 %v4316_v43, %v4315_v36  ;;  %v4381_v46 = vadd.f32 %v4380_v44, %v4379_v37  ;;  %v4318_v47 = vpop.f32.mrb[38].mxu0  ;;  %v4382_v48 = vpop.f32.mrb[38].mxu1  ;;  %v3578_v54 = vsel %vm3574_vm0, %v5924_v35, -inf }
 0x313   : > { %v4319_v49 = vpop.f32.mrb[39].mxu0  ;;  %v4383_v50 = vpop.f32.mrb[39].mxu1 }
 0x314   : > { %v3423_v51 = vadd.f32 %v4317_v45, %v5918_v21  ;;  %v4320_v52 = vadd.f32 %v4319_v49, %v4318_v47  ;;  %v4384_v53 = vadd.f32 %v4383_v50, %v4382_v48 }
 0x315   : > { %3579 = vmax.xlane.f32.xlu0 %v3578_v54 }
 0x316   : > { %v5931_v55 = vadd.f32 %v4381_v46, %v3423_v51  ;;  %v3426_v56 = vadd.f32 %v4320_v52, %v5918_v21 }
 0x318   : > { %v5934_v57 = vadd.f32 %v4384_v53, %v3426_v56  ;;  %v4321_v58 = vpop.f32.mrb[40].mxu0  ;;  %v4385_v59 = vpop.f32.mrb[40].mxu1  ;;  %v3581_v60 = vsel %vm3574_vm0, %v5931_v55, -inf }
 0x319   : > { %v4322_v61 = vpop.f32.mrb[41].mxu0  ;;  %v4386_v62 = vpop.f32.mrb[41].mxu1  ;;  %3582 = vmax.xlane.f32.xlu1 %v3581_v60 }
 0x31a   : > { %v4323_v63 = vadd.f32 %v4322_v61, %v4321_v58  ;;  %v4387_v0 = vadd.f32 %v4386_v62, %v4385_v59  ;;  %v4324_v1 = vpop.f32.mrb[42].mxu0  ;;  %v4388_v2 = vpop.f32.mrb[42].mxu1  ;;  %v3584_v8 = vsel %vm3574_vm0, %v5934_v57, -inf }
 0x31b   : > { %v4325_v3 = vpop.f32.mrb[43].mxu0  ;;  %v4389_v4 = vpop.f32.mrb[43].mxu1 }
 0x31c   : > { %v3431_v5 = vadd.f32 %v4323_v63, %v5918_v21  ;;  %v4326_v6 = vadd.f32 %v4325_v3, %v4324_v1  ;;  %v4390_v7 = vadd.f32 %v4389_v4, %v4388_v2 }
 0x31d   : > { %3585 = vmax.xlane.f32.xlu1 %v3584_v8 }
 0x31e   : > { %v5941_v9 = vadd.f32 %v4387_v0, %v3431_v5  ;;  %v3434_v10 = vadd.f32 %v4326_v6, %v5918_v21 }
 0x320   : > { %v5944_v11 = vadd.f32 %v4390_v7, %v3434_v10  ;;  %v4327_v12 = vpop.f32.mrb[44].mxu0  ;;  %v4391_v13 = vpop.f32.mrb[44].mxu1  ;;  %v3587_v14 = vsel %vm3574_vm0, %v5941_v9, -inf }
 0x321   : > { %v4328_v15 = vpop.f32.mrb[45].mxu0  ;;  %v4392_v39 = vpop.f32.mrb[45].mxu1  ;;  %3588 = vmax.xlane.f32.xlu0 %v3587_v14 }
 0x322   : > { %v4329_v40 = vadd.f32 %v4328_v15, %v4327_v12  ;;  %v4393_v16 = vadd.f32 %v4392_v39, %v4391_v13  ;;  %v4330_v17 = vpop.f32.mrb[46].mxu0  ;;  %v4394_v18 = vpop.f32.mrb[46].mxu1  ;;  %v3590_v19 = vsel %vm3574_vm0, %v5944_v11, -inf }
 0x323   : > { %v4331_v20 = vpop.f32.mrb[47].mxu0  ;;  %v4395_v41 = vpop.f32.mrb[47].mxu1  ;;  %3591 = vmax.xlane.f32.xlu1 %v3590_v19 }
 0x324   : > { %v3439_v42 = vadd.f32 %v4329_v40, %v5918_v21  ;;  %v4332_v22 = vadd.f32 %v4331_v20, %v4330_v17  ;;  %v4396_v23 = vadd.f32 %v4395_v41, %v4394_v18 }
 0x326   : > { %v5951_v24 = vadd.f32 %v4393_v16, %v3439_v42  ;;  %v3442_v25 = vadd.f32 %v4332_v22, %v5918_v21 }
 0x328   : > { %v5954_v26 = vadd.f32 %v4396_v23, %v3442_v25  ;;  %v4333_v27 = vpop.f32.mrb[48].mxu0  ;;  %v4397_v28 = vpop.f32.mrb[48].mxu1  ;;  %v3593_v29 = vsel %vm3574_vm0, %v5951_v24, -inf }
 0x329   : > { %v4334_v30 = vpop.f32.mrb[49].mxu0  ;;  %v4398_v31 = vpop.f32.mrb[49].mxu1  ;;  %3594 = vmax.xlane.f32.xlu0 %v3593_v29 }
 0x32a   : > { %v4335_v32 = vadd.f32 %v4334_v30, %v4333_v27  ;;  %v4399_v34 = vadd.f32 %v4398_v31, %v4397_v28  ;;  %v4336_v36 = vpop.f32.mrb[50].mxu0  ;;  %v4400_v37 = vpop.f32.mrb[50].mxu1  ;;  %v3596_v38 = vsel %vm3574_vm0, %v5954_v26, -inf }
 0x32b   : > { %v4337_v43 = vpop.f32.mrb[51].mxu0  ;;  %v4401_v44 = vpop.f32.mrb[51].mxu1  ;;  %3597 = vmax.xlane.f32.xlu1 %v3596_v38 }
 0x32c   : > { %v3447_v45 = vadd.f32 %v4335_v32, %v5918_v21  ;;  %v4338_v46 = vadd.f32 %v4337_v43, %v4336_v36  ;;  %v4402_v47 = vadd.f32 %v4401_v44, %v4400_v37 }
 0x32e   : > { %v5961_v48 = vadd.f32 %v4399_v34, %v3447_v45  ;;  %v3450_v49 = vadd.f32 %v4338_v46, %v5918_v21 }
 0x330   : > { %v5964_v50 = vadd.f32 %v4402_v47, %v3450_v49  ;;  %v4339_v51 = vpop.f32.mrb[52].mxu0  ;;  %v4403_v52 = vpop.f32.mrb[52].mxu1  ;;  %v3599_v53 = vsel %vm3574_vm0, %v5961_v48, -inf }
 0x331   : > { %v4340_v54 = vpop.f32.mrb[53].mxu0  ;;  %v4404_v56 = vpop.f32.mrb[53].mxu1  ;;  %3600 = vmax.xlane.f32.xlu0 %v3599_v53 }
 0x332   : > { %v4341_v58 = vadd.f32 %v4340_v54, %v4339_v51  ;;  %v4405_v59 = vadd.f32 %v4404_v56, %v4403_v52  ;;  %v4342_v60 = vpop.f32.mrb[54].mxu0  ;;  %v4406_v61 = vpop.f32.mrb[54].mxu1  ;;  %v3602_v62 = vsel %vm3574_vm0, %v5964_v50, -inf }
 0x333   : > { %v4343_v63 = vpop.f32.mrb[55].mxu0  ;;  %v4407_v0 = vpop.f32.mrb[55].mxu1  ;;  %3603 = vmax.xlane.f32.xlu1 %v3602_v62 }
 0x334   : > { %v3455_v1 = vadd.f32 %v4341_v58, %v5918_v21  ;;  %v4344_v2 = vadd.f32 %v4343_v63, %v4342_v60  ;;  %v4408_v3 = vadd.f32 %v4407_v0, %v4406_v61 }
 0x336   : > { %v5971_v4 = vadd.f32 %v4405_v59, %v3455_v1  ;;  %v3458_v5 = vadd.f32 %v4344_v2, %v5918_v21 }
 0x338   : > { %v5974_v6 = vadd.f32 %v4408_v3, %v3458_v5  ;;  %v4345_v7 = vpop.f32.mrb[56].mxu0  ;;  %v4409_v8 = vpop.f32.mrb[56].mxu1  ;;  %v3605_v10 = vsel %vm3574_vm0, %v5971_v4, -inf }
 0x339   : > { %v4346_v12 = vpop.f32.mrb[57].mxu0  ;;  %v4410_v13 = vpop.f32.mrb[57].mxu1  ;;  %3606 = vmax.xlane.f32.xlu0 %v3605_v10 }
 0x33a   : > { %v4347_v14 = vadd.f32 %v4346_v12, %v4345_v7  ;;  %v4411_v15 = vadd.f32 %v4410_v13, %v4409_v8  ;;  %v4348_v39 = vpop.f32.mrb[58].mxu0  ;;  %v4412_v40 = vpop.f32.mrb[58].mxu1  ;;  %v3608_v16 = vsel %vm3574_vm0, %v5974_v6, -inf }
 0x33b   : > { %v4349_v17 = vpop.f32.mrb[59].mxu0  ;;  %v4413_v18 = vpop.f32.mrb[59].mxu1  ;;  %3609 = vmax.xlane.f32.xlu1 %v3608_v16 }
 0x33c   : > { %v3463_v19 = vadd.f32 %v4347_v14, %v5918_v21  ;;  %v4350_v20 = vadd.f32 %v4349_v17, %v4348_v39  ;;  %v4414_v41 = vadd.f32 %v4413_v18, %v4412_v40 }
 0x33e   : > { %v5981_v42 = vadd.f32 %v4411_v15, %v3463_v19  ;;  %v3466_v22 = vadd.f32 %v4350_v20, %v5918_v21 }
 0x340   : > { %v5984_v23 = vadd.f32 %v4414_v41, %v3466_v22  ;;  %v4351_v25 = vpop.f32.mrb[60].mxu0  ;;  %v4415_v27 = vpop.f32.mrb[60].mxu1  ;;  %v3611_v28 = vsel %vm3574_vm0, %v5981_v42, -inf }
 0x341   : > { %v4352_v29 = vpop.f32.mrb[61].mxu0  ;;  %v4416_v30 = vpop.f32.mrb[61].mxu1  ;;  %3612 = vmax.xlane.f32.xlu0 %v3611_v28 }
 0x342   : > { %v4353_v31 = vadd.f32 %v4352_v29, %v4351_v25  ;;  %v4417_v32 = vadd.f32 %v4416_v30, %v4415_v27  ;;  %v4354_v34 = vpop.f32.mrb[62].mxu0  ;;  %v4418_v36 = vpop.f32.mrb[62].mxu1  ;;  %v3614_v37 = vsel %vm3574_vm0, %v5984_v23, -inf }
 0x343   : > { %v4355_v38 = vpop.f32.mrb[63].mxu0  ;;  %v4419_v43 = vpop.f32.mrb[63].mxu1  ;;  %3615 = vmax.xlane.f32.xlu1 %v3614_v37 }
 0x344   : > { %v3471_v44 = vadd.f32 %v4353_v31, %v5918_v21  ;;  %v4356_v45 = vadd.f32 %v4355_v38, %v4354_v34  ;;  %v4420_v46 = vadd.f32 %v4419_v43, %v4418_v36 }
 0x346   : > { %v5991_v47 = vadd.f32 %v4417_v32, %v3471_v44  ;;  %v3474_v49 = vadd.f32 %v4356_v45, %v5918_v21 }
 0x348   : > { %v5994_v51 = vadd.f32 %v4420_v46, %v3474_v49  ;;  %v3617_v52 = vsel %vm3574_vm0, %v5991_v47, -inf }
 0x349   : > { %3618 = vmax.xlane.f32.xlu0 %v3617_v52 }
 0x34a   : > { %v3620_v53 = vsel %vm3574_vm0, %v5994_v51, -inf }
 0x34b   : > { %3621 = vmax.xlane.f32.xlu1 %v3620_v53 }
 0x39e   : > { %v3577_v54 = vpop.xlane.xlu0 %3576 }
 0x39f   : > { %v3623_v56 = vsub.f32 %v5921_v33, %v3577_v54 }
 0x3a1   : > { %v3639_v58 = vmul.f32 1.442695, %v3623_v56 }
 0x3a2   : > { %v3580_v59 = vpop.xlane.xlu0 %3579 }
 0x3a3   : > { %5157 = vpow2.f32 %v3639_v58  ;;  %v3624_v60 = vsub.f32 %v5924_v35, %v3580_v59 }
 0x3a5   : > { %v3641_v61 = vmul.f32 1.442695, %v3624_v60 }
 0x3a6   : > { %v3583_v21 = vpop.xlane.xlu1 %3582 }
 0x3a7   : > { %5159 = vpow2.f32 %v3641_v61  ;;  %v3625_v62 = vsub.f32 %v5931_v55, %v3583_v21 }
 0x3a9   : > { %v3643_v63 = vmul.f32 1.442695, %v3625_v62 }
 0x3aa   : > { %v3586_v0 = vpop.xlane.xlu1 %3585 }
 0x3ab   : > { %5161 = vpow2.f32 %v3643_v63  ;;  %v3626_v1 = vsub.f32 %v5934_v57, %v3586_v0 }
 0x3ad   : > { %v6004_v2 = vpop.eup %5157  ;;  %v3645_v3 = vmul.f32 1.442695, %v3626_v1 }
 0x3ae   : > { %v3589_v5 = vpop.xlane.xlu0 %3588  ;;  %v3671_v7 = vsel %vm3574_vm0, %v6004_v2, 0.0 }
 0x3af   : > { %5163 = vpow2.f32 %v3645_v3  ;;  %v3627_v8 = vsub.f32 %v5941_v9, %v3589_v5  ;;  %3672 = vadd.xlane.f32.xlu0 %v3671_v7 }
 0x3b0   : > { %v3592_v10 = vpop.xlane.xlu1 %3591 }
 0x3b1   : > { %v6009_v12 = vpop.eup %5159  ;;  %v3647_v13 = vmul.f32 1.442695, %v3627_v8  ;;  %v3628_v14 = vsub.f32 %v5944_v11, %v3592_v10 }
 0x3b2   : > { %v3674_v15 = vsel %vm3574_vm0, %v6009_v12, 0.0 }
 0x3b3   : > { %5165 = vpow2.f32 %v3647_v13  ;;  %v3649_v39 = vmul.f32 1.442695, %v3628_v14  ;;  %3675 = vadd.xlane.f32.xlu1 %v3674_v15 }
 0x3b5   : > { %v6014_v40 = vpop.eup %5161  ;;  %5167 = vpow2.f32 %v3649_v39 }
 0x3b6   : > { %v3595_v16 = vpop.xlane.xlu0 %3594  ;;  %v3677_v17 = vsel %vm3574_vm0, %v6014_v40, 0.0 }
 0x3b7   : > { %v3629_v18 = vsub.f32 %v5951_v24, %v3595_v16  ;;  %3678 = vadd.xlane.f32.xlu0 %v3677_v17 }
 0x3b8   : > { %v3598_v19 = vpop.xlane.xlu1 %3597 }
 0x3b9   : > { %v6019_v20 = vpop.eup %5163  ;;  %v3651_v41 = vmul.f32 1.442695, %v3629_v18  ;;  %v3630_v22 = vsub.f32 %v5954_v26, %v3598_v19 }
 0x3ba   : > { %v3680_v25 = vsel %vm3574_vm0, %v6019_v20, 0.0 }
 0x3bb   : > { %5169 = vpow2.f32 %v3651_v41  ;;  %v3653_v27 = vmul.f32 1.442695, %v3630_v22  ;;  %3681 = vadd.xlane.f32.xlu1 %v3680_v25 }
 0x3bd   : > { %v6024_v28 = vpop.eup %5165  ;;  %5171 = vpow2.f32 %v3653_v27 }
 0x3be   : > { %v3601_v29 = vpop.xlane.xlu0 %3600  ;;  %v3683_v30 = vsel %vm3574_vm0, %v6024_v28, 0.0 }
 0x3bf   : > { %v6028_v31 = vpop.eup %5167  ;;  %v3631_v32 = vsub.f32 %v5961_v48, %v3601_v29  ;;  %3684 = vadd.xlane.f32.xlu0 %v3683_v30 }
 0x3c0   : > { %v3604_v34 = vpop.xlane.xlu1 %3603  ;;  %v3686_v36 = vsel %vm3574_vm0, %v6028_v31, 0.0 }
 0x3c1   : > { %v3655_v37 = vmul.f32 1.442695, %v3631_v32  ;;  %v3632_v38 = vsub.f32 %v5964_v50, %v3604_v34  ;;  %3687 = vadd.xlane.f32.xlu1 %v3686_v36 }
 0x3c3   : > { %5173 = vpow2.f32 %v3655_v37  ;;  %v3657_v43 = vmul.f32 1.442695, %v3632_v38 }
 0x3c5   : > { %v6034_v44 = vpop.eup %5169  ;;  %5175 = vpow2.f32 %v3657_v43 }
 0x3c6   : > { %v3607_v45 = vpop.xlane.xlu0 %3606  ;;  %v3689_v46 = vsel %vm3574_vm0, %v6034_v44, 0.0 }
 0x3c7   : > { %v6038_v49 = vpop.eup %5171  ;;  %v3633_v52 = vsub.f32 %v5971_v4, %v3607_v45  ;;  %3690 = vadd.xlane.f32.xlu0 %v3689_v46 }
 0x3c8   : > { %v3610_v53 = vpop.xlane.xlu1 %3609  ;;  %v3692_v54 = vsel %vm3574_vm0, %v6038_v49, 0.0 }
 0x3c9   : > { %v3659_v56 = vmul.f32 1.442695, %v3633_v52  ;;  %v3634_v58 = vsub.f32 %v5974_v6, %v3610_v53  ;;  %3693 = vadd.xlane.f32.xlu1 %v3692_v54 }
 0x3cb   : > { %5177 = vpow2.f32 %v3659_v56  ;;  %v3661_v59 = vmul.f32 1.442695, %v3634_v58 }
 0x3cd   : > { %v6044_v60 = vpop.eup %5173  ;;  %5179 = vpow2.f32 %v3661_v59 }
 0x3ce   : > { %v3613_v61 = vpop.xlane.xlu0 %3612  ;;  %v3695_v21 = vsel %vm3574_vm0, %v6044_v60, 0.0 }
 0x3cf   : > { %v6048_v62 = vpop.eup %5175  ;;  %v3635_v63 = vsub.f32 %v5981_v42, %v3613_v61  ;;  %3696 = vadd.xlane.f32.xlu0 %v3695_v21 }
 0x3d0   : > { %v3616_v0 = vpop.xlane.xlu1 %3615  ;;  %v3698_v1 = vsel %vm3574_vm0, %v6048_v62, 0.0 }
 0x3d1   : > { %v3663_v3 = vmul.f32 1.442695, %v3635_v63  ;;  %v3636_v5 = vsub.f32 %v5984_v23, %v3616_v0  ;;  %3699 = vadd.xlane.f32.xlu1 %v3698_v1 }
 0x3d3   : > { %5181 = vpow2.f32 %v3663_v3  ;;  %v3665_v7 = vmul.f32 1.442695, %v3636_v5 }
 0x3d5   : > { %v6054_v8 = vpop.eup %5177  ;;  %5183 = vpow2.f32 %v3665_v7 }
 0x3d6   : > { %v3619_v10 = vpop.xlane.xlu0 %3618  ;;  %v3701_v13 = vsel %vm3574_vm0, %v6054_v8, 0.0 }
 0x3d7   : > { %v6058_v14 = vpop.eup %5179  ;;  %v3637_v15 = vsub.f32 %v5991_v47, %v3619_v10  ;;  %3702 = vadd.xlane.f32.xlu0 %v3701_v13 }
 0x3d8   : > { %v3622_v39 = vpop.xlane.xlu1 %3621  ;;  %v3704_v16 = vsel %vm3574_vm0, %v6058_v14, 0.0 }
 0x3d9   : > { %v3667_v17 = vmul.f32 1.442695, %v3637_v15  ;;  %v3638_v18 = vsub.f32 %v5994_v51, %v3622_v39  ;;  %3705 = vadd.xlane.f32.xlu1 %v3704_v16 }
 0x3db   : > { %5185 = vpow2.f32 %v3667_v17  ;;  %v3669_v19 = vmul.f32 1.442695, %v3638_v18 }
 0x3dd   : > { %v6064_v41 = vpop.eup %5181  ;;  %5187 = vpow2.f32 %v3669_v19 }
 0x3de   : > { %v3707_v22 = vsel %vm3574_vm0, %v6064_v41, 0.0 }
 0x3df   : > { %v6068_v25 = vpop.eup %5183  ;;  %3708 = vadd.xlane.f32.xlu0 %v3707_v22 }
 0x3e0   : > { %v3710_v27 = vsel %vm3574_vm0, %v6068_v25, 0.0 }
 0x3e1   : > { %3711 = vadd.xlane.f32.xlu1 %v3710_v27 }
 0x3e5   : > { %v6072_v29 = vpop.eup %5185 }
 0x3e6   : > { %v3713_v30 = vsel %vm3574_vm0, %v6072_v29, 0.0 }
 0x3e7   : > { %v6076_v32 = vpop.eup %5187  ;;  %3714 = vadd.xlane.f32.xlu0 %v3713_v30 }
 0x3e8   : > { %v3716_v34 = vsel %vm3574_vm0, %v6076_v32, 0.0 }
 0x3e9   : > { %3717 = vadd.xlane.f32.xlu1 %v3716_v34 }
 0x43c   : > { %v3673_v36 = vpop.xlane.xlu0 %3672 }
 0x43d   : > { %5189 = vrcp.f32 %v3673_v36 }
 0x440   : > { %v3676_v37 = vpop.xlane.xlu1 %3675 }
 0x441   : > { %5191 = vrcp.f32 %v3676_v37 }
 0x444   : > { %v3679_v38 = vpop.xlane.xlu0 %3678 }
 0x445   : > { %5193 = vrcp.f32 %v3679_v38 }
 0x447   : > { %v5190_v43 = vpop.eup %5189 }
 0x448   : > { %v3682_v45 = vpop.xlane.xlu1 %3681  ;;  %v3720_v46 = vmul.f32 %v5190_v43, %v6004_v2 }
 0x449   : > { %5195 = vrcp.f32 %v3682_v45 }
 0x44a   : > { %3767 = vrot.lane.b32.xlu0 %v3720_v46, %s5357_s11 }
 0x44b   : > { %v5192_v52 = vpop.eup %5191 }
 0x44c   : > { %v3685_v53 = vpop.xlane.xlu0 %3684  ;;  %v3722_v54 = vmul.f32 %v5192_v52, %v6009_v12 }
 0x44d   : > { %5197 = vrcp.f32 %v3685_v53 }
 0x44e   : > { %3769 = vrot.lane.b32.xlu1 %v3722_v54, %s5357_s11  ;;  %v3688_v56 = vpop.xlane.xlu1 %3687 }
 0x44f   : > { %v5194_v58 = vpop.eup %5193  ;;  %5199 = vrcp.f32 %v3688_v56 }
 0x450   : > { %v3724_v59 = vmul.f32 %v5194_v58, %v6014_v40 }
 0x452   : > { %3771 = vrot.lane.b32.xlu1 %v3724_v59, %s5357_s11 }
 0x453   : > { %v5196_v61 = vpop.eup %5195 }
 0x454   : > { %v3691_v2 = vpop.xlane.xlu0 %3690  ;;  %v3726_v21 = vmul.f32 %v5196_v61, %v6019_v20 }
 0x455   : > { %5201 = vrcp.f32 %v3691_v2 }
 0x456   : > { %v3694_v63 = vpop.xlane.xlu1 %3693  ;;  %3773 = vrot.lane.b32.xlu1 %v3726_v21, %s5357_s11 }
 0x457   : > { %v5198_v0 = vpop.eup %5197  ;;  %5203 = vrcp.f32 %v3694_v63 }
 0x458   : > { %v3728_v12 = vmul.f32 %v5198_v0, %v6024_v28 }
 0x459   : > { %v5200_v1 = vpop.eup %5199 }
 0x45a   : > { %3775 = vrot.lane.b32.xlu0 %v3728_v12, %s5357_s11  ;;  %v3730_v3 = vmul.f32 %v5200_v1, %v6028_v31 }
 0x45c   : > { %3777 = vrot.lane.b32.xlu1 %v3730_v3, %s5357_s11  ;;  %v3697_v40 = vpop.xlane.xlu0 %3696 }
 0x45d   : > { %5205 = vrcp.f32 %v3697_v40 }
 0x45e   : > { %v3700_v5 = vpop.xlane.xlu1 %3699 }
 0x45f   : > { %v5202_v7 = vpop.eup %5201  ;;  %5207 = vrcp.f32 %v3700_v5 }
 0x460   : > { %v3732_v20 = vmul.f32 %v5202_v7, %v6034_v44 }
 0x461   : > { %v5204_v10 = vpop.eup %5203 }
 0x462   : > { %3779 = vrot.lane.b32.xlu0 %v3732_v20, %s5357_s11  ;;  %v3734_v13 = vmul.f32 %v5204_v10, %v6038_v49 }
 0x464   : > { %3781 = vrot.lane.b32.xlu1 %v3734_v13, %s5357_s11  ;;  %v3703_v28 = vpop.xlane.xlu0 %3702 }
 0x465   : > { %5209 = vrcp.f32 %v3703_v28 }
 0x466   : > { %v3706_v15 = vpop.xlane.xlu1 %3705 }
 0x467   : > { %v5206_v31 = vpop.eup %5205  ;;  %5211 = vrcp.f32 %v3706_v15 }
 0x468   : > { %v3736_v39 = vmul.f32 %v5206_v31, %v6044_v60 }
 0x469   : > { %v5208_v16 = vpop.eup %5207 }
 0x46a   : > { %3783 = vrot.lane.b32.xlu0 %v3736_v39, %s5357_s11  ;;  %v3738_v44 = vmul.f32 %v5208_v16, %v6048_v62 }
 0x46c   : > { %3785 = vrot.lane.b32.xlu1 %v3738_v44, %s5357_s11  ;;  %v3709_v17 = vpop.xlane.xlu0 %3708 }
 0x46d   : > { %5213 = vrcp.f32 %v3709_v17 }
 0x46e   : > { %v3712_v49 = vpop.xlane.xlu1 %3711 }
 0x46f   : > { %v5210_v18 = vpop.eup %5209  ;;  %5215 = vrcp.f32 %v3712_v49 }
 0x470   : > { %v3740_v19 = vmul.f32 %v5210_v18, %v6054_v8 }
 0x471   : > { %v5212_v22 = vpop.eup %5211 }
 0x472   : > { %3787 = vrot.lane.b32.xlu0 %v3740_v19, %s5357_s11  ;;  %v3742_v60 = vmul.f32 %v5212_v22, %v6058_v14 }
 0x474   : > { %3789 = vrot.lane.b32.xlu1 %v3742_v60, %s5357_s11  ;;  %v3715_v27 = vpop.xlane.xlu0 %3714 }
 0x475   : > { %5217 = vrcp.f32 %v3715_v27 }
 0x476   : > { %v3718_v62 = vpop.xlane.xlu1 %3717 }
 0x477   : > { %v5214_v30 = vpop.eup %5213  ;;  %5219 = vrcp.f32 %v3718_v62 }
 0x478   : > { %v3744_v8 = vmul.f32 %v5214_v30, %v6064_v41 }
 0x479   : > { %v5216_v14 = vpop.eup %5215 }
 0x47a   : > { %3791 = vrot.lane.b32.xlu0 %v3744_v8, %s5357_s11  ;;  %v3746_v34 = vmul.f32 %v5216_v14, %v6068_v25 }
 0x47b   : > { %5292 = shalt.err (!%p5289_p7)
}
 0x47c   : > { %s5293_s29 = scalar_lea.hbm %s6109_s26, 8192  ;;  %s5297_s20 = scalar_lea.hbm %s6239_s6, 16384 }
 0x47d   : > { %p5294_p9 = scmp.ne.s32.totalorder %s6109_s26, %s5293_s29  ;;  %p5298_p5 = scmp.lt.u32.totalorder %s6109_s26, %s6239_s6 }
 0x47e   : > { %p5299_p11 = scmp.lt.u32.totalorder %s5297_s20, %s5293_s29  ;;  %p5301_p4 = scmp.lt.u32.totalorder %s5293_s29, %s6109_s26 }
 0x47f   : > { %p5295_p2 = pnand %p5294_p9, %p5487_p12 }
 0x480   : > { %p5300_p1 = por %p5299_p11, %p5298_p5 }
 0x481   : > { %p5296_p0 = pneg %p5295_p2 }
 0x482   : > { %p5302_p6 = por %p5301_p4, %p5300_p1 }
 0x484   : > { %p5303_p8 = pnand %p5302_p6, %p5296_p0 }
 0x486   : > { %5306 = shalt.err (!%p5303_p8)
}
 0x487   : > { %s5359_s17 = smov 512   ;;  %s5360_s15 = smov 32   ;;  %3793 = vrot.lane.b32.xlu1 %v3746_v34, %s5357_s11  ;;  %v5218_v41 = vpop.eup %5217  ;;  %vm3831_vm1 = vcmask 64512  }
 0x488   : > { %4683 = dma.vmem_to_hbm [thread:$0]  (%p5487_p12), %s6112_s18, 8192, %s6109_s26, %s3854_s12, %s5359_s17, %s5359_s17, %s5360_s15   ;;  %v3748_v25 = vmul.f32 %v5218_v41, %v6072_v29  ;;  %v5220_v36 = vpop.eup %5219 }
 0x489   : > { %v3750_v37 = vmul.f32 %v5220_v36, %v6076_v32  ;;  %s3992_s8 = sshll.u32 %s5417_s25, 4 }
 0x48a   : > { %3795 = vrot.lane.b32.xlu0 %v3748_v25, %s5357_s11  ;;  %p296_p10 = scmp.lt.s32.totalorder %s3992_s8, 31 }
 0x48b   : > { %3797 = vrot.lane.b32.xlu1 %v3750_v37, %s5357_s11 }
 0x48c   : > { %s6261_s8 = smov (!%p296_p10, %s3992_s8), 31 }
 0x48d   : > { %s3993_s27 = sshll.u32 %s6261_s8, 3 }
 0x48e   : > { %s6149_s16 = scalar_lea.vmem %s6238_s5, %s3993_s27 }
 0x4bc   : > { %v3768_v29 = vpop.permute.xlu0 %3767 }
 0x4bd   : > { %v3815_v32 = vsel %vm3574_vm0, %v5921_v33, %v3768_v29 }
 0x4be   : > { %3832 = vst.msk [vmem:[%s6149_s16] sm:$0xff] %vm3831_vm1, %v3815_v32 }
 0x4c0   : > { %v3770_v38 = vpop.permute.xlu1 %3769 }
 0x4c1   : > { %v3816_v43 = vsel %vm3574_vm0, %v5924_v35, %v3770_v38 }
 0x4c2   : > { %3833 = vst.msk [vmem:[%s6149_s16 + $0x8] sm:$0xff] %vm3831_vm1, %v3816_v43 }
 0x4c4   : > { %v3772_v45 = vpop.permute.xlu1 %3771 }
 0x4c5   : > { %v3817_v46 = vsel %vm3574_vm0, %v5931_v55, %v3772_v45 }
 0x4c6   : > { %3834 = vst.msk [vmem:[%s6149_s16 + $0x10] sm:$0xff] %vm3831_vm1, %v3817_v46 }
 0x4c8   : > { %v3774_v52 = vpop.permute.xlu1 %3773 }
 0x4c9   : > { %v3818_v33 = vsel %vm3574_vm0, %v5934_v57, %v3774_v52 }
 0x4ca   : > { %3835 = vst.msk [vmem:[%s6149_s16 + $0x18] sm:$0xff] %vm3831_vm1, %v3818_v33 }
 0x4cc   : > { %v3776_v53 = vpop.permute.xlu0 %3775 }
 0x4cd   : > { %v3819_v35 = vsel %vm3574_vm0, %v5941_v9, %v3776_v53 }
 0x4ce   : > { %3836 = vst.msk [vmem:[%s6149_s16 + $0x20] sm:$0xff] %vm3831_vm1, %v3819_v35  ;;  %v3778_v54 = vpop.permute.xlu1 %3777 }
 0x4cf   : > { %v3820_v55 = vsel %vm3574_vm0, %v5944_v11, %v3778_v54 }
 0x4d0   : > { %3837 = vst.msk [vmem:[%s6149_s16 + $0x28] sm:$0xff] %vm3831_vm1, %v3820_v55 }
 0x4d4   : > { %v3780_v56 = vpop.permute.xlu0 %3779 }
 0x4d5   : > { %v3821_v57 = vsel %vm3574_vm0, %v5951_v24, %v3780_v56 }
 0x4d6   : > { %3838 = vst.msk [vmem:[%s6149_s16 + $0x30] sm:$0xff] %vm3831_vm1, %v3821_v57  ;;  %v3782_v58 = vpop.permute.xlu1 %3781 }
 0x4d7   : > { %v3822_v9 = vsel %vm3574_vm0, %v5954_v26, %v3782_v58 }
 0x4d8   : > { %3839 = vst.msk [vmem:[%s6149_s16 + $0x38] sm:$0xff] %vm3831_vm1, %v3822_v9 }
 0x4dc   : > { %v3784_v59 = vpop.permute.xlu0 %3783 }
 0x4dd   : > { %v3823_v11 = vsel %vm3574_vm0, %v5961_v48, %v3784_v59 }
 0x4de   : > { %3840 = vst.msk [vmem:[%s6149_s16 + $0x40] sm:$0xff] %vm3831_vm1, %v3823_v11  ;;  %v3786_v61 = vpop.permute.xlu1 %3785 }
 0x4df   : > { %v3824_v24 = vsel %vm3574_vm0, %v5964_v50, %v3786_v61 }
 0x4e0   : > { %3841 = vst.msk [vmem:[%s6149_s16 + $0x48] sm:$0xff] %vm3831_vm1, %v3824_v24 }
 0x4e4   : > { %v3788_v2 = vpop.permute.xlu0 %3787 }
 0x4e5   : > { %v3825_v26 = vsel %vm3574_vm0, %v5971_v4, %v3788_v2 }
 0x4e6   : > { %3842 = vst.msk [vmem:[%s6149_s16 + $0x50] sm:$0xff] %vm3831_vm1, %v3825_v26  ;;  %v3790_v21 = vpop.permute.xlu1 %3789 }
 0x4e7   : > { %v3826_v48 = vsel %vm3574_vm0, %v5974_v6, %v3790_v21 }
 0x4e8   : > { %3843 = vst.msk [vmem:[%s6149_s16 + $0x58] sm:$0xff] %vm3831_vm1, %v3826_v48 }
 0x4ec   : > { %v3792_v63 = vpop.permute.xlu0 %3791 }
 0x4ed   : > { %v3827_v50 = vsel %vm3574_vm0, %v5981_v42, %v3792_v63 }
 0x4ee   : > { %3844 = vst.msk [vmem:[%s6149_s16 + $0x60] sm:$0xff] %vm3831_vm1, %v3827_v50 }
 0x4f9   : > { %v3794_v0 = vpop.permute.xlu1 %3793 }
 0x4fa   : > { %v3828_v12 = vsel %vm3574_vm0, %v5984_v23, %v3794_v0 }
 0x4fb   : > { %3845 = vst.msk [vmem:[%s6149_s16 + $0x68] sm:$0xff] %vm3831_vm1, %v3828_v12 }
 0x4fc   : > { %v3796_v4 = vpop.permute.xlu0 %3795 }
 0x4fd   : > { %v3829_v1 = vsel %vm3574_vm0, %v5991_v47, %v3796_v4  ;;  %v3798_v6 = vpop.permute.xlu1 %3797 }
 0x4fe   : > { %3846 = vst.msk [vmem:[%s6149_s16 + $0x70] sm:$0xff] %vm3831_vm1, %v3829_v1  ;;  %v3830_v3 = vsel %vm3574_vm0, %v5994_v51, %v3798_v6 }
 0x4ff   : > { %3847 = vst.msk [vmem:[%s6149_s16 + $0x78] sm:$0xff] %vm3831_vm1, %v3830_v3 }
 0x500 PF: > { %s3895_s25 = sand.u32 1, %s5337_s21   ;;  %p6254_p12 = scmp.ne.s32.totalorder %s6244_s28, 0 }
 0x501   : > { %p6255_p13 = scmp.ge.s32.totalorder %s5349_s24, 2  ;;  %s3896_s11 = scalar_lea.sflag [#allocation4], %s3895_s25 }
 0x503   : > { %p4694_p3 = pnand %p6255_p13, %p6254_p12 }
 0x505   : > { %5332 = dma.done.wait (!%p4694_p3), %s3896_s11, 8192  }
 0x506   : > { %5334 = vsyncadd (!%p4694_p3), %s3896_s11, 4294959104  ;;  %p21_p7 = scmp.ge.s32.totalorder %s5452_s9, 4   ;;  %s6256_s21 = smov %s5341_s22 }
 0x507   : > { %s6257_s22 = smov %s5345_s23  ;;  %s6258_s23 = smov %s5483_s13 }
 0x508   : > { %s6259_s24 = smov %s5452_s9  ;;  %23 = sbr.rel (!%p21_p7) target bundleno = 6 (0x6), region = 101 }
 0x50f   :  { %3901 = vsyncpa [#allocation3], 1 }
 0x510   :  { %3903 = vsyncpa [#allocation3 + $0x1], 1 }
 0x511   :  { %3904 = vsyncpa [#allocation6], 1 }
 0x512   :  { %3905 = vsyncpa [#allocation4], 1 }
 0x513   :  { %3907 = vsyncpa [#allocation4 + $0x1], 1 }

</bundles_post_ra>
